<compile_context>
chip_gen: v7x
topology: tpu7x:2x2x1
jax: 0.10.0
libtpu: 0.0.40
codegen_flags: <defaults>
</compile_context>

<pallas_src>
import functools
import math
from typing import NamedTuple, Tuple

import jax
import jax.numpy as jnp
import numpy as np
from jax.experimental import pallas as pl
from jax.experimental.pallas import tpu as pltpu


# ----------------------------- static layout --------------------------------
class HeadLayout(NamedTuple):
    level_hw: Tuple[Tuple[int, int], ...]   # (H, W) per FPN level
    wpad: int                               # common (padded) row width
    m_per_level: Tuple[int, ...]            # H * wpad per level
    m_total: int                            # sum, rounded up to a mult. of 128
    num_convs: int
    c_in: int
    c_cls: int                              # true cls channels (unpadded)
    c_box: int                              # true bbox channels (unpadded)
    c_cls_pad: int
    c_box_pad: int


def make_layout(feature_shapes, num_convs, c_cls, c_box):
    level_hw = tuple((int(s[2]), int(s[3])) for s in feature_shapes)
    c_in = int(feature_shapes[0][1])
    wpad = max(w for _, w in level_hw)
    m_per_level = tuple(h * wpad for h, _ in level_hw)
    m_total = ((sum(m_per_level) + 127) // 128) * 128   # lane-dense total
    pad8 = lambda c: ((c + 7) // 8) * 8
    return HeadLayout(level_hw, wpad, m_per_level, m_total, num_convs,
                      c_in, c_cls, c_box, pad8(c_cls), pad8(c_box))


def build_tap_masks(layout: HeadLayout) -> np.ndarray:
    """(9*C, M_total) f32 validity masks for the 9 taps of a 3x3 'same' conv.

    Row t*C + c holds tap t's mask (identical for every channel c).  Tap order
    is (dh, dw), dh outer, dh/dw in (-1, 0, +1) — it MUST match the
    (kh, kw, cin)-major weight packing in pack_params.
    """
    m = np.zeros((9, layout.m_total), np.float32)
    off = 0
    for (h_l, w_l), m_l in zip(layout.level_hw, layout.m_per_level):
        idx = np.arange(m_l)
        hh = idx // layout.wpad
        ww = idx % layout.wpad
        t = 0
        for dh in (-1, 0, 1):
            for dw in (-1, 0, 1):
                valid = ((hh + dh >= 0) & (hh + dh < h_l) &
                         (ww + dw >= 0) & (ww + dw < w_l) & (ww < w_l))
                m[t, off:off + m_l] = valid.astype(np.float32)
                t += 1
        off += m_l
    # Expand to one mask row per (tap, channel) so the kernel never has to
    # re-materialize (1, M) -> (C, M) broadcasts.
    return np.repeat(m, layout.c_in, axis=0)


# ----------------------------- weight packing --------------------------------
def pack_params(params, layout: HeadLayout):
    """One-time host-side packing (call at init, NOT inside the jitted fwd)."""
    c = layout.c_in
    num_convs = layout.num_convs

    def pack_w(w_hwio):      # (3,3,Cin,Cout) -> (Cout, 9*Cin) bf16, (kh,kw,cin)-major rows
        kh, kw, cin, cout = w_hwio.shape
        return w_hwio.reshape(kh * kw * cin, cout).T.astype(jnp.bfloat16)

    def pack_b(b):
        return b.reshape(-1, 1).astype(jnp.float32)

    # Layer 0 of both towers fused into one (2C, 9C) matmul (shared im2col(x)).
    w0 = jnp.concatenate([pack_w(params["cls_tower"][0][0]),
                          pack_w(params["bbox_tower"][0][0])], axis=0)
    b0 = jnp.concatenate([pack_b(params["cls_tower"][0][1]),
                          pack_b(params["bbox_tower"][0][1])], axis=0)

    # Remaining tower layers: [cls_1..cls_{n-1}, bbox_1..bbox_{n-1}]
    rest_w, rest_b = [], []
    for i in range(1, num_convs):
        rest_w.append(pack_w(params["cls_tower"][i][0]))
        rest_b.append(pack_b(params["cls_tower"][i][1]))
    for i in range(1, num_convs):
        rest_w.append(pack_w(params["bbox_tower"][i][0]))
        rest_b.append(pack_b(params["bbox_tower"][i][1]))
    w_rest = jnp.stack(rest_w, axis=0) if rest_w else None
    b_rest = jnp.stack(rest_b, axis=0) if rest_b else None

    def pad_rows(w, b, cpad):
        pad = cpad - w.shape[0]
        if pad:
            w = jnp.pad(w, ((0, pad), (0, 0)))
            b = jnp.pad(b, ((0, pad), (0, 0)))
        return w, b

    w_cls, b_cls = pad_rows(pack_w(params["cls_logits"][0]),
                            pack_b(params["cls_logits"][1]), layout.c_cls_pad)
    w_box, b_box = pad_rows(pack_w(params["bbox_pred"][0]),
                            pack_b(params["bbox_pred"][1]), layout.c_box_pad)
    return dict(w0=w0, b0=b0, w_rest=w_rest, b_rest=b_rest,
                w_cls=w_cls, b_cls=b_cls, w_box=w_box, b_box=b_box)


# ----------------------------- Pallas kernel --------------------------------
def _retina_head_kernel(layout: HeadLayout, has_rest: bool, *refs):
    if has_rest:
        (x_ref, maskb_ref, w0_ref, b0_ref, wr_ref, br_ref,
         w_cls_ref, b_cls_ref, w_box_ref, b_box_ref,
         cls_out_ref, box_out_ref, col_ref) = refs
    else:
        (x_ref, maskb_ref, w0_ref, b0_ref,
         w_cls_ref, b_cls_ref, w_box_ref, b_box_ref,
         cls_out_ref, box_out_ref, col_ref) = refs

    c = layout.c_in
    m = layout.m_total
    wpad = layout.wpad
    taps = [(dh, dw) for dh in (-1, 0, 1) for dw in (-1, 0, 1)]

    def build_im2col(a):
        # a: (C, M) f32.  Writes the transposed im2col (9C, M) into col_ref
        # (bf16).  Taps gathered with XLU lane rolls; every wrap (image border,
        # cross-image, cross-level, row/tail padding) is zeroed by the masks.
        for t, (dh, dw) in enumerate(taps):
            d = dh * wpad + dw
            if d == 0:
                v = a                                  # center tap needs no mask
            else:
                rolled = pltpu.roll(a, shift=(-d) % m, axis=1)
                v = rolled * maskb_ref[pl.ds(t * c, c), :]
            col_ref[pl.ds(t * c, c), :] = v.astype(col_ref.dtype)

    def conv_from_col(w, b, relu):
        y = jnp.dot(w, col_ref[...], preferred_element_type=jnp.float32) + b
        return jnp.maximum(y, 0.0) if relu else y

    # ---- tower layer 0: both branches in one MXU matmul ----
    build_im2col(x_ref[...])
    y0 = conv_from_col(w0_ref[...], b0_ref[...], relu=True)   # (2C, M)
    c_act = y0[:c, :]
    r_act = y0[c:, :]

    n_rest = layout.num_convs - 1

    # ---- cls branch ----
    for i in range(n_rest):
        build_im2col(c_act)
        c_act = conv_from_col(wr_ref[i], br_ref[i], relu=True)
    build_im2col(c_act)
    cls_out_ref[...] = conv_from_col(w_cls_ref[...], b_cls_ref[...],
                                     relu=False).astype(cls_out_ref.dtype)

    # ---- bbox branch ----
    for i in range(n_rest):
        build_im2col(r_act)
        r_act = conv_from_col(wr_ref[n_rest + i], br_ref[n_rest + i], relu=True)
    build_im2col(r_act)
    box_out_ref[...] = conv_from_col(w_box_ref[...], b_box_ref[...],
                                     relu=False).astype(box_out_ref.dtype)


def _run_head(layout: HeadLayout, packed, x_cat, masks_b):
    b = x_cat.shape[0]
    c = layout.c_in
    k = 9 * c
    m = layout.m_total
    has_rest = layout.num_convs > 1

    const2 = lambda bb: (0, 0)
    const3 = lambda bb: (0, 0, 0)

    inputs = [x_cat, masks_b, packed["w0"], packed["b0"]]
    in_specs = [
        pl.BlockSpec((None, c, m), lambda bb: (bb, 0, 0)),       # feature block
        pl.BlockSpec((9 * c, m), const2),                        # masks (resident)
        pl.BlockSpec((2 * c, k), const2),                        # fused layer-0 W
        pl.BlockSpec((2 * c, 1), const2),                        # fused layer-0 b
    ]
    if has_rest:
        n_rest2 = 2 * (layout.num_convs - 1)
        inputs += [packed["w_rest"], packed["b_rest"]]
        in_specs += [pl.BlockSpec((n_rest2, c, k), const3),
                     pl.BlockSpec((n_rest2, c, 1), const3)]
    inputs += [packed["w_cls"], packed["b_cls"], packed["w_box"], packed["b_box"]]
    in_specs += [pl.BlockSpec((layout.c_cls_pad, k), const2),
                 pl.BlockSpec((layout.c_cls_pad, 1), const2),
                 pl.BlockSpec((layout.c_box_pad, k), const2),
                 pl.BlockSpec((layout.c_box_pad, 1), const2)]

    cls_out, box_out = pl.pallas_call(
        functools.partial(_retina_head_kernel, layout, has_rest),
        out_shape=(jax.ShapeDtypeStruct((b, layout.c_cls_pad, m), jnp.float32),
                   jax.ShapeDtypeStruct((b, layout.c_box_pad, m), jnp.float32)),
        grid_spec=pltpu.PrefetchScalarGridSpec(
            num_scalar_prefetch=0,
            grid=(b,),
            in_specs=in_specs,
            out_specs=[
                pl.BlockSpec((None, layout.c_cls_pad, m), lambda bb: (bb, 0, 0)),
                pl.BlockSpec((None, layout.c_box_pad, m), lambda bb: (bb, 0, 0)),
            ],
            scratch_shapes=[pltpu.VMEM((9 * c, m), jnp.bfloat16)],  # shared im2col
        ),
        compiler_params=pltpu.CompilerParams(
            dimension_semantics=("parallel",)),                    # v7x: 2 TCs
    )(*inputs)
    return cls_out, box_out


# ----------------------------- forward wrapper -------------------------------
@functools.partial(jax.jit, static_argnums=(0,))
def _forward_jit(layout: HeadLayout, packed, masks_b, *features):
    b = features[0].shape[0]
    c = layout.c_in

    # Assemble the fused (B, C, M_total) lane layout: each level row-padded to
    # Wpad, flattened, concatenated; tail zero-padded to a multiple of 128.
    segs = []
    for x, (h_l, w_l) in zip(features, layout.level_hw):
        if w_l < layout.wpad:
            x = jnp.pad(x, ((0, 0), (0, 0), (0, 0), (0, layout.wpad - w_l)))
        segs.append(x.reshape(b, c, h_l * layout.wpad))
    x_cat = jnp.concatenate(segs, axis=2)
    tail = layout.m_total - x_cat.shape[2]
    if tail:
        x_cat = jnp.pad(x_cat, ((0, 0), (0, 0), (0, tail)))

    cls_cat, box_cat = _run_head(layout, packed, x_cat, masks_b)

    # Split back into per-level NCHW outputs (drop channel / width padding).
    logits, bbox_reg = [], []
    off = 0
    for (h_l, w_l), m_l in zip(layout.level_hw, layout.m_per_level):
        cls_l = cls_cat[:, :layout.c_cls, off:off + m_l]
        box_l = box_cat[:, :layout.c_box, off:off + m_l]
        logits.append(cls_l.reshape(b, layout.c_cls, h_l, layout.wpad)[..., :w_l])
        bbox_reg.append(box_l.reshape(b, layout.c_box, h_l, layout.wpad)[..., :w_l])
        off += m_l
    return logits, bbox_reg


def retinanet_head_forward(features, layout, packed, masks_b):
    """features: list of (B, C, H, W) arrays.  Returns (logits, bbox_reg), each
    a list of NCHW arrays — same semantics as the PyTorch forward."""
    return _forward_jit(layout, packed, masks_b, *features)


# ----------------------------- init & reference ------------------------------
def init_retinanet_head_params(key, in_channels, num_convs, num_anchors,
                               num_classes, rotate, prior_prob):
    """Synthetic init matching the PyTorch __init__: weights ~ N(0, 0.01^2),
    biases 0 except cls_logits bias = -log((1-p)/p).  HWIO (3,3,Cin,Cout)."""
    def conv_params(k, cin, cout, bias_value=0.0):
        w = 0.01 * jax.random.normal(k, (3, 3, cin, cout), dtype=jnp.float32)
        b = jnp.full((cout,), bias_value, dtype=jnp.float32)
        return w, b

    keys = jax.random.split(key, 2 * num_convs + 2)
    params = {"cls_tower": [], "bbox_tower": []}
    for i in range(num_convs):
        params["cls_tower"].append(conv_params(keys[i], in_channels, in_channels))
        params["bbox_tower"].append(
            conv_params(keys[num_convs + i], in_channels, in_channels))
    bias_value = -math.log((1.0 - prior_prob) / prior_prob)
    params["cls_logits"] = conv_params(
        keys[2 * num_convs], in_channels, num_anchors * num_classes, bias_value)
    bbox_out = num_anchors * (5 if rotate else 4)
    params["bbox_pred"] = conv_params(keys[2 * num_convs + 1], in_channels, bbox_out)
    return params


def _ref_conv3x3(x_nchw, w_hwio, b, relu):
    y = jax.lax.conv_general_dilated(
        x_nchw, w_hwio, window_strides=(1, 1), padding="SAME",
        dimension_numbers=("NCHW", "HWIO", "NCHW"),
    ) + b[None, :, None, None]
    return jnp.maximum(y, 0.0) if relu else y


def _ref_forward(features_nchw, params):
    logits, bbox_reg = [], []
    for feature in features_nchw:
        c = feature
        for w, b in params["cls_tower"]:
            c = _ref_conv3x3(c, w, b, True)
        logits.append(_ref_conv3x3(c, *params["cls_logits"], False))
        r = feature
        for w, b in params["bbox_tower"]:
            r = _ref_conv3x3(r, w, b, True)
        bbox_reg.append(_ref_conv3x3(r, *params["bbox_pred"], False))
    return logits, bbox_reg


# --------------------------------- main ---------------------------------------
if __name__ == "__main__":
    # Synthetic cfg
    in_channels = 16
    num_convs = 2
    num_classes = 5 - 1            # cfg.MODEL.RETINANET.NUM_CLASSES - 1
    num_anchors = 3 * 3            # len(ASPECT_RATIOS) * SCALES_PER_OCTAVE
    rotate = True
    prior_prob = 0.01

    key = jax.random.PRNGKey(0)
    pkey, k1, k2 = jax.random.split(key, 3)
    params = init_retinanet_head_params(
        pkey, in_channels, num_convs, num_anchors, num_classes, rotate, prior_prob)

    # Two FPN-like feature levels, NCHW (PyTorch input convention).
    features = [
        jax.random.normal(k1, (2, in_channels, 16, 16), dtype=jnp.float32),
        jax.random.normal(k2, (2, in_channels, 8, 8), dtype=jnp.float32),
    ]

    c_cls = num_anchors * num_classes              # 36
    c_box = num_anchors * (5 if rotate else 4)     # 45

    # One-time packing (hoisted out of the jitted forward).
    layout = make_layout([f.shape for f in features], num_convs, c_cls, c_box)
    packed = pack_params(params, layout)
    masks_b = jnp.asarray(build_tap_masks(layout))

    logits, bbox_reg = retinanet_head_forward(features, layout, packed, masks_b)
    jax.block_until_ready(logits)
    jax.block_until_ready(bbox_reg)

    # Correctness check against a plain-JAX reference (f32 convs).
    ref_logits, ref_bbox = _ref_forward(features, params)
    for got, ref in zip(logits + bbox_reg, ref_logits + ref_bbox):
        assert got.shape == ref.shape, (got.shape, ref.shape)
        assert jnp.allclose(got, ref, atol=1e-2, rtol=1e-2), "mismatch vs reference"

    # Expected output channels: logits -> 9*4 = 36, bbox_reg -> 9*5 = 45.
    assert logits[0].shape == (2, 36, 16, 16)
    assert bbox_reg[0].shape == (2, 45, 16, 16)
    assert logits[1].shape == (2, 36, 8, 8)
    assert bbox_reg[1].shape == (2, 45, 8, 8)

    print("KERNEL_OK")
</pallas_src>

<mosaic_0001>
module attributes {stable_mosaic.version = 11 : i64} {
  func.func @_retina_head_kernel(%arg0: i32, %arg1: memref<1x16x384xf32, #tpu.memory_space<vmem>>, %arg2: memref<144x384xf32, #tpu.memory_space<vmem>>, %arg3: memref<32x144xbf16, #tpu.memory_space<vmem>>, %arg4: memref<32x1xf32, #tpu.memory_space<vmem>>, %arg5: memref<2x16x144xbf16, #tpu.memory_space<vmem>>, %arg6: memref<2x16x1xf32, #tpu.memory_space<vmem>>, %arg7: memref<40x144xbf16, #tpu.memory_space<vmem>>, %arg8: memref<40x1xf32, #tpu.memory_space<vmem>>, %arg9: memref<48x144xbf16, #tpu.memory_space<vmem>>, %arg10: memref<48x1xf32, #tpu.memory_space<vmem>>, %arg11: memref<1x40x384xf32, #tpu.memory_space<vmem>>, %arg12: memref<1x48x384xf32, #tpu.memory_space<vmem>>, %arg13: memref<144x384xbf16, #tpu.memory_space<vmem>>) attributes {dimension_semantics = [#tpu.dimension_semantics<parallel>], iteration_bounds = array<i64: 2>, scalar_prefetch = 0 : i64, scratch_operands = 1 : i64, tpu.core_type = #tpu.core_type<tc>, window_params = [{transform_indices = @transform_0, window_bounds = array<i64: 1, 16, 384>}, {pipeline_mode = #tpu.pipeline_mode<synchronous>, transform_indices = @transform_1, window_bounds = array<i64: 144, 384>}, {pipeline_mode = #tpu.pipeline_mode<synchronous>, transform_indices = @transform_2, window_bounds = array<i64: 32, 144>}, {pipeline_mode = #tpu.pipeline_mode<synchronous>, transform_indices = @transform_3, window_bounds = array<i64: 32, 1>}, {pipeline_mode = #tpu.pipeline_mode<synchronous>, transform_indices = @transform_4, window_bounds = array<i64: 2, 16, 144>}, {pipeline_mode = #tpu.pipeline_mode<synchronous>, transform_indices = @transform_5, window_bounds = array<i64: 2, 16, 1>}, {pipeline_mode = #tpu.pipeline_mode<synchronous>, transform_indices = @transform_6, window_bounds = array<i64: 40, 144>}, {pipeline_mode = #tpu.pipeline_mode<synchronous>, transform_indices = @transform_7, window_bounds = array<i64: 40, 1>}, {pipeline_mode = #tpu.pipeline_mode<synchronous>, transform_indices = @transform_8, window_bounds = array<i64: 48, 144>}, {pipeline_mode = #tpu.pipeline_mode<synchronous>, transform_indices = @transform_9, window_bounds = array<i64: 48, 1>}, {transform_indices = @transform_10, window_bounds = array<i64: 1, 40, 384>}, {transform_indices = @transform_11, window_bounds = array<i64: 1, 48, 384>}]} {
    %c0 = arith.constant 0 : index
    %c0_0 = arith.constant 0 : index
    %c0_1 = arith.constant 0 : index
    %0 = vector.load %arg1[%c0, %c0_0, %c0_1] : memref<1x16x384xf32, #tpu.memory_space<vmem>>, vector<1x16x384xf32>
    %1 = vector.shape_cast %0 : vector<1x16x384xf32> to vector<16x384xf32>
    %c17_i32 = arith.constant 17 : i32
    %2 = tpu.dynamic_rotate %1 by %c17_i32 dim 1 : vector<16x384xf32>, i32 -> vector<16x384xf32>
    %c0_2 = arith.constant 0 : index
    %c0_3 = arith.constant 0 : index
    %3 = vector.load %arg2[%c0_2, %c0_3] : memref<144x384xf32, #tpu.memory_space<vmem>>, vector<16x384xf32>
    %4 = arith.mulf %2, %3 : vector<16x384xf32>
    %5 = arith.truncf %4 : vector<16x384xf32> to vector<16x384xbf16>
    %c0_4 = arith.constant 0 : index
    %c0_5 = arith.constant 0 : index
    %6 = vector.load %arg13[%c0_4, %c0_5] : memref<144x384xbf16, #tpu.memory_space<vmem>>, vector<16x384xbf16>
    tpu.vector_store %arg13[%c0_4, %c0_5], %5 {strides = array<i32>} : memref<144x384xbf16, #tpu.memory_space<vmem>>, vector<16x384xbf16>,
    %c16_i32 = arith.constant 16 : i32
    %7 = tpu.dynamic_rotate %1 by %c16_i32 dim 1 : vector<16x384xf32>, i32 -> vector<16x384xf32>
    %c16 = arith.constant 16 : index
    %c0_6 = arith.constant 0 : index
    %8 = vector.load %arg2[%c16, %c0_6] : memref<144x384xf32, #tpu.memory_space<vmem>>, vector<16x384xf32>
    %9 = arith.mulf %7, %8 : vector<16x384xf32>
    %10 = arith.truncf %9 : vector<16x384xf32> to vector<16x384xbf16>
    %c16_7 = arith.constant 16 : index
    %c0_8 = arith.constant 0 : index
    %11 = vector.load %arg13[%c16_7, %c0_8] : memref<144x384xbf16, #tpu.memory_space<vmem>>, vector<16x384xbf16>
    tpu.vector_store %arg13[%c16_7, %c0_8], %10 {strides = array<i32>} : memref<144x384xbf16, #tpu.memory_space<vmem>>, vector<16x384xbf16>,
    %c15_i32 = arith.constant 15 : i32
    %12 = tpu.dynamic_rotate %1 by %c15_i32 dim 1 : vector<16x384xf32>, i32 -> vector<16x384xf32>
    %c32 = arith.constant 32 : index
    %c0_9 = arith.constant 0 : index
    %13 = vector.load %arg2[%c32, %c0_9] : memref<144x384xf32, #tpu.memory_space<vmem>>, vector<16x384xf32>
    %14 = arith.mulf %12, %13 : vector<16x384xf32>
    %15 = arith.truncf %14 : vector<16x384xf32> to vector<16x384xbf16>
    %c32_10 = arith.constant 32 : index
    %c0_11 = arith.constant 0 : index
    %16 = vector.load %arg13[%c32_10, %c0_11] : memref<144x384xbf16, #tpu.memory_space<vmem>>, vector<16x384xbf16>
    tpu.vector_store %arg13[%c32_10, %c0_11], %15 {strides = array<i32>} : memref<144x384xbf16, #tpu.memory_space<vmem>>, vector<16x384xbf16>,
    %c1_i32 = arith.constant 1 : i32
    %17 = tpu.dynamic_rotate %1 by %c1_i32 dim 1 : vector<16x384xf32>, i32 -> vector<16x384xf32>
    %c48 = arith.constant 48 : index
    %c0_12 = arith.constant 0 : index
    %18 = vector.load %arg2[%c48, %c0_12] : memref<144x384xf32, #tpu.memory_space<vmem>>, vector<16x384xf32>
    %19 = arith.mulf %17, %18 : vector<16x384xf32>
    %20 = arith.truncf %19 : vector<16x384xf32> to vector<16x384xbf16>
    %c48_13 = arith.constant 48 : index
    %c0_14 = arith.constant 0 : index
    %21 = vector.load %arg13[%c48_13, %c0_14] : memref<144x384xbf16, #tpu.memory_space<vmem>>, vector<16x384xbf16>
    tpu.vector_store %arg13[%c48_13, %c0_14], %20 {strides = array<i32>} : memref<144x384xbf16, #tpu.memory_space<vmem>>, vector<16x384xbf16>,
    %22 = arith.truncf %1 : vector<16x384xf32> to vector<16x384xbf16>
    %c64 = arith.constant 64 : index
    %c0_15 = arith.constant 0 : index
    %23 = vector.load %arg13[%c64, %c0_15] : memref<144x384xbf16, #tpu.memory_space<vmem>>, vector<16x384xbf16>
    tpu.vector_store %arg13[%c64, %c0_15], %22 {strides = array<i32>} : memref<144x384xbf16, #tpu.memory_space<vmem>>, vector<16x384xbf16>,
    %c383_i32 = arith.constant 383 : i32
    %24 = tpu.dynamic_rotate %1 by %c383_i32 dim 1 : vector<16x384xf32>, i32 -> vector<16x384xf32>
    %c80 = arith.constant 80 : index
    %c0_16 = arith.constant 0 : index
    %25 = vector.load %arg2[%c80, %c0_16] : memref<144x384xf32, #tpu.memory_space<vmem>>, vector<16x384xf32>
    %26 = arith.mulf %24, %25 : vector<16x384xf32>
    %27 = arith.truncf %26 : vector<16x384xf32> to vector<16x384xbf16>
    %c80_17 = arith.constant 80 : index
    %c0_18 = arith.constant 0 : index
    %28 = vector.load %arg13[%c80_17, %c0_18] : memref<144x384xbf16, #tpu.memory_space<vmem>>, vector<16x384xbf16>
    tpu.vector_store %arg13[%c80_17, %c0_18], %27 {strides = array<i32>} : memref<144x384xbf16, #tpu.memory_space<vmem>>, vector<16x384xbf16>,
    %c369_i32 = arith.constant 369 : i32
    %29 = tpu.dynamic_rotate %1 by %c369_i32 dim 1 : vector<16x384xf32>, i32 -> vector<16x384xf32>
    %c96 = arith.constant 96 : index
    %c0_19 = arith.constant 0 : index
    %30 = vector.load %arg2[%c96, %c0_19] : memref<144x384xf32, #tpu.memory_space<vmem>>, vector<16x384xf32>
    %31 = arith.mulf %29, %30 : vector<16x384xf32>
    %32 = arith.truncf %31 : vector<16x384xf32> to vector<16x384xbf16>
    %c96_20 = arith.constant 96 : index
    %c0_21 = arith.constant 0 : index
    %33 = vector.load %arg13[%c96_20, %c0_21] : memref<144x384xbf16, #tpu.memory_space<vmem>>, vector<16x384xbf16>
    tpu.vector_store %arg13[%c96_20, %c0_21], %32 {strides = array<i32>} : memref<144x384xbf16, #tpu.memory_space<vmem>>, vector<16x384xbf16>,
    %c368_i32 = arith.constant 368 : i32
    %34 = tpu.dynamic_rotate %1 by %c368_i32 dim 1 : vector<16x384xf32>, i32 -> vector<16x384xf32>
    %c112 = arith.constant 112 : index
    %c0_22 = arith.constant 0 : index
    %35 = vector.load %arg2[%c112, %c0_22] : memref<144x384xf32, #tpu.memory_space<vmem>>, vector<16x384xf32>
    %36 = arith.mulf %34, %35 : vector<16x384xf32>
    %37 = arith.truncf %36 : vector<16x384xf32> to vector<16x384xbf16>
    %c112_23 = arith.constant 112 : index
    %c0_24 = arith.constant 0 : index
    %38 = vector.load %arg13[%c112_23, %c0_24] : memref<144x384xbf16, #tpu.memory_space<vmem>>, vector<16x384xbf16>
    tpu.vector_store %arg13[%c112_23, %c0_24], %37 {strides = array<i32>} : memref<144x384xbf16, #tpu.memory_space<vmem>>, vector<16x384xbf16>,
    %c367_i32 = arith.constant 367 : i32
    %39 = tpu.dynamic_rotate %1 by %c367_i32 dim 1 : vector<16x384xf32>, i32 -> vector<16x384xf32>
    %c128 = arith.constant 128 : index
    %c0_25 = arith.constant 0 : index
    %40 = vector.load %arg2[%c128, %c0_25] : memref<144x384xf32, #tpu.memory_space<vmem>>, vector<16x384xf32>
    %41 = arith.mulf %39, %40 : vector<16x384xf32>
    %42 = arith.truncf %41 : vector<16x384xf32> to vector<16x384xbf16>
    %c128_26 = arith.constant 128 : index
    %c0_27 = arith.constant 0 : index
    %43 = vector.load %arg13[%c128_26, %c0_27] : memref<144x384xbf16, #tpu.memory_space<vmem>>, vector<16x384xbf16>
    tpu.vector_store %arg13[%c128_26, %c0_27], %42 {strides = array<i32>} : memref<144x384xbf16, #tpu.memory_space<vmem>>, vector<16x384xbf16>,
    %c0_28 = arith.constant 0 : index
    %c0_29 = arith.constant 0 : index
    %44 = vector.load %arg3[%c0_28, %c0_29] : memref<32x144xbf16, #tpu.memory_space<vmem>>, vector<32x144xbf16>
    %c0_30 = arith.constant 0 : index
    %c0_31 = arith.constant 0 : index
    %45 = vector.load %arg4[%c0_30, %c0_31] : memref<32x1xf32, #tpu.memory_space<vmem>>, vector<32x1xf32>
    %c0_32 = arith.constant 0 : index
    %c0_33 = arith.constant 0 : index
    %46 = vector.load %arg13[%c0_32, %c0_33] : memref<144x384xbf16, #tpu.memory_space<vmem>>, vector<144x384xbf16>
    %cst = arith.constant dense<0.000000e+00> : vector<32x384xf32>
    %47 = tpu.matmul %44, %46, %cst {dimension_numbers = #tpu.dot_dimension_numbers<[1], [0], [0], [1], [0, 0, 1, 1], [], []>} : vector<32x144xbf16>, vector<144x384xbf16>, vector<32x384xf32> -> vector<32x384xf32>
    %48 = vector.broadcast %45 : vector<32x1xf32> to vector<32x384xf32>
    %49 = arith.addf %47, %48 : vector<32x384xf32>
    %cst_34 = arith.constant 0.000000e+00 : f32
    %50 = vector.broadcast %cst_34 : f32 to vector<32x384xf32>
    %51 = arith.maximumf %49, %50 : vector<32x384xf32>
    %52 = vector.extract_strided_slice %51 {offsets = [0, 0], sizes = [16, 384], strides = [1, 1]} : vector<32x384xf32> to vector<16x384xf32>
    %53 = vector.extract_strided_slice %51 {offsets = [16, 0], sizes = [16, 384], strides = [1, 1]} : vector<32x384xf32> to vector<16x384xf32>
    %c17_i32_35 = arith.constant 17 : i32
    %54 = tpu.dynamic_rotate %52 by %c17_i32_35 dim 1 : vector<16x384xf32>, i32 -> vector<16x384xf32>
    %c0_36 = arith.constant 0 : index
    %c0_37 = arith.constant 0 : index
    %55 = vector.load %arg2[%c0_36, %c0_37] : memref<144x384xf32, #tpu.memory_space<vmem>>, vector<16x384xf32>
    %56 = arith.mulf %54, %55 : vector<16x384xf32>
    %57 = arith.truncf %56 : vector<16x384xf32> to vector<16x384xbf16>
    %c0_38 = arith.constant 0 : index
    %c0_39 = arith.constant 0 : index
    %58 = vector.load %arg13[%c0_38, %c0_39] : memref<144x384xbf16, #tpu.memory_space<vmem>>, vector<16x384xbf16>
    tpu.vector_store %arg13[%c0_38, %c0_39], %57 {strides = array<i32>} : memref<144x384xbf16, #tpu.memory_space<vmem>>, vector<16x384xbf16>,
    %c16_i32_40 = arith.constant 16 : i32
    %59 = tpu.dynamic_rotate %52 by %c16_i32_40 dim 1 : vector<16x384xf32>, i32 -> vector<16x384xf32>
    %c16_41 = arith.constant 16 : index
    %c0_42 = arith.constant 0 : index
    %60 = vector.load %arg2[%c16_41, %c0_42] : memref<144x384xf32, #tpu.memory_space<vmem>>, vector<16x384xf32>
    %61 = arith.mulf %59, %60 : vector<16x384xf32>
    %62 = arith.truncf %61 : vector<16x384xf32> to vector<16x384xbf16>
    %c16_43 = arith.constant 16 : index
    %c0_44 = arith.constant 0 : index
    %63 = vector.load %arg13[%c16_43, %c0_44] : memref<144x384xbf16, #tpu.memory_space<vmem>>, vector<16x384xbf16>
    tpu.vector_store %arg13[%c16_43, %c0_44], %62 {strides = array<i32>} : memref<144x384xbf16, #tpu.memory_space<vmem>>, vector<16x384xbf16>,
    %c15_i32_45 = arith.constant 15 : i32
    %64 = tpu.dynamic_rotate %52 by %c15_i32_45 dim 1 : vector<16x384xf32>, i32 -> vector<16x384xf32>
    %c32_46 = arith.constant 32 : index
    %c0_47 = arith.constant 0 : index
    %65 = vector.load %arg2[%c32_46, %c0_47] : memref<144x384xf32, #tpu.memory_space<vmem>>, vector<16x384xf32>
    %66 = arith.mulf %64, %65 : vector<16x384xf32>
    %67 = arith.truncf %66 : vector<16x384xf32> to vector<16x384xbf16>
    %c32_48 = arith.constant 32 : index
    %c0_49 = arith.constant 0 : index
    %68 = vector.load %arg13[%c32_48, %c0_49] : memref<144x384xbf16, #tpu.memory_space<vmem>>, vector<16x384xbf16>
    tpu.vector_store %arg13[%c32_48, %c0_49], %67 {strides = array<i32>} : memref<144x384xbf16, #tpu.memory_space<vmem>>, vector<16x384xbf16>,
    %c1_i32_50 = arith.constant 1 : i32
    %69 = tpu.dynamic_rotate %52 by %c1_i32_50 dim 1 : vector<16x384xf32>, i32 -> vector<16x384xf32>
    %c48_51 = arith.constant 48 : index
    %c0_52 = arith.constant 0 : index
    %70 = vector.load %arg2[%c48_51, %c0_52] : memref<144x384xf32, #tpu.memory_space<vmem>>, vector<16x384xf32>
    %71 = arith.mulf %69, %70 : vector<16x384xf32>
    %72 = arith.truncf %71 : vector<16x384xf32> to vector<16x384xbf16>
    %c48_53 = arith.constant 48 : index
    %c0_54 = arith.constant 0 : index
    %73 = vector.load %arg13[%c48_53, %c0_54] : memref<144x384xbf16, #tpu.memory_space<vmem>>, vector<16x384xbf16>
    tpu.vector_store %arg13[%c48_53, %c0_54], %72 {strides = array<i32>} : memref<144x384xbf16, #tpu.memory_space<vmem>>, vector<16x384xbf16>,
    %74 = arith.truncf %52 : vector<16x384xf32> to vector<16x384xbf16>
    %c64_55 = arith.constant 64 : index
    %c0_56 = arith.constant 0 : index
    %75 = vector.load %arg13[%c64_55, %c0_56] : memref<144x384xbf16, #tpu.memory_space<vmem>>, vector<16x384xbf16>
    tpu.vector_store %arg13[%c64_55, %c0_56], %74 {strides = array<i32>} : memref<144x384xbf16, #tpu.memory_space<vmem>>, vector<16x384xbf16>,
    %c383_i32_57 = arith.constant 383 : i32
    %76 = tpu.dynamic_rotate %52 by %c383_i32_57 dim 1 : vector<16x384xf32>, i32 -> vector<16x384xf32>
    %c80_58 = arith.constant 80 : index
    %c0_59 = arith.constant 0 : index
    %77 = vector.load %arg2[%c80_58, %c0_59] : memref<144x384xf32, #tpu.memory_space<vmem>>, vector<16x384xf32>
    %78 = arith.mulf %76, %77 : vector<16x384xf32>
    %79 = arith.truncf %78 : vector<16x384xf32> to vector<16x384xbf16>
    %c80_60 = arith.constant 80 : index
    %c0_61 = arith.constant 0 : index
    %80 = vector.load %arg13[%c80_60, %c0_61] : memref<144x384xbf16, #tpu.memory_space<vmem>>, vector<16x384xbf16>
    tpu.vector_store %arg13[%c80_60, %c0_61], %79 {strides = array<i32>} : memref<144x384xbf16, #tpu.memory_space<vmem>>, vector<16x384xbf16>,
    %c369_i32_62 = arith.constant 369 : i32
    %81 = tpu.dynamic_rotate %52 by %c369_i32_62 dim 1 : vector<16x384xf32>, i32 -> vector<16x384xf32>
    %c96_63 = arith.constant 96 : index
    %c0_64 = arith.constant 0 : index
    %82 = vector.load %arg2[%c96_63, %c0_64] : memref<144x384xf32, #tpu.memory_space<vmem>>, vector<16x384xf32>
    %83 = arith.mulf %81, %82 : vector<16x384xf32>
    %84 = arith.truncf %83 : vector<16x384xf32> to vector<16x384xbf16>
    %c96_65 = arith.constant 96 : index
    %c0_66 = arith.constant 0 : index
    %85 = vector.load %arg13[%c96_65, %c0_66] : memref<144x384xbf16, #tpu.memory_space<vmem>>, vector<16x384xbf16>
    tpu.vector_store %arg13[%c96_65, %c0_66], %84 {strides = array<i32>} : memref<144x384xbf16, #tpu.memory_space<vmem>>, vector<16x384xbf16>,
    %c368_i32_67 = arith.constant 368 : i32
    %86 = tpu.dynamic_rotate %52 by %c368_i32_67 dim 1 : vector<16x384xf32>, i32 -> vector<16x384xf32>
    %c112_68 = arith.constant 112 : index
    %c0_69 = arith.constant 0 : index
    %87 = vector.load %arg2[%c112_68, %c0_69] : memref<144x384xf32, #tpu.memory_space<vmem>>, vector<16x384xf32>
    %88 = arith.mulf %86, %87 : vector<16x384xf32>
    %89 = arith.truncf %88 : vector<16x384xf32> to vector<16x384xbf16>
    %c112_70 = arith.constant 112 : index
    %c0_71 = arith.constant 0 : index
    %90 = vector.load %arg13[%c112_70, %c0_71] : memref<144x384xbf16, #tpu.memory_space<vmem>>, vector<16x384xbf16>
    tpu.vector_store %arg13[%c112_70, %c0_71], %89 {strides = array<i32>} : memref<144x384xbf16, #tpu.memory_space<vmem>>, vector<16x384xbf16>,
    %c367_i32_72 = arith.constant 367 : i32
    %91 = tpu.dynamic_rotate %52 by %c367_i32_72 dim 1 : vector<16x384xf32>, i32 -> vector<16x384xf32>
    %c128_73 = arith.constant 128 : index
    %c0_74 = arith.constant 0 : index
    %92 = vector.load %arg2[%c128_73, %c0_74] : memref<144x384xf32, #tpu.memory_space<vmem>>, vector<16x384xf32>
    %93 = arith.mulf %91, %92 : vector<16x384xf32>
    %94 = arith.truncf %93 : vector<16x384xf32> to vector<16x384xbf16>
    %c128_75 = arith.constant 128 : index
    %c0_76 = arith.constant 0 : index
    %95 = vector.load %arg13[%c128_75, %c0_76] : memref<144x384xbf16, #tpu.memory_space<vmem>>, vector<16x384xbf16>
    tpu.vector_store %arg13[%c128_75, %c0_76], %94 {strides = array<i32>} : memref<144x384xbf16, #tpu.memory_space<vmem>>, vector<16x384xbf16>,
    %c0_77 = arith.constant 0 : index
    %c0_78 = arith.constant 0 : index
    %c0_79 = arith.constant 0 : index
    %96 = vector.load %arg5[%c0_77, %c0_78, %c0_79] : memref<2x16x144xbf16, #tpu.memory_space<vmem>>, vector<1x16x144xbf16>
    %97 = vector.shape_cast %96 : vector<1x16x144xbf16> to vector<16x144xbf16>
    %c0_80 = arith.constant 0 : index
    %c0_81 = arith.constant 0 : index
    %c0_82 = arith.constant 0 : index
    %98 = vector.load %arg6[%c0_80, %c0_81, %c0_82] : memref<2x16x1xf32, #tpu.memory_space<vmem>>, vector<1x16x1xf32>
    %99 = vector.shape_cast %98 : vector<1x16x1xf32> to vector<16x1xf32>
    %c0_83 = arith.constant 0 : index
    %c0_84 = arith.constant 0 : index
    %100 = vector.load %arg13[%c0_83, %c0_84] : memref<144x384xbf16, #tpu.memory_space<vmem>>, vector<144x384xbf16>
    %cst_85 = arith.constant dense<0.000000e+00> : vector<16x384xf32>
    %101 = tpu.matmul %97, %100, %cst_85 {dimension_numbers = #tpu.dot_dimension_numbers<[1], [0], [0], [1], [0, 0, 1, 1], [], []>} : vector<16x144xbf16>, vector<144x384xbf16>, vector<16x384xf32> -> vector<16x384xf32>
    %102 = vector.broadcast %99 : vector<16x1xf32> to vector<16x384xf32>
    %103 = arith.addf %101, %102 : vector<16x384xf32>
    %cst_86 = arith.constant 0.000000e+00 : f32
    %104 = vector.broadcast %cst_86 : f32 to vector<16x384xf32>
    %105 = arith.maximumf %103, %104 : vector<16x384xf32>
    %c17_i32_87 = arith.constant 17 : i32
    %106 = tpu.dynamic_rotate %105 by %c17_i32_87 dim 1 : vector<16x384xf32>, i32 -> vector<16x384xf32>
    %c0_88 = arith.constant 0 : index
    %c0_89 = arith.constant 0 : index
    %107 = vector.load %arg2[%c0_88, %c0_89] : memref<144x384xf32, #tpu.memory_space<vmem>>, vector<16x384xf32>
    %108 = arith.mulf %106, %107 : vector<16x384xf32>
    %109 = arith.truncf %108 : vector<16x384xf32> to vector<16x384xbf16>
    %c0_90 = arith.constant 0 : index
    %c0_91 = arith.constant 0 : index
    %110 = vector.load %arg13[%c0_90, %c0_91] : memref<144x384xbf16, #tpu.memory_space<vmem>>, vector<16x384xbf16>
    tpu.vector_store %arg13[%c0_90, %c0_91], %109 {strides = array<i32>} : memref<144x384xbf16, #tpu.memory_space<vmem>>, vector<16x384xbf16>,
    %c16_i32_92 = arith.constant 16 : i32
    %111 = tpu.dynamic_rotate %105 by %c16_i32_92 dim 1 : vector<16x384xf32>, i32 -> vector<16x384xf32>
    %c16_93 = arith.constant 16 : index
    %c0_94 = arith.constant 0 : index
    %112 = vector.load %arg2[%c16_93, %c0_94] : memref<144x384xf32, #tpu.memory_space<vmem>>, vector<16x384xf32>
    %113 = arith.mulf %111, %112 : vector<16x384xf32>
    %114 = arith.truncf %113 : vector<16x384xf32> to vector<16x384xbf16>
    %c16_95 = arith.constant 16 : index
    %c0_96 = arith.constant 0 : index
    %115 = vector.load %arg13[%c16_95, %c0_96] : memref<144x384xbf16, #tpu.memory_space<vmem>>, vector<16x384xbf16>
    tpu.vector_store %arg13[%c16_95, %c0_96], %114 {strides = array<i32>} : memref<144x384xbf16, #tpu.memory_space<vmem>>, vector<16x384xbf16>,
    %c15_i32_97 = arith.constant 15 : i32
    %116 = tpu.dynamic_rotate %105 by %c15_i32_97 dim 1 : vector<16x384xf32>, i32 -> vector<16x384xf32>
    %c32_98 = arith.constant 32 : index
    %c0_99 = arith.constant 0 : index
    %117 = vector.load %arg2[%c32_98, %c0_99] : memref<144x384xf32, #tpu.memory_space<vmem>>, vector<16x384xf32>
    %118 = arith.mulf %116, %117 : vector<16x384xf32>
    %119 = arith.truncf %118 : vector<16x384xf32> to vector<16x384xbf16>
    %c32_100 = arith.constant 32 : index
    %c0_101 = arith.constant 0 : index
    %120 = vector.load %arg13[%c32_100, %c0_101] : memref<144x384xbf16, #tpu.memory_space<vmem>>, vector<16x384xbf16>
    tpu.vector_store %arg13[%c32_100, %c0_101], %119 {strides = array<i32>} : memref<144x384xbf16, #tpu.memory_space<vmem>>, vector<16x384xbf16>,
    %c1_i32_102 = arith.constant 1 : i32
    %121 = tpu.dynamic_rotate %105 by %c1_i32_102 dim 1 : vector<16x384xf32>, i32 -> vector<16x384xf32>
    %c48_103 = arith.constant 48 : index
    %c0_104 = arith.constant 0 : index
    %122 = vector.load %arg2[%c48_103, %c0_104] : memref<144x384xf32, #tpu.memory_space<vmem>>, vector<16x384xf32>
    %123 = arith.mulf %121, %122 : vector<16x384xf32>
    %124 = arith.truncf %123 : vector<16x384xf32> to vector<16x384xbf16>
    %c48_105 = arith.constant 48 : index
    %c0_106 = arith.constant 0 : index
    %125 = vector.load %arg13[%c48_105, %c0_106] : memref<144x384xbf16, #tpu.memory_space<vmem>>, vector<16x384xbf16>
    tpu.vector_store %arg13[%c48_105, %c0_106], %124 {strides = array<i32>} : memref<144x384xbf16, #tpu.memory_space<vmem>>, vector<16x384xbf16>,
    %126 = arith.truncf %105 : vector<16x384xf32> to vector<16x384xbf16>
    %c64_107 = arith.constant 64 : index
    %c0_108 = arith.constant 0 : index
    %127 = vector.load %arg13[%c64_107, %c0_108] : memref<144x384xbf16, #tpu.memory_space<vmem>>, vector<16x384xbf16>
    tpu.vector_store %arg13[%c64_107, %c0_108], %126 {strides = array<i32>} : memref<144x384xbf16, #tpu.memory_space<vmem>>, vector<16x384xbf16>,
    %c383_i32_109 = arith.constant 383 : i32
    %128 = tpu.dynamic_rotate %105 by %c383_i32_109 dim 1 : vector<16x384xf32>, i32 -> vector<16x384xf32>
    %c80_110 = arith.constant 80 : index
    %c0_111 = arith.constant 0 : index
    %129 = vector.load %arg2[%c80_110, %c0_111] : memref<144x384xf32, #tpu.memory_space<vmem>>, vector<16x384xf32>
    %130 = arith.mulf %128, %129 : vector<16x384xf32>
    %131 = arith.truncf %130 : vector<16x384xf32> to vector<16x384xbf16>
    %c80_112 = arith.constant 80 : index
    %c0_113 = arith.constant 0 : index
    %132 = vector.load %arg13[%c80_112, %c0_113] : memref<144x384xbf16, #tpu.memory_space<vmem>>, vector<16x384xbf16>
    tpu.vector_store %arg13[%c80_112, %c0_113], %131 {strides = array<i32>} : memref<144x384xbf16, #tpu.memory_space<vmem>>, vector<16x384xbf16>,
    %c369_i32_114 = arith.constant 369 : i32
    %133 = tpu.dynamic_rotate %105 by %c369_i32_114 dim 1 : vector<16x384xf32>, i32 -> vector<16x384xf32>
    %c96_115 = arith.constant 96 : index
    %c0_116 = arith.constant 0 : index
    %134 = vector.load %arg2[%c96_115, %c0_116] : memref<144x384xf32, #tpu.memory_space<vmem>>, vector<16x384xf32>
    %135 = arith.mulf %133, %134 : vector<16x384xf32>
    %136 = arith.truncf %135 : vector<16x384xf32> to vector<16x384xbf16>
    %c96_117 = arith.constant 96 : index
    %c0_118 = arith.constant 0 : index
    %137 = vector.load %arg13[%c96_117, %c0_118] : memref<144x384xbf16, #tpu.memory_space<vmem>>, vector<16x384xbf16>
    tpu.vector_store %arg13[%c96_117, %c0_118], %136 {strides = array<i32>} : memref<144x384xbf16, #tpu.memory_space<vmem>>, vector<16x384xbf16>,
    %c368_i32_119 = arith.constant 368 : i32
    %138 = tpu.dynamic_rotate %105 by %c368_i32_119 dim 1 : vector<16x384xf32>, i32 -> vector<16x384xf32>
    %c112_120 = arith.constant 112 : index
    %c0_121 = arith.constant 0 : index
    %139 = vector.load %arg2[%c112_120, %c0_121] : memref<144x384xf32, #tpu.memory_space<vmem>>, vector<16x384xf32>
    %140 = arith.mulf %138, %139 : vector<16x384xf32>
    %141 = arith.truncf %140 : vector<16x384xf32> to vector<16x384xbf16>
    %c112_122 = arith.constant 112 : index
    %c0_123 = arith.constant 0 : index
    %142 = vector.load %arg13[%c112_122, %c0_123] : memref<144x384xbf16, #tpu.memory_space<vmem>>, vector<16x384xbf16>
    tpu.vector_store %arg13[%c112_122, %c0_123], %141 {strides = array<i32>} : memref<144x384xbf16, #tpu.memory_space<vmem>>, vector<16x384xbf16>,
    %c367_i32_124 = arith.constant 367 : i32
    %143 = tpu.dynamic_rotate %105 by %c367_i32_124 dim 1 : vector<16x384xf32>, i32 -> vector<16x384xf32>
    %c128_125 = arith.constant 128 : index
    %c0_126 = arith.constant 0 : index
    %144 = vector.load %arg2[%c128_125, %c0_126] : memref<144x384xf32, #tpu.memory_space<vmem>>, vector<16x384xf32>
    %145 = arith.mulf %143, %144 : vector<16x384xf32>
    %146 = arith.truncf %145 : vector<16x384xf32> to vector<16x384xbf16>
    %c128_127 = arith.constant 128 : index
    %c0_128 = arith.constant 0 : index
    %147 = vector.load %arg13[%c128_127, %c0_128] : memref<144x384xbf16, #tpu.memory_space<vmem>>, vector<16x384xbf16>
    tpu.vector_store %arg13[%c128_127, %c0_128], %146 {strides = array<i32>} : memref<144x384xbf16, #tpu.memory_space<vmem>>, vector<16x384xbf16>,
    %c0_129 = arith.constant 0 : index
    %c0_130 = arith.constant 0 : index
    %148 = vector.load %arg7[%c0_129, %c0_130] : memref<40x144xbf16, #tpu.memory_space<vmem>>, vector<40x144xbf16>
    %c0_131 = arith.constant 0 : index
    %c0_132 = arith.constant 0 : index
    %149 = vector.load %arg8[%c0_131, %c0_132] : memref<40x1xf32, #tpu.memory_space<vmem>>, vector<40x1xf32>
    %c0_133 = arith.constant 0 : index
    %c0_134 = arith.constant 0 : index
    %150 = vector.load %arg13[%c0_133, %c0_134] : memref<144x384xbf16, #tpu.memory_space<vmem>>, vector<144x384xbf16>
    %cst_135 = arith.constant dense<0.000000e+00> : vector<40x384xf32>
    %151 = tpu.matmul %148, %150, %cst_135 {dimension_numbers = #tpu.dot_dimension_numbers<[1], [0], [0], [1], [0, 0, 1, 1], [], []>} : vector<40x144xbf16>, vector<144x384xbf16>, vector<40x384xf32> -> vector<40x384xf32>
    %152 = vector.broadcast %149 : vector<40x1xf32> to vector<40x384xf32>
    %153 = arith.addf %151, %152 : vector<40x384xf32>
    %c0_136 = arith.constant 0 : index
    %c0_137 = arith.constant 0 : index
    %c0_138 = arith.constant 0 : index
    %154 = vector.load %arg11[%c0_136, %c0_137, %c0_138] : memref<1x40x384xf32, #tpu.memory_space<vmem>>, vector<1x40x384xf32>
    %155 = vector.shape_cast %154 : vector<1x40x384xf32> to vector<40x384xf32>
    %156 = vector.shape_cast %153 : vector<40x384xf32> to vector<1x40x384xf32>
    tpu.vector_store %arg11[%c0_136, %c0_137, %c0_138], %156 {strides = array<i32>} : memref<1x40x384xf32, #tpu.memory_space<vmem>>, vector<1x40x384xf32>,
    %c17_i32_139 = arith.constant 17 : i32
    %157 = tpu.dynamic_rotate %53 by %c17_i32_139 dim 1 : vector<16x384xf32>, i32 -> vector<16x384xf32>
    %c0_140 = arith.constant 0 : index
    %c0_141 = arith.constant 0 : index
    %158 = vector.load %arg2[%c0_140, %c0_141] : memref<144x384xf32, #tpu.memory_space<vmem>>, vector<16x384xf32>
    %159 = arith.mulf %157, %158 : vector<16x384xf32>
    %160 = arith.truncf %159 : vector<16x384xf32> to vector<16x384xbf16>
    %c0_142 = arith.constant 0 : index
    %c0_143 = arith.constant 0 : index
    %161 = vector.load %arg13[%c0_142, %c0_143] : memref<144x384xbf16, #tpu.memory_space<vmem>>, vector<16x384xbf16>
    tpu.vector_store %arg13[%c0_142, %c0_143], %160 {strides = array<i32>} : memref<144x384xbf16, #tpu.memory_space<vmem>>, vector<16x384xbf16>,
    %c16_i32_144 = arith.constant 16 : i32
    %162 = tpu.dynamic_rotate %53 by %c16_i32_144 dim 1 : vector<16x384xf32>, i32 -> vector<16x384xf32>
    %c16_145 = arith.constant 16 : index
    %c0_146 = arith.constant 0 : index
    %163 = vector.load %arg2[%c16_145, %c0_146] : memref<144x384xf32, #tpu.memory_space<vmem>>, vector<16x384xf32>
    %164 = arith.mulf %162, %163 : vector<16x384xf32>
    %165 = arith.truncf %164 : vector<16x384xf32> to vector<16x384xbf16>
    %c16_147 = arith.constant 16 : index
    %c0_148 = arith.constant 0 : index
    %166 = vector.load %arg13[%c16_147, %c0_148] : memref<144x384xbf16, #tpu.memory_space<vmem>>, vector<16x384xbf16>
    tpu.vector_store %arg13[%c16_147, %c0_148], %165 {strides = array<i32>} : memref<144x384xbf16, #tpu.memory_space<vmem>>, vector<16x384xbf16>,
    %c15_i32_149 = arith.constant 15 : i32
    %167 = tpu.dynamic_rotate %53 by %c15_i32_149 dim 1 : vector<16x384xf32>, i32 -> vector<16x384xf32>
    %c32_150 = arith.constant 32 : index
    %c0_151 = arith.constant 0 : index
    %168 = vector.load %arg2[%c32_150, %c0_151] : memref<144x384xf32, #tpu.memory_space<vmem>>, vector<16x384xf32>
    %169 = arith.mulf %167, %168 : vector<16x384xf32>
    %170 = arith.truncf %169 : vector<16x384xf32> to vector<16x384xbf16>
    %c32_152 = arith.constant 32 : index
    %c0_153 = arith.constant 0 : index
    %171 = vector.load %arg13[%c32_152, %c0_153] : memref<144x384xbf16, #tpu.memory_space<vmem>>, vector<16x384xbf16>
    tpu.vector_store %arg13[%c32_152, %c0_153], %170 {strides = array<i32>} : memref<144x384xbf16, #tpu.memory_space<vmem>>, vector<16x384xbf16>,
    %c1_i32_154 = arith.constant 1 : i32
    %172 = tpu.dynamic_rotate %53 by %c1_i32_154 dim 1 : vector<16x384xf32>, i32 -> vector<16x384xf32>
    %c48_155 = arith.constant 48 : index
    %c0_156 = arith.constant 0 : index
    %173 = vector.load %arg2[%c48_155, %c0_156] : memref<144x384xf32, #tpu.memory_space<vmem>>, vector<16x384xf32>
    %174 = arith.mulf %172, %173 : vector<16x384xf32>
    %175 = arith.truncf %174 : vector<16x384xf32> to vector<16x384xbf16>
    %c48_157 = arith.constant 48 : index
    %c0_158 = arith.constant 0 : index
    %176 = vector.load %arg13[%c48_157, %c0_158] : memref<144x384xbf16, #tpu.memory_space<vmem>>, vector<16x384xbf16>
    tpu.vector_store %arg13[%c48_157, %c0_158], %175 {strides = array<i32>} : memref<144x384xbf16, #tpu.memory_space<vmem>>, vector<16x384xbf16>,
    %177 = arith.truncf %53 : vector<16x384xf32> to vector<16x384xbf16>
    %c64_159 = arith.constant 64 : index
    %c0_160 = arith.constant 0 : index
    %178 = vector.load %arg13[%c64_159, %c0_160] : memref<144x384xbf16, #tpu.memory_space<vmem>>, vector<16x384xbf16>
    tpu.vector_store %arg13[%c64_159, %c0_160], %177 {strides = array<i32>} : memref<144x384xbf16, #tpu.memory_space<vmem>>, vector<16x384xbf16>,
    %c383_i32_161 = arith.constant 383 : i32
    %179 = tpu.dynamic_rotate %53 by %c383_i32_161 dim 1 : vector<16x384xf32>, i32 -> vector<16x384xf32>
    %c80_162 = arith.constant 80 : index
    %c0_163 = arith.constant 0 : index
    %180 = vector.load %arg2[%c80_162, %c0_163] : memref<144x384xf32, #tpu.memory_space<vmem>>, vector<16x384xf32>
    %181 = arith.mulf %179, %180 : vector<16x384xf32>
    %182 = arith.truncf %181 : vector<16x384xf32> to vector<16x384xbf16>
    %c80_164 = arith.constant 80 : index
    %c0_165 = arith.constant 0 : index
    %183 = vector.load %arg13[%c80_164, %c0_165] : memref<144x384xbf16, #tpu.memory_space<vmem>>, vector<16x384xbf16>
    tpu.vector_store %arg13[%c80_164, %c0_165], %182 {strides = array<i32>} : memref<144x384xbf16, #tpu.memory_space<vmem>>, vector<16x384xbf16>,
    %c369_i32_166 = arith.constant 369 : i32
    %184 = tpu.dynamic_rotate %53 by %c369_i32_166 dim 1 : vector<16x384xf32>, i32 -> vector<16x384xf32>
    %c96_167 = arith.constant 96 : index
    %c0_168 = arith.constant 0 : index
    %185 = vector.load %arg2[%c96_167, %c0_168] : memref<144x384xf32, #tpu.memory_space<vmem>>, vector<16x384xf32>
    %186 = arith.mulf %184, %185 : vector<16x384xf32>
    %187 = arith.truncf %186 : vector<16x384xf32> to vector<16x384xbf16>
    %c96_169 = arith.constant 96 : index
    %c0_170 = arith.constant 0 : index
    %188 = vector.load %arg13[%c96_169, %c0_170] : memref<144x384xbf16, #tpu.memory_space<vmem>>, vector<16x384xbf16>
    tpu.vector_store %arg13[%c96_169, %c0_170], %187 {strides = array<i32>} : memref<144x384xbf16, #tpu.memory_space<vmem>>, vector<16x384xbf16>,
    %c368_i32_171 = arith.constant 368 : i32
    %189 = tpu.dynamic_rotate %53 by %c368_i32_171 dim 1 : vector<16x384xf32>, i32 -> vector<16x384xf32>
    %c112_172 = arith.constant 112 : index
    %c0_173 = arith.constant 0 : index
    %190 = vector.load %arg2[%c112_172, %c0_173] : memref<144x384xf32, #tpu.memory_space<vmem>>, vector<16x384xf32>
    %191 = arith.mulf %189, %190 : vector<16x384xf32>
    %192 = arith.truncf %191 : vector<16x384xf32> to vector<16x384xbf16>
    %c112_174 = arith.constant 112 : index
    %c0_175 = arith.constant 0 : index
    %193 = vector.load %arg13[%c112_174, %c0_175] : memref<144x384xbf16, #tpu.memory_space<vmem>>, vector<16x384xbf16>
    tpu.vector_store %arg13[%c112_174, %c0_175], %192 {strides = array<i32>} : memref<144x384xbf16, #tpu.memory_space<vmem>>, vector<16x384xbf16>,
    %c367_i32_176 = arith.constant 367 : i32
    %194 = tpu.dynamic_rotate %53 by %c367_i32_176 dim 1 : vector<16x384xf32>, i32 -> vector<16x384xf32>
    %c128_177 = arith.constant 128 : index
    %c0_178 = arith.constant 0 : index
    %195 = vector.load %arg2[%c128_177, %c0_178] : memref<144x384xf32, #tpu.memory_space<vmem>>, vector<16x384xf32>
    %196 = arith.mulf %194, %195 : vector<16x384xf32>
    %197 = arith.truncf %196 : vector<16x384xf32> to vector<16x384xbf16>
    %c128_179 = arith.constant 128 : index
    %c0_180 = arith.constant 0 : index
    %198 = vector.load %arg13[%c128_179, %c0_180] : memref<144x384xbf16, #tpu.memory_space<vmem>>, vector<16x384xbf16>
    tpu.vector_store %arg13[%c128_179, %c0_180], %197 {strides = array<i32>} : memref<144x384xbf16, #tpu.memory_space<vmem>>, vector<16x384xbf16>,
    %c1 = arith.constant 1 : index
    %c0_181 = arith.constant 0 : index
    %c0_182 = arith.constant 0 : index
    %199 = vector.load %arg5[%c1, %c0_181, %c0_182] : memref<2x16x144xbf16, #tpu.memory_space<vmem>>, vector<1x16x144xbf16>
    %200 = vector.shape_cast %199 : vector<1x16x144xbf16> to vector<16x144xbf16>
    %c1_183 = arith.constant 1 : index
    %c0_184 = arith.constant 0 : index
    %c0_185 = arith.constant 0 : index
    %201 = vector.load %arg6[%c1_183, %c0_184, %c0_185] : memref<2x16x1xf32, #tpu.memory_space<vmem>>, vector<1x16x1xf32>
    %202 = vector.shape_cast %201 : vector<1x16x1xf32> to vector<16x1xf32>
    %c0_186 = arith.constant 0 : index
    %c0_187 = arith.constant 0 : index
    %203 = vector.load %arg13[%c0_186, %c0_187] : memref<144x384xbf16, #tpu.memory_space<vmem>>, vector<144x384xbf16>
    %cst_188 = arith.constant dense<0.000000e+00> : vector<16x384xf32>
    %204 = tpu.matmul %200, %203, %cst_188 {dimension_numbers = #tpu.dot_dimension_numbers<[1], [0], [0], [1], [0, 0, 1, 1], [], []>} : vector<16x144xbf16>, vector<144x384xbf16>, vector<16x384xf32> -> vector<16x384xf32>
    %205 = vector.broadcast %202 : vector<16x1xf32> to vector<16x384xf32>
    %206 = arith.addf %204, %205 : vector<16x384xf32>
    %cst_189 = arith.constant 0.000000e+00 : f32
    %207 = vector.broadcast %cst_189 : f32 to vector<16x384xf32>
    %208 = arith.maximumf %206, %207 : vector<16x384xf32>
    %c17_i32_190 = arith.constant 17 : i32
    %209 = tpu.dynamic_rotate %208 by %c17_i32_190 dim 1 : vector<16x384xf32>, i32 -> vector<16x384xf32>
    %c0_191 = arith.constant 0 : index
    %c0_192 = arith.constant 0 : index
    %210 = vector.load %arg2[%c0_191, %c0_192] : memref<144x384xf32, #tpu.memory_space<vmem>>, vector<16x384xf32>
    %211 = arith.mulf %209, %210 : vector<16x384xf32>
    %212 = arith.truncf %211 : vector<16x384xf32> to vector<16x384xbf16>
    %c0_193 = arith.constant 0 : index
    %c0_194 = arith.constant 0 : index
    %213 = vector.load %arg13[%c0_193, %c0_194] : memref<144x384xbf16, #tpu.memory_space<vmem>>, vector<16x384xbf16>
    tpu.vector_store %arg13[%c0_193, %c0_194], %212 {strides = array<i32>} : memref<144x384xbf16, #tpu.memory_space<vmem>>, vector<16x384xbf16>,
    %c16_i32_195 = arith.constant 16 : i32
    %214 = tpu.dynamic_rotate %208 by %c16_i32_195 dim 1 : vector<16x384xf32>, i32 -> vector<16x384xf32>
    %c16_196 = arith.constant 16 : index
    %c0_197 = arith.constant 0 : index
    %215 = vector.load %arg2[%c16_196, %c0_197] : memref<144x384xf32, #tpu.memory_space<vmem>>, vector<16x384xf32>
    %216 = arith.mulf %214, %215 : vector<16x384xf32>
    %217 = arith.truncf %216 : vector<16x384xf32> to vector<16x384xbf16>
    %c16_198 = arith.constant 16 : index
    %c0_199 = arith.constant 0 : index
    %218 = vector.load %arg13[%c16_198, %c0_199] : memref<144x384xbf16, #tpu.memory_space<vmem>>, vector<16x384xbf16>
    tpu.vector_store %arg13[%c16_198, %c0_199], %217 {strides = array<i32>} : memref<144x384xbf16, #tpu.memory_space<vmem>>, vector<16x384xbf16>,
    %c15_i32_200 = arith.constant 15 : i32
    %219 = tpu.dynamic_rotate %208 by %c15_i32_200 dim 1 : vector<16x384xf32>, i32 -> vector<16x384xf32>
    %c32_201 = arith.constant 32 : index
    %c0_202 = arith.constant 0 : index
    %220 = vector.load %arg2[%c32_201, %c0_202] : memref<144x384xf32, #tpu.memory_space<vmem>>, vector<16x384xf32>
    %221 = arith.mulf %219, %220 : vector<16x384xf32>
    %222 = arith.truncf %221 : vector<16x384xf32> to vector<16x384xbf16>
    %c32_203 = arith.constant 32 : index
    %c0_204 = arith.constant 0 : index
    %223 = vector.load %arg13[%c32_203, %c0_204] : memref<144x384xbf16, #tpu.memory_space<vmem>>, vector<16x384xbf16>
    tpu.vector_store %arg13[%c32_203, %c0_204], %222 {strides = array<i32>} : memref<144x384xbf16, #tpu.memory_space<vmem>>, vector<16x384xbf16>,
    %c1_i32_205 = arith.constant 1 : i32
    %224 = tpu.dynamic_rotate %208 by %c1_i32_205 dim 1 : vector<16x384xf32>, i32 -> vector<16x384xf32>
    %c48_206 = arith.constant 48 : index
    %c0_207 = arith.constant 0 : index
    %225 = vector.load %arg2[%c48_206, %c0_207] : memref<144x384xf32, #tpu.memory_space<vmem>>, vector<16x384xf32>
    %226 = arith.mulf %224, %225 : vector<16x384xf32>
    %227 = arith.truncf %226 : vector<16x384xf32> to vector<16x384xbf16>
    %c48_208 = arith.constant 48 : index
    %c0_209 = arith.constant 0 : index
    %228 = vector.load %arg13[%c48_208, %c0_209] : memref<144x384xbf16, #tpu.memory_space<vmem>>, vector<16x384xbf16>
    tpu.vector_store %arg13[%c48_208, %c0_209], %227 {strides = array<i32>} : memref<144x384xbf16, #tpu.memory_space<vmem>>, vector<16x384xbf16>,
    %229 = arith.truncf %208 : vector<16x384xf32> to vector<16x384xbf16>
    %c64_210 = arith.constant 64 : index
    %c0_211 = arith.constant 0 : index
    %230 = vector.load %arg13[%c64_210, %c0_211] : memref<144x384xbf16, #tpu.memory_space<vmem>>, vector<16x384xbf16>
    tpu.vector_store %arg13[%c64_210, %c0_211], %229 {strides = array<i32>} : memref<144x384xbf16, #tpu.memory_space<vmem>>, vector<16x384xbf16>,
    %c383_i32_212 = arith.constant 383 : i32
    %231 = tpu.dynamic_rotate %208 by %c383_i32_212 dim 1 : vector<16x384xf32>, i32 -> vector<16x384xf32>
    %c80_213 = arith.constant 80 : index
    %c0_214 = arith.constant 0 : index
    %232 = vector.load %arg2[%c80_213, %c0_214] : memref<144x384xf32, #tpu.memory_space<vmem>>, vector<16x384xf32>
    %233 = arith.mulf %231, %232 : vector<16x384xf32>
    %234 = arith.truncf %233 : vector<16x384xf32> to vector<16x384xbf16>
    %c80_215 = arith.constant 80 : index
    %c0_216 = arith.constant 0 : index
    %235 = vector.load %arg13[%c80_215, %c0_216] : memref<144x384xbf16, #tpu.memory_space<vmem>>, vector<16x384xbf16>
    tpu.vector_store %arg13[%c80_215, %c0_216], %234 {strides = array<i32>} : memref<144x384xbf16, #tpu.memory_space<vmem>>, vector<16x384xbf16>,
    %c369_i32_217 = arith.constant 369 : i32
    %236 = tpu.dynamic_rotate %208 by %c369_i32_217 dim 1 : vector<16x384xf32>, i32 -> vector<16x384xf32>
    %c96_218 = arith.constant 96 : index
    %c0_219 = arith.constant 0 : index
    %237 = vector.load %arg2[%c96_218, %c0_219] : memref<144x384xf32, #tpu.memory_space<vmem>>, vector<16x384xf32>
    %238 = arith.mulf %236, %237 : vector<16x384xf32>
    %239 = arith.truncf %238 : vector<16x384xf32> to vector<16x384xbf16>
    %c96_220 = arith.constant 96 : index
    %c0_221 = arith.constant 0 : index
    %240 = vector.load %arg13[%c96_220, %c0_221] : memref<144x384xbf16, #tpu.memory_space<vmem>>, vector<16x384xbf16>
    tpu.vector_store %arg13[%c96_220, %c0_221], %239 {strides = array<i32>} : memref<144x384xbf16, #tpu.memory_space<vmem>>, vector<16x384xbf16>,
    %c368_i32_222 = arith.constant 368 : i32
    %241 = tpu.dynamic_rotate %208 by %c368_i32_222 dim 1 : vector<16x384xf32>, i32 -> vector<16x384xf32>
    %c112_223 = arith.constant 112 : index
    %c0_224 = arith.constant 0 : index
    %242 = vector.load %arg2[%c112_223, %c0_224] : memref<144x384xf32, #tpu.memory_space<vmem>>, vector<16x384xf32>
    %243 = arith.mulf %241, %242 : vector<16x384xf32>
    %244 = arith.truncf %243 : vector<16x384xf32> to vector<16x384xbf16>
    %c112_225 = arith.constant 112 : index
    %c0_226 = arith.constant 0 : index
    %245 = vector.load %arg13[%c112_225, %c0_226] : memref<144x384xbf16, #tpu.memory_space<vmem>>, vector<16x384xbf16>
    tpu.vector_store %arg13[%c112_225, %c0_226], %244 {strides = array<i32>} : memref<144x384xbf16, #tpu.memory_space<vmem>>, vector<16x384xbf16>,
    %c367_i32_227 = arith.constant 367 : i32
    %246 = tpu.dynamic_rotate %208 by %c367_i32_227 dim 1 : vector<16x384xf32>, i32 -> vector<16x384xf32>
    %c128_228 = arith.constant 128 : index
    %c0_229 = arith.constant 0 : index
    %247 = vector.load %arg2[%c128_228, %c0_229] : memref<144x384xf32, #tpu.memory_space<vmem>>, vector<16x384xf32>
    %248 = arith.mulf %246, %247 : vector<16x384xf32>
    %249 = arith.truncf %248 : vector<16x384xf32> to vector<16x384xbf16>
    %c128_230 = arith.constant 128 : index
    %c0_231 = arith.constant 0 : index
    %250 = vector.load %arg13[%c128_230, %c0_231] : memref<144x384xbf16, #tpu.memory_space<vmem>>, vector<16x384xbf16>
    tpu.vector_store %arg13[%c128_230, %c0_231], %249 {strides = array<i32>} : memref<144x384xbf16, #tpu.memory_space<vmem>>, vector<16x384xbf16>,
    %c0_232 = arith.constant 0 : index
    %c0_233 = arith.constant 0 : index
    %251 = vector.load %arg9[%c0_232, %c0_233] : memref<48x144xbf16, #tpu.memory_space<vmem>>, vector<48x144xbf16>
    %c0_234 = arith.constant 0 : index
    %c0_235 = arith.constant 0 : index
    %252 = vector.load %arg10[%c0_234, %c0_235] : memref<48x1xf32, #tpu.memory_space<vmem>>, vector<48x1xf32>
    %c0_236 = arith.constant 0 : index
    %c0_237 = arith.constant 0 : index
    %253 = vector.load %arg13[%c0_236, %c0_237] : memref<144x384xbf16, #tpu.memory_space<vmem>>, vector<144x384xbf16>
    %cst_238 = arith.constant dense<0.000000e+00> : vector<48x384xf32>
    %254 = tpu.matmul %251, %253, %cst_238 {dimension_numbers = #tpu.dot_dimension_numbers<[1], [0], [0], [1], [0, 0, 1, 1], [], []>} : vector<48x144xbf16>, vector<144x384xbf16>, vector<48x384xf32> -> vector<48x384xf32>
    %255 = vector.broadcast %252 : vector<48x1xf32> to vector<48x384xf32>
    %256 = arith.addf %254, %255 : vector<48x384xf32>
    %c0_239 = arith.constant 0 : index
    %c0_240 = arith.constant 0 : index
    %c0_241 = arith.constant 0 : index
    %257 = vector.load %arg12[%c0_239, %c0_240, %c0_241] : memref<1x48x384xf32, #tpu.memory_space<vmem>>, vector<1x48x384xf32>
    %258 = vector.shape_cast %257 : vector<1x48x384xf32> to vector<48x384xf32>
    %259 = vector.shape_cast %256 : vector<48x384xf32> to vector<1x48x384xf32>
    tpu.vector_store %arg12[%c0_239, %c0_240, %c0_241], %259 {strides = array<i32>} : memref<1x48x384xf32, #tpu.memory_space<vmem>>, vector<1x48x384xf32>,
    return
  }
  func.func @transform_0(%arg0: i32) -> (i32, i32, i32) {
    %c0_i32 = arith.constant 0 : i32
    %c0_i32_0 = arith.constant 0 : i32
    %c0_i32_1 = arith.constant 0 : i32
    return %arg0, %c0_i32, %c0_i32_0 : i32, i32, i32
  }
  func.func @transform_1(%arg0: i32) -> (i32, i32) {
    %c0_i32 = arith.constant 0 : i32
    %c0_i32_0 = arith.constant 0 : i32
    %c0_i32_1 = arith.constant 0 : i32
    return %c0_i32, %c0_i32_0 : i32, i32
  }
  func.func @transform_2(%arg0: i32) -> (i32, i32) {
    %c0_i32 = arith.constant 0 : i32
    %c0_i32_0 = arith.constant 0 : i32
    %c0_i32_1 = arith.constant 0 : i32
    return %c0_i32, %c0_i32_0 : i32, i32
  }
  func.func @transform_3(%arg0: i32) -> (i32, i32) {
    %c0_i32 = arith.constant 0 : i32
    %c0_i32_0 = arith.constant 0 : i32
    %c0_i32_1 = arith.constant 0 : i32
    return %c0_i32, %c0_i32_0 : i32, i32
  }
  func.func @transform_4(%arg0: i32) -> (i32, i32, i32) {
    %c0_i32 = arith.constant 0 : i32
    %c0_i32_0 = arith.constant 0 : i32
    %c0_i32_1 = arith.constant 0 : i32
    %c0_i32_2 = arith.constant 0 : i32
    return %c0_i32, %c0_i32_0, %c0_i32_1 : i32, i32, i32
  }
  func.func @transform_5(%arg0: i32) -> (i32, i32, i32) {
    %c0_i32 = arith.constant 0 : i32
    %c0_i32_0 = arith.constant 0 : i32
    %c0_i32_1 = arith.constant 0 : i32
    %c0_i32_2 = arith.constant 0 : i32
    return %c0_i32, %c0_i32_0, %c0_i32_1 : i32, i32, i32
  }
  func.func @transform_6(%arg0: i32) -> (i32, i32) {
    %c0_i32 = arith.constant 0 : i32
    %c0_i32_0 = arith.constant 0 : i32
    %c0_i32_1 = arith.constant 0 : i32
    return %c0_i32, %c0_i32_0 : i32, i32
  }
  func.func @transform_7(%arg0: i32) -> (i32, i32) {
    %c0_i32 = arith.constant 0 : i32
    %c0_i32_0 = arith.constant 0 : i32
    %c0_i32_1 = arith.constant 0 : i32
    return %c0_i32, %c0_i32_0 : i32, i32
  }
  func.func @transform_8(%arg0: i32) -> (i32, i32) {
    %c0_i32 = arith.constant 0 : i32
    %c0_i32_0 = arith.constant 0 : i32
    %c0_i32_1 = arith.constant 0 : i32
    return %c0_i32, %c0_i32_0 : i32, i32
  }
  func.func @transform_9(%arg0: i32) -> (i32, i32) {
    %c0_i32 = arith.constant 0 : i32
    %c0_i32_0 = arith.constant 0 : i32
    %c0_i32_1 = arith.constant 0 : i32
    return %c0_i32, %c0_i32_0 : i32, i32
  }
  func.func @transform_10(%arg0: i32) -> (i32, i32, i32) {
    %c0_i32 = arith.constant 0 : i32
    %c0_i32_0 = arith.constant 0 : i32
    %c0_i32_1 = arith.constant 0 : i32
    return %arg0, %c0_i32, %c0_i32_0 : i32, i32, i32
  }
  func.func @transform_11(%arg0: i32) -> (i32, i32, i32) {
    %c0_i32 = arith.constant 0 : i32
    %c0_i32_0 = arith.constant 0 : i32
    %c0_i32_1 = arith.constant 0 : i32
    return %arg0, %c0_i32, %c0_i32_0 : i32, i32, i32
  }
}

</mosaic_0001>

<bundles_post_ra>
// kernel: _forward_jit.1
= control target key start
LH: loop header
LB: loop body
LE: loop exit
PB: predicated region body
PF: predicated region fallthrough
CT: control target
= control target key end

     0   :  { %s3109_s17 = smov 0   ;;  %s5748_s0 = inlined_call_operand.vmem [shape: f32[2,16,384], index: 0, kind: input, shape index: {}]   ;;  %s5749_s1 = inlined_call_operand.vmem [shape: f32[144,384], index: 1, kind: input, shape index: {}]   ;;  %s5750_s2 = inlined_call_operand.vmem [shape: bf16[32,144], index: 2, kind: input, shape index: {}]   ;;  %s5751_s3 = inlined_call_operand.vmem [shape: f32[32,1], index: 3, kind: input, shape index: {}]   ;;  %s5752_s4 = inlined_call_operand.vmem [shape: bf16[2,16,144], index: 4, kind: input, shape index: {}]   ;;  %s5753_s5 = inlined_call_operand.vmem [shape: f32[2,16,1], index: 5, kind: input, shape index: {}]   ;;  %s5754_s6 = inlined_call_operand.vmem [shape: bf16[40,144], index: 6, kind: input, shape index: {}]   ;;  %s5755_s7 = inlined_call_operand.vmem [shape: f32[40,1], index: 7, kind: input, shape index: {}]   ;;  %s5756_s8 = inlined_call_operand.vmem [shape: bf16[48,144], index: 8, kind: input, shape index: {}]   ;;  %s5757_s9 = inlined_call_operand.vmem [shape: f32[48,1], index: 9, kind: input, shape index: {}]   ;;  %s5758_s10 = inlined_call_operand.vmem [shape: f32[2,40,384], index: 10, kind: output, shape index: {0}]   ;;  %s5759_s11 = inlined_call_operand.vmem [shape: f32[2,48,384], index: 11, kind: output, shape index: {1}]  }
   0x1 LB: > { %s2927_s18 = sadd.s32 4294967295, %s3038_s17   ;;  %p2931_p0 = scmp.ge.s32.totalorder %s3038_s17, 1  ;;  %s3038_s17 = sphi %s3109_s17, %s22_s17  }
   0x2   : > { %p340_p1 = scmp.lt.s32.totalorder %s3038_s17, 3 }
   0x4   : > { %p341_p2 = pnand %p2931_p0, %p340_p1 }
   0x6   : > { %344 = sbr.rel (%p341_p2) target bundleno = 1812 (0x714), region = 60 }
   0xd   : > { %p385_p3 = scmp.lt.s32.totalorder %s2927_s18, 1  ;;  %v5760_v2 = vmov 0   ;;  %s3041_s23 = smov 17   ;;  %v3005_v7 = vld [vmem:[%s5750_s2 + $0x4] ss:$8 sps:$4 sm:$0xff]   ;;  %vm784_vm0 = vcmask 130048   ;;  %v419_v10 = vlaneseq }
   0xe   : > { %844 = vmatprep.subr.bf16.mxu1 %v5760_v2  ;;  %3001 = vset.pattern.permute.xlu0 %v5760_v2  ;;  %s3042_s24 = smov 16   ;;  %s3043_s25 = smov 15   ;;  %v715_v8 = vld [vmem:[%s5751_s3] sm:$0xff]  ;;  %v716_v9 = vld [vmem:[%s5751_s3 + $0x8] sm:$0xff]  ;;  %v3272_v23 = vld [vmem:[%s5749_s1 + $0x18] sm:$0xff] }
   0xf   : > { %s6030_s18 = smov (!%p385_p3, %s2927_s18), 1  ;;  %3002 = vset.pattern.permute.xlu1 %v5760_v2  ;;  %s3044_s26 = smov 1   ;;  %2939 = vmatprep.mubr.msk.bf16.mxu0 %vm784_vm0, %v3005_v7  ;;  %v3245_v11 = vand.u32 127, %v419_v10  ;;  %v3253_v15 = vld [vmem:[%s5749_s1 + $0x8] sm:$0xff]  ;;  %v3258_v16 = vld [vmem:[%s5749_s1 + $0x20] sm:$0xff]  ;;  %v3277_v24 = vld [vmem:[%s5749_s1 + $0x10] sm:$0xff] }
  0x10   : > { %s2981_s19 = smul.u32 48, %s6030_s18  ;;  %s3045_s27 = smov 127   ;;  %2941 = vmatprep.mubr.msk.bf16.mxu1 %vm784_vm0, %v3005_v7  ;;  %v3267_v22 = vld [vmem:[%s5749_s1] sm:$0xff]  ;;  %v3282_v25 = vld [vmem:[%s5749_s1 + $0x28] sm:$0xff]  ;;  %v3300_v41 = vld [vmem:[%s5749_s1 + $0x50] sm:$0xff] }
  0x11   : > { %s3046_s28 = smov 113   ;;  %s3047_s29 = smov 112   ;;  %vm421_vm1 = vcmp.lt.s32.totalorder %v3245_v11, 17  ;;  %vm458_vm2 = vcmp.lt.s32.totalorder %v3245_v11, 16  ;;  %v3305_v42 = vld [vmem:[%s5749_s1 + $0x38] sm:$0xff]  ;;  %v3317_v49 = vld [vmem:[%s5749_s1 + $0x48] sm:$0xff] }
  0x12   : > { %s389_s22 = scalar_lea.vmem %s5748_s0, %s2981_s19  ;;  %s3048_s30 = smov 111   ;;  %v3322_v50 = vld [vmem:[%s5749_s1 + $0x58] sm:$0xff]  ;;  %v3327_v51 = vld [vmem:[%s5749_s1 + $0x30] sm:$0xff]  ;;  %v3332_v52 = vld [vmem:[%s5749_s1 + $0x40] sm:$0xff]  ;;  %vm495_vm3 = vcmp.lt.s32.totalorder %v3245_v11, 15  ;;  %vm532_vm4 = vcmp.lt.s32.totalorder %v3245_v11, 1 }
  0x13   : > { %v3123_v0 = vld [vmem:[%s389_s22 + $0x8] sm:$0xff]  ;;  %v3125_v1 = vld [vmem:[%s389_s22] sm:$0xff]  ;;  %v3135_v4 = vld [vmem:[%s389_s22 + $0x18] sm:$0xff]  ;;  %vm575_vm5 = vcmp.lt.s32.totalorder %v3245_v11, 127  ;;  %vm612_vm6 = vcmp.lt.s32.totalorder %v3245_v11, 113  ;;  %vm649_vm7 = vcmp.lt.s32.totalorder %v3245_v11, 112 }
  0x14   : > { %411 = vrot.lane.b32.xlu1 %v3123_v0, %s3041_s23  ;;  %407 = vrot.lane.b32.xlu0 %v3125_v1, %s3041_s23  ;;  %v3133_v3 = vld [vmem:[%s389_s22 + $0x20] sm:$0xff]  ;;  %v3142_v5 = vld [vmem:[%s389_s22 + $0x28] sm:$0xff]  ;;  %vm686_vm8 = vcmp.lt.s32.totalorder %v3245_v11, 111  ;;  %s2983_s21 = smul.u32 144, %s6030_s18 }
  0x15   : > { %v3144_v6 = vld [vmem:[%s389_s22 + $0x10] sm:$0xff] }
  0x16   : > { %v3028_v11 = vld [vmem:[%s5756_s8 + $0x10] ss:$8 sps:$4 sm:$0xff]  }
  0x18   : > { %413 = vrot.lane.b32.xlu1 %v3133_v3, %s3041_s23  ;;  %409 = vrot.lane.b32.xlu0 %v3135_v4, %s3041_s23 }
  0x1c   : > { %417 = vrot.lane.b32.xlu1 %v3142_v5, %s3041_s23  ;;  %415 = vrot.lane.b32.xlu0 %v3144_v6, %s3041_s23 }
  0x20   : > { %448 = vrot.lane.b32.xlu1 %v3135_v4, %s3042_s24  ;;  %446 = vrot.lane.b32.xlu0 %v3125_v1, %s3042_s24 }
  0x24   : > { %452 = vrot.lane.b32.xlu1 %v3133_v3, %s3042_s24  ;;  %450 = vrot.lane.b32.xlu0 %v3123_v0, %s3042_s24 }
  0x28   : > { %456 = vrot.lane.b32.xlu1 %v3142_v5, %s3042_s24  ;;  %454 = vrot.lane.b32.xlu0 %v3144_v6, %s3042_s24 }
  0x2c   : > { %485 = vrot.lane.b32.xlu1 %v3135_v4, %s3043_s25  ;;  %483 = vrot.lane.b32.xlu0 %v3125_v1, %s3043_s25 }
  0x30   : > { %489 = vrot.lane.b32.xlu1 %v3133_v3, %s3043_s25  ;;  %487 = vrot.lane.b32.xlu0 %v3123_v0, %s3043_s25 }
  0x34   : > { %493 = vrot.lane.b32.xlu1 %v3142_v5, %s3043_s25  ;;  %491 = vrot.lane.b32.xlu0 %v3144_v6, %s3043_s25 }
  0x38   : > { %522 = vrot.lane.b32.xlu1 %v3135_v4, %s3044_s26  ;;  %520 = vrot.lane.b32.xlu0 %v3125_v1, %s3044_s26 }
  0x3c   : > { %526 = vrot.lane.b32.xlu1 %v3133_v3, %s3044_s26  ;;  %524 = vrot.lane.b32.xlu0 %v3123_v0, %s3044_s26 }
  0x40   : > { %530 = vrot.lane.b32.xlu1 %v3142_v5, %s3044_s26  ;;  %528 = vrot.lane.b32.xlu0 %v3144_v6, %s3044_s26 }
  0x44   : > { %569 = vrot.lane.b32.xlu1 %v3133_v3, %s3045_s27  ;;  %567 = vrot.lane.b32.xlu0 %v3123_v0, %s3045_s27 }
  0x48   : > { %573 = vrot.lane.b32.xlu1 %v3142_v5, %s3045_s27  ;;  %571 = vrot.lane.b32.xlu0 %v3144_v6, %s3045_s27 }
  0x4c   : > { %565 = vrot.lane.b32.xlu1 %v3135_v4, %s3045_s27  ;;  %563 = vrot.lane.b32.xlu0 %v3125_v1, %s3045_s27 }
  0x50   : > { %606 = vrot.lane.b32.xlu1 %v3133_v3, %s3046_s28  ;;  %604 = vrot.lane.b32.xlu0 %v3123_v0, %s3046_s28 }
  0x54   : > { %610 = vrot.lane.b32.xlu1 %v3142_v5, %s3046_s28  ;;  %608 = vrot.lane.b32.xlu0 %v3144_v6, %s3046_s28 }
  0x58   : > { %602 = vrot.lane.b32.xlu1 %v3135_v4, %s3046_s28  ;;  %600 = vrot.lane.b32.xlu0 %v3125_v1, %s3046_s28 }
  0x5c   : > { %643 = vrot.lane.b32.xlu1 %v3133_v3, %s3047_s29  ;;  %641 = vrot.lane.b32.xlu0 %v3123_v0, %s3047_s29 }
  0x60   : > { %647 = vrot.lane.b32.xlu1 %v3142_v5, %s3047_s29  ;;  %645 = vrot.lane.b32.xlu0 %v3144_v6, %s3047_s29 }
  0x64   : > { %639 = vrot.lane.b32.xlu1 %v3135_v4, %s3047_s29  ;;  %637 = vrot.lane.b32.xlu0 %v3125_v1, %s3047_s29 }
  0x68   : > { %680 = vrot.lane.b32.xlu1 %v3133_v3, %s3048_s30  ;;  %678 = vrot.lane.b32.xlu0 %v3123_v0, %s3048_s30 }
  0x6c   : > { %684 = vrot.lane.b32.xlu1 %v3142_v5, %s3048_s30  ;;  %682 = vrot.lane.b32.xlu0 %v3144_v6, %s3048_s30 }
  0x70   : > { %676 = vrot.lane.b32.xlu1 %v3135_v4, %s3048_s30  ;;  %674 = vrot.lane.b32.xlu0 %v3125_v1, %s3048_s30 }
  0x74   : > { %748 = vperm.xlu0 %3001, %v715_v8   ;;  %753 = vperm.xlu1 %3002, %v716_v9  }
  0x86   : > { %v412_v12 = vpop.permute.xlu1 %411  ;;  %v408_v13 = vpop.permute.xlu0 %407 }
  0x87   : > { %v424_v14 = vsel %vm421_vm1, %v408_v13, %v412_v12 }
  0x88   : > { %v435_v20 = vmul.f32 %v3253_v15, %v424_v14 }
  0x8a   : > { %v414_v17 = vpop.permute.xlu1 %413  ;;  %v410_v18 = vpop.permute.xlu0 %409 }
  0x8b   : > { %v425_v19 = vsel %vm421_vm1, %v410_v18, %v414_v17 }
  0x8c   : > { %v438_v21 = vmul.f32 %v3258_v16, %v425_v19 }
  0x8e   : > { %v418_v26 = vpop.permute.xlu1 %417  ;;  %v416_v27 = vpop.permute.xlu0 %415  ;;  %v441_v28 = vpack.c.bf16 %v438_v21, %v435_v20 }
  0x8f   : > { %v423_v29 = vsel %vm421_vm1, %v414_v17, %v418_v26  ;;  %v427_v30 = vsel %vm421_vm1, %v418_v26, %v410_v18  ;;  %v422_v31 = vsel %vm421_vm1, %v412_v12, %v416_v27  ;;  %v426_v32 = vsel %vm421_vm1, %v416_v27, %v408_v13  ;;  %v3350_v12 = vld [vmem:[%s5749_s1 + $0x80] sm:$0xff]  ;;  %v3355_v13 = vld [vmem:[%s5749_s1 + $0x68] sm:$0xff]  ;;  %v3367_v26 = vld [vmem:[%s5749_s1 + $0x78] sm:$0xff] }
  0x90   : > { %791 = vmatprep.subr.bf16.mxu0 %v441_v28  ;;  %v434_v33 = vmul.f32 %v3267_v22, %v426_v32  ;;  %v437_v34 = vmul.f32 %v3272_v23, %v427_v30  ;;  %v436_v35 = vmul.f32 %v3277_v24, %v422_v31  ;;  %v439_v36 = vmul.f32 %v3282_v25, %v423_v29  ;;  %v3372_v27 = vld [vmem:[%s5749_s1 + $0x88] sm:$0xff]  ;;  %v3377_v28 = vld [vmem:[%s5749_s1 + $0x60] sm:$0xff]  ;;  %v3382_v29 = vld [vmem:[%s5749_s1 + $0x70] sm:$0xff] }
  0x92   : > { %v449_v37 = vpop.permute.xlu1 %448  ;;  %v447_v38 = vpop.permute.xlu0 %446  ;;  %v440_v39 = vpack.c.bf16 %v437_v34, %v434_v33  ;;  %v442_v40 = vpack.c.bf16 %v439_v36, %v436_v35 }
  0x94   : > { %792 = vmatpush1.bf16.msra.mxu0 %v440_v39  ;;  %845 = vmatpush1.bf16.msra.mxu1 %v442_v40 }
  0x95   : > { %846 = vmatprep.subr.bf16.mxu1 %v5760_v2 }
  0x96   : > { %v453_v43 = vpop.permute.xlu1 %452  ;;  %v451_v44 = vpop.permute.xlu0 %450 }
  0x97   : > { %v462_v45 = vsel %vm458_vm2, %v449_v37, %v453_v43  ;;  %v461_v46 = vsel %vm458_vm2, %v447_v38, %v451_v44 }
  0x98   : > { %v475_v47 = vmul.f32 %v3300_v41, %v462_v45  ;;  %v472_v48 = vmul.f32 %v3305_v42, %v461_v46 }
  0x9a   : > { %v457_v53 = vpop.permute.xlu1 %456  ;;  %v455_v54 = vpop.permute.xlu0 %454  ;;  %v478_v55 = vpack.c.bf16 %v475_v47, %v472_v48  ;;  %v3400_v47 = vld [vmem:[%s5749_s1 + $0xb0] sm:$0xff]  ;;  %v3405_v48 = vld [vmem:[%s5749_s1 + $0x98] sm:$0xff] }
  0x9b   : > { %v460_v56 = vsel %vm458_vm2, %v453_v43, %v457_v53  ;;  %v464_v57 = vsel %vm458_vm2, %v457_v53, %v449_v37  ;;  %v459_v58 = vsel %vm458_vm2, %v451_v44, %v455_v54  ;;  %v463_v59 = vsel %vm458_vm2, %v455_v54, %v447_v38 }
  0x9c   : > { %v474_v60 = vmul.f32 %v3317_v49, %v464_v57  ;;  %v476_v61 = vmul.f32 %v3322_v50, %v460_v56  ;;  %v471_v62 = vmul.f32 %v3327_v51, %v463_v59  ;;  %v473_v63 = vmul.f32 %v3332_v52, %v459_v58  ;;  %793 = vmatprep.subr.bf16.mxu0 %v478_v55  ;;  %v3417_v59 = vld [vmem:[%s5749_s1 + $0xa8] sm:$0xff] }
  0x9e   : > { %v486_v7 = vpop.permute.xlu1 %485  ;;  %v484_v8 = vpop.permute.xlu0 %483  ;;  %v477_v9 = vpack.c.bf16 %v474_v60, %v471_v62  ;;  %v479_v10 = vpack.c.bf16 %v476_v61, %v473_v63  ;;  %v3422_v60 = vld [vmem:[%s5749_s1 + $0xb8] sm:$0xff]  ;;  %v3427_v61 = vld [vmem:[%s5749_s1 + $0x90] sm:$0xff]  ;;  %v3432_v62 = vld [vmem:[%s5749_s1 + $0xa0] sm:$0xff] }
  0xa0   : > { %794 = vmatpush1.bf16.msra.mxu0 %v477_v9  ;;  %847 = vmatpush1.bf16.msra.mxu1 %v479_v10 }
  0xa1   : > { %848 = vmatprep.subr.bf16.mxu1 %v5760_v2 }
  0xa2   : > { %v490_v14 = vpop.permute.xlu1 %489  ;;  %v488_v17 = vpop.permute.xlu0 %487 }
  0xa3   : > { %v499_v18 = vsel %vm495_vm3, %v486_v7, %v490_v14  ;;  %v498_v19 = vsel %vm495_vm3, %v484_v8, %v488_v17 }
  0xa4   : > { %v512_v20 = vmul.f32 %v3350_v12, %v499_v18  ;;  %v509_v21 = vmul.f32 %v3355_v13, %v498_v19 }
  0xa6   : > { %v494_v30 = vpop.permute.xlu1 %493  ;;  %v492_v31 = vpop.permute.xlu0 %491  ;;  %v515_v32 = vpack.c.bf16 %v512_v20, %v509_v21 }
  0xa7   : > { %v497_v33 = vsel %vm495_vm3, %v490_v14, %v494_v30  ;;  %v501_v34 = vsel %vm495_vm3, %v494_v30, %v486_v7  ;;  %v496_v35 = vsel %vm495_vm3, %v488_v17, %v492_v31  ;;  %v500_v36 = vsel %vm495_vm3, %v492_v31, %v484_v8 }
  0xa8   : > { %v511_v37 = vmul.f32 %v3367_v26, %v501_v34  ;;  %v513_v38 = vmul.f32 %v3372_v27, %v497_v33  ;;  %v508_v39 = vmul.f32 %v3377_v28, %v500_v36  ;;  %v510_v40 = vmul.f32 %v3382_v29, %v496_v35  ;;  %795 = vmatprep.subr.bf16.mxu0 %v515_v32 }
  0xa9   : > { %v558_v30 = vpack.c.bf16 %v3133_v3, %v3123_v0  ;;  %v557_v35 = vpack.c.bf16 %v3135_v4, %v3125_v1  ;;  %v559_v36 = vpack.c.bf16 %v3142_v5, %v3144_v6  ;;  %v3461_v0 = vld [vmem:[%s5749_s1 + $0xf8] sm:$0xff] }
  0xaa   : > { %v523_v43 = vpop.permute.xlu1 %522  ;;  %v521_v44 = vpop.permute.xlu0 %520  ;;  %v514_v45 = vpack.c.bf16 %v511_v37, %v508_v39  ;;  %v516_v46 = vpack.c.bf16 %v513_v38, %v510_v40  ;;  %v3456_v37 = vld [vmem:[%s5749_s1 + $0x110] sm:$0xff]  ;;  %5841 = vst [vmem:[#allocation4_spill] sm:$0xff] %v3461_v0  ;;  %v3473_v39 = vld [vmem:[%s5749_s1 + $0x108] sm:$0xff]  ;;  %v3478_v40 = vld [vmem:[%s5749_s1 + $0x118] sm:$0xff] }
  0xab   : > { %5840 = vst [vmem:[#allocation3_spill] sm:$0xff] %v3456_v37  ;;  %5842 = vst [vmem:[#allocation5_spill] sm:$0xff] %v3473_v39 }
  0xac   : > { %796 = vmatpush1.bf16.msra.mxu0 %v514_v45  ;;  %849 = vmatpush1.bf16.msra.mxu1 %v516_v46 }
  0xad   : > { %850 = vmatprep.subr.bf16.mxu1 %v5760_v2 }
  0xae   : > { %v527_v53 = vpop.permute.xlu1 %526  ;;  %v525_v54 = vpop.permute.xlu0 %524 }
  0xaf   : > { %v536_v55 = vsel %vm532_vm4, %v523_v43, %v527_v53  ;;  %v535_v56 = vsel %vm532_vm4, %v521_v44, %v525_v54 }
  0xb0   : > { %v549_v57 = vmul.f32 %v3400_v47, %v536_v55  ;;  %v546_v58 = vmul.f32 %v3405_v48, %v535_v56 }
  0xb2   : > { %v531_v63 = vpop.permute.xlu1 %530  ;;  %v529_v7 = vpop.permute.xlu0 %528  ;;  %v552_v8 = vpack.c.bf16 %v549_v57, %v546_v58 }
  0xb3   : > { %v534_v9 = vsel %vm532_vm4, %v527_v53, %v531_v63  ;;  %v538_v10 = vsel %vm532_vm4, %v531_v63, %v523_v43  ;;  %v533_v14 = vsel %vm532_vm4, %v525_v54, %v529_v7  ;;  %v537_v17 = vsel %vm532_vm4, %v529_v7, %v521_v44  ;;  %v3483_v43 = vld [vmem:[%s5749_s1 + $0xf0] sm:$0xff]  ;;  %v3488_v44 = vld [vmem:[%s5749_s1 + $0x100] sm:$0xff] }
  0xb4   : > { %v548_v18 = vmul.f32 %v3417_v59, %v538_v10  ;;  %v550_v19 = vmul.f32 %v3422_v60, %v534_v9  ;;  %v545_v20 = vmul.f32 %v3427_v61, %v537_v17  ;;  %v547_v21 = vmul.f32 %v3432_v62, %v533_v14  ;;  %797 = vmatprep.subr.bf16.mxu0 %v552_v8 }
  0xb5   : > { %5843 = vst [vmem:[#allocation6_spill] sm:$0xff] %v3483_v43 }
  0xb6   : > { %v570_v31 = vpop.permute.xlu1 %569  ;;  %v568_v32 = vpop.permute.xlu0 %567  ;;  %v551_v33 = vpack.c.bf16 %v548_v18, %v545_v20  ;;  %v553_v34 = vpack.c.bf16 %v550_v19, %v547_v21  ;;  %v3507_v18 = vld [vmem:[%s5749_s1 + $0x140] sm:$0xff]  ;;  %v3512_v19 = vld [vmem:[%s5749_s1 + $0x128] sm:$0xff] }
  0xb7   : > { %5844 = vst [vmem:[#allocation7_spill] sm:$0xff] %v3507_v18  ;;  %5845 = vst [vmem:[#allocation8_spill] sm:$0xff] %v3512_v19 }
  0xb8   : > { %798 = vmatpush1.bf16.msra.mxu0 %v551_v33  ;;  %851 = vmatpush1.bf16.msra.mxu1 %v553_v34  ;;  %v3524_v34 = vld [vmem:[%s5749_s1 + $0x138] sm:$0xff] }
  0xb9   : > { %799 = vmatprep.subr.bf16.mxu0 %v558_v30  ;;  %852 = vmatprep.subr.bf16.mxu1 %v5760_v2  ;;  %5846 = vst [vmem:[#allocation9_spill] sm:$0xff] %v3524_v34 }
  0xba   : > { %v574_v3 = vpop.permute.xlu1 %573  ;;  %v572_v38 = vpop.permute.xlu0 %571 }
  0xbb   : > { %v577_v1 = vsel %vm575_vm5, %v570_v31, %v574_v3  ;;  %v576_v4 = vsel %vm575_vm5, %v568_v32, %v572_v38 }
  0xbc   : > { %v592_v5 = vmul.f32 %v3456_v37, %v577_v1  ;;  %v589_v6 = vmul.f32 %v3461_v0, %v576_v4  ;;  %800 = vmatpush1.bf16.msra.mxu0 %v557_v35  ;;  %853 = vmatpush1.bf16.msra.mxu1 %v559_v36  ;;  %v3529_v35 = vld [vmem:[%s5749_s1 + $0x148] sm:$0xff]  ;;  %v3534_v36 = vld [vmem:[%s5749_s1 + $0x120] sm:$0xff] }
  0xbd   : > { %854 = vmatprep.subr.bf16.mxu1 %v5760_v2  ;;  %5847 = vst [vmem:[#allocation10_spill] sm:$0xff] %v3529_v35  ;;  %5848 = vst [vmem:[#allocation11_spill] sm:$0xff] %v3534_v36 }
  0xbe   : > { %v566_v45 = vpop.permute.xlu1 %565  ;;  %v564_v46 = vpop.permute.xlu0 %563  ;;  %v595_v53 = vpack.c.bf16 %v592_v5, %v589_v6 }
  0xbf   : > { %v579_v54 = vsel %vm575_vm5, %v566_v45, %v570_v31  ;;  %v581_v55 = vsel %vm575_vm5, %v574_v3, %v566_v45  ;;  %v578_v56 = vsel %vm575_vm5, %v564_v46, %v568_v32  ;;  %v580_v57 = vsel %vm575_vm5, %v572_v38, %v564_v46  ;;  %v3539_v3 = vld [vmem:[%s5749_s1 + $0x130] sm:$0xff] }
  0xc0   : > { %v591_v58 = vmul.f32 %v3473_v39, %v579_v54  ;;  %v593_v63 = vmul.f32 %v3478_v40, %v581_v55  ;;  %v588_v7 = vmul.f32 %v3483_v43, %v578_v56  ;;  %v590_v8 = vmul.f32 %v3488_v44, %v580_v57  ;;  %801 = vmatprep.subr.bf16.mxu0 %v595_v53 }
  0xc1   : > { %5849 = vst [vmem:[#allocation12_spill] sm:$0xff] %v3539_v3 }
  0xc2   : > { %v607_v9 = vpop.permute.xlu1 %606  ;;  %v605_v10 = vpop.permute.xlu0 %604  ;;  %v594_v14 = vpack.c.bf16 %v591_v58, %v588_v7  ;;  %v596_v17 = vpack.c.bf16 %v593_v63, %v590_v8  ;;  %v3557_v8 = vld [vmem:[%s5749_s1 + $0x170] sm:$0xff] }
  0xc3   : > { %5850 = vst [vmem:[#allocation13_spill] sm:$0xff] %v3557_v8 }
  0xc4   : > { %802 = vmatpush1.bf16.msra.mxu0 %v594_v14  ;;  %855 = vmatpush1.bf16.msra.mxu1 %v596_v17 }
  0xc5   : > { %856 = vmatprep.subr.bf16.mxu1 %v5760_v2 }
  0xc6   : > { %v611_v20 = vpop.permute.xlu1 %610  ;;  %v609_v21 = vpop.permute.xlu0 %608 }
  0xc7   : > { %v614_v30 = vsel %vm612_vm6, %v607_v9, %v611_v20  ;;  %v613_v31 = vsel %vm612_vm6, %v605_v10, %v609_v21 }
  0xc8   : > { %v629_v32 = vmul.f32 %v3507_v18, %v614_v30  ;;  %v626_v33 = vmul.f32 %v3512_v19, %v613_v31  ;;  %v3574_v31 = vld [vmem:[%s5749_s1 + $0x168] sm:$0xff] }
  0xc9   : > { %5852 = vst [vmem:[#allocation15_spill] sm:$0xff] %v3574_v31 }
  0xca   : > { %v603_v38 = vpop.permute.xlu1 %602  ;;  %v601_v1 = vpop.permute.xlu0 %600  ;;  %v632_v4 = vpack.c.bf16 %v629_v32, %v626_v33  ;;  %v3579_v32 = vld [vmem:[%s5749_s1 + $0x178] sm:$0xff]  ;;  %v3584_v33 = vld [vmem:[%s5749_s1 + $0x150] sm:$0xff] }
  0xcb   : > { %v616_v5 = vsel %vm612_vm6, %v603_v38, %v607_v9  ;;  %v618_v6 = vsel %vm612_vm6, %v611_v20, %v603_v38  ;;  %v615_v45 = vsel %vm612_vm6, %v601_v1, %v605_v10  ;;  %v617_v46 = vsel %vm612_vm6, %v609_v21, %v601_v1  ;;  %v3562_v9 = vld [vmem:[%s5749_s1 + $0x158] sm:$0xff]  ;;  %5853 = vst [vmem:[#allocation16_spill] sm:$0xff] %v3579_v32  ;;  %v3589_v38 = vld [vmem:[%s5749_s1 + $0x160] sm:$0xff] }
  0xcc   : > { %v628_v53 = vmul.f32 %v3524_v34, %v616_v5  ;;  %v630_v54 = vmul.f32 %v3529_v35, %v618_v6  ;;  %v625_v55 = vmul.f32 %v3534_v36, %v615_v45  ;;  %v627_v56 = vmul.f32 %v3539_v3, %v617_v46  ;;  %803 = vmatprep.subr.bf16.mxu0 %v632_v4 }
  0xcd   : > { %5851 = vst [vmem:[#allocation14_spill] sm:$0xff] %v3562_v9  ;;  %5854 = vst [vmem:[#allocation17_spill] sm:$0xff] %v3584_v33 }
  0xce   : > { %v644_v57 = vpop.permute.xlu1 %643  ;;  %v642_v58 = vpop.permute.xlu0 %641  ;;  %v631_v63 = vpack.c.bf16 %v628_v53, %v625_v55  ;;  %v633_v7 = vpack.c.bf16 %v630_v54, %v627_v56  ;;  %5855 = vst [vmem:[#allocation18_spill] sm:$0xff] %v3589_v38 }
  0xd0   : > { %804 = vmatpush1.bf16.msra.mxu0 %v631_v63  ;;  %857 = vmatpush1.bf16.msra.mxu1 %v633_v7 }
  0xd1   : > { %858 = vmatprep.subr.bf16.mxu1 %v5760_v2 }
  0xd2   : > { %v648_v10 = vpop.permute.xlu1 %647  ;;  %v646_v14 = vpop.permute.xlu0 %645 }
  0xd3   : > { %v651_v17 = vsel %vm649_vm7, %v644_v57, %v648_v10  ;;  %v650_v20 = vsel %vm649_vm7, %v642_v58, %v646_v14 }
  0xd4   : > { %v666_v21 = vmul.f32 %v3557_v8, %v651_v17  ;;  %v663_v30 = vmul.f32 %v3562_v9, %v650_v20 }
  0xd6   : > { %v640_v1 = vpop.permute.xlu1 %639  ;;  %v638_v4 = vpop.permute.xlu0 %637  ;;  %v669_v5 = vpack.c.bf16 %v666_v21, %v663_v30 }
  0xd7   : > { %v653_v6 = vsel %vm649_vm7, %v640_v1, %v644_v57  ;;  %v655_v45 = vsel %vm649_vm7, %v648_v10, %v640_v1  ;;  %v652_v46 = vsel %vm649_vm7, %v638_v4, %v642_v58  ;;  %v654_v53 = vsel %vm649_vm7, %v646_v14, %v638_v4  ;;  %v3607_v58 = vld [vmem:[%s5749_s1 + $0x1a0] sm:$0xff]  ;;  %v3612_v10 = vld [vmem:[%s5749_s1 + $0x188] sm:$0xff] }
  0xd8   : > { %v665_v54 = vmul.f32 %v3574_v31, %v653_v6  ;;  %v667_v55 = vmul.f32 %v3579_v32, %v655_v45  ;;  %v662_v56 = vmul.f32 %v3584_v33, %v652_v46  ;;  %v664_v63 = vmul.f32 %v3589_v38, %v654_v53  ;;  %805 = vmatprep.subr.bf16.mxu0 %v669_v5  ;;  %v3624_v6 = vld [vmem:[%s5749_s1 + $0x198] sm:$0xff]  ;;  %v3629_v45 = vld [vmem:[%s5749_s1 + $0x1a8] sm:$0xff]  ;;  %v3634_v46 = vld [vmem:[%s5749_s1 + $0x180] sm:$0xff] }
  0xd9   : > { %5856 = vst [vmem:[#allocation19_spill] sm:$0xff] %v3607_v58  ;;  %5857 = vst [vmem:[#allocation20_spill] sm:$0xff] %v3612_v10  ;;  %v3639_v53 = vld [vmem:[%s5749_s1 + $0x190] sm:$0xff] }
  0xda   : > { %v681_v7 = vpop.permute.xlu1 %680  ;;  %v679_v57 = vpop.permute.xlu0 %678  ;;  %v668_v17 = vpack.c.bf16 %v665_v54, %v662_v56  ;;  %v670_v20 = vpack.c.bf16 %v667_v55, %v664_v63  ;;  %5858 = vst [vmem:[#allocation21_spill] sm:$0xff] %v3624_v6  ;;  %5859 = vst [vmem:[#allocation22_spill] sm:$0xff] %v3629_v45 }
  0xdb   : > { %5860 = vst [vmem:[#allocation23_spill] sm:$0xff] %v3634_v46  ;;  %5861 = vst [vmem:[#allocation24_spill] sm:$0xff] %v3639_v53 }
  0xdc   : > { %806 = vmatpush1.bf16.msra.mxu0 %v668_v17  ;;  %859 = vmatpush1.bf16.msra.mxu1 %v670_v20 }
  0xdd   : > { %860 = vmatprep.subr.bf16.mxu1 %v5760_v2 }
  0xde   : > { %v685_v14 = vpop.permute.xlu1 %684  ;;  %v683_v21 = vpop.permute.xlu0 %682 }
  0xdf   : > { %v688_v30 = vsel %vm686_vm8, %v681_v7, %v685_v14  ;;  %v687_v1 = vsel %vm686_vm8, %v679_v57, %v683_v21 }
  0xe0   : > { %v703_v4 = vmul.f32 %v3607_v58, %v688_v30  ;;  %v700_v5 = vmul.f32 %v3612_v10, %v687_v1 }
  0xe2   : > { %v677_v54 = vpop.permute.xlu1 %676  ;;  %v675_v55 = vpop.permute.xlu0 %674  ;;  %v706_v56 = vpack.c.bf16 %v703_v4, %v700_v5 }
  0xe3   : > { %v690_v63 = vsel %vm686_vm8, %v677_v54, %v681_v7  ;;  %v692_v17 = vsel %vm686_vm8, %v685_v14, %v677_v54  ;;  %v689_v20 = vsel %vm686_vm8, %v675_v55, %v679_v57  ;;  %v691_v30 = vsel %vm686_vm8, %v683_v21, %v675_v55  ;;  %v3003_v14 = vld [vmem:[%s5750_s2] ss:$8 sps:$4 sm:$0xff]   ;;  %v3006_v21 = vld [vmem:[%s5750_s2 + $0x14] ss:$8 sps:$4 sm:$0xff]   ;;  %v3008_v54 = vld [vmem:[%s5750_s2 + $0x10] ss:$8 sps:$4 sm:$0xff]  }
  0xe4   : > { %v702_v1 = vmul.f32 %v3624_v6, %v690_v63  ;;  %v704_v2 = vmul.f32 %v3629_v45, %v692_v17  ;;  %v699_v58 = vmul.f32 %v3634_v46, %v689_v20  ;;  %v701_v4 = vmul.f32 %v3639_v53, %v691_v30  ;;  %807 = vmatprep.subr.bf16.mxu0 %v706_v56 }
  0xe5   : > { %v5862_v57 = vmov 0  }
  0xe6   : > { %v705_v5 = vpack.c.bf16 %v702_v1, %v699_v58  ;;  %v707_v7 = vpack.c.bf16 %v704_v2, %v701_v4 }
  0xe8   : > { %808 = vmatpush1.bf16.msra.mxu0 %v705_v5  ;;  %861 = vmatpush1.bf16.msra.mxu1 %v707_v7 }
  0xe9   : > { %1295 = vmatprep.subr.bf16.mxu1 %v5862_v57 }
  0xeb   : > { %824 = vmatmul.mubr.bf16.vlgmr.msra.gmra.mrb[0].mxu0 %v3003_v14  ;;  %877 = vmatmul.mubr.bf16.vlgmr.msra.gmra.mrb[0].mxu1 %v3003_v14 }
  0xec   : > { %2940 = vmatprep.mubr.msk.bf16.mxu0 %vm784_vm0, %v3006_v21  ;;  %2942 = vmatprep.mubr.msk.bf16.mxu1 %vm784_vm0, %v3006_v21 }
  0xf3   : > { %834 = vmatmul.mubr.bf16.gmra.mrb[4].mxu0 %v3008_v54  ;;  %885 = vmatmul.mubr.bf16.gmra.mrb[4].mxu1 %v3008_v54  ;;  %v749_v2 = vpop.permute.xlu0 %748  ;;  %v754_v58 = vpop.permute.xlu1 %753 }
 0x1be   : > { %v878_v55 = vpop.f32.mrb[0].mxu1  ;;  %v825_v56 = vpop.f32.mrb[0].mxu0 }
 0x1bf   : > { %v879_v63 = vadd.f32 %v878_v55, %v749_v2  ;;  %v827_v17 = vpop.f32.mrb[1].mxu0  ;;  %v880_v20 = vpop.f32.mrb[1].mxu1  ;;  %v826_v21 = vadd.f32 %v825_v56, %v749_v2 }
 0x1c0   : > { %v829_v30 = vpop.f32.mrb[2].mxu0  ;;  %v881_v1 = vpop.f32.mrb[2].mxu1  ;;  %v828_v56 = vadd.f32 %v827_v17, %v749_v2  ;;  %v3011_v2 = vld [vmem:[%s5752_s4 + $0x4] ss:$8 sps:$4 sm:$0xff]  }
 0x1c1   : > { %v3665_v4 = vmax.f32 %v879_v63, 0.0  ;;  %v882_v5 = vadd.f32 %v881_v1, %v754_v58  ;;  %v831_v7 = vpop.f32.mrb[3].mxu0  ;;  %v883_v14 = vpop.f32.mrb[3].mxu1  ;;  %v830_v54 = vadd.f32 %v829_v30, %v754_v58  ;;  %v3695_v55 = vmax.f32 %v826_v21, 0.0  ;;  %2945 = vmatprep.mubr.msk.bf16.mxu0 %vm784_vm0, %v3011_v2  ;;  %2946 = vmatprep.mubr.msk.bf16.mxu1 %vm784_vm0, %v3011_v2  ;;  %v1202_v17 = vld [vmem:[%s5753_s5 + $0x8] sm:$0xff]  ;;  %v718_v21 = vld [vmem:[%s5751_s3 + $0x18] sm:$0xff] }
 0x1c2   : > { %v832_v20 = vadd.f32 %v831_v7, %v754_v58  ;;  %v3727_v30 = vmax.f32 %v828_v56, 0.0  ;;  %v1201_v58 = vld [vmem:[%s5753_s5] sm:$0xff] }
 0x1c3   : > { %5863 = vst [vmem:[#allocation25_spill] sm:$0xff] %v3665_v4  ;;  %v3667_v45 = vmax.f32 %v882_v5, 0.0  ;;  %913 = vrot.lane.b32.xlu1 %v3665_v4, %s3041_s23  ;;  %5865 = vst [vmem:[#allocation27_spill] sm:$0xff] %v3695_v55  ;;  %v3699_v63 = vmax.f32 %v830_v54, 0.0  ;;  %v717_v5 = vld [vmem:[%s5751_s3 + $0x10] sm:$0xff] }
 0x1c4   : > { %v3731_v1 = vmax.f32 %v832_v20, 0.0 }
 0x1c5   : > { %5864 = vst [vmem:[#allocation26_spill] sm:$0xff] %v3667_v45  ;;  %915 = vrot.lane.b32.xlu0 %v3667_v45, %s3041_s23  ;;  %5866 = vst [vmem:[#allocation28_spill] sm:$0xff] %v3699_v63 }
 0x1c6   : > { %v3787_v7 = vpop.f32.mrb[4].mxu0  ;;  %v3789_v14 = vpop.f32.mrb[4].mxu1 }
 0x1c7   : > { %949 = vrot.lane.b32.xlu1 %v3665_v4, %s3042_s24  ;;  %5867 = vst [vmem:[#allocation29_spill] sm:$0xff] %v3787_v7  ;;  %5868 = vst [vmem:[#allocation30_spill] sm:$0xff] %v3789_v14  ;;  %v3794_v54 = vpop.f32.mrb[5].mxu0  ;;  %v888_v56 = vpop.f32.mrb[5].mxu1 }
 0x1c8   : > { %5869 = vst [vmem:[#allocation31_spill] sm:$0xff] %v3794_v54  ;;  %v3796_v20 = vpop.f32.mrb[6].mxu0 }
 0x1c9   : > { %951 = vrot.lane.b32.xlu0 %v3667_v45, %s3042_s24  ;;  %5870 = vst [vmem:[#allocation32_spill] sm:$0xff] %v3796_v20  ;;  %v3798_v2 = vpop.f32.mrb[7].mxu0 }
 0x1ca   : > { %5871 = vst [vmem:[#allocation33_spill] sm:$0xff] %v3798_v2 }
 0x1cb   : > { %985 = vrot.lane.b32.xlu1 %v3665_v4, %s3043_s25 }
 0x1cd   : > { %987 = vrot.lane.b32.xlu0 %v3667_v45, %s3043_s25 }
 0x1cf   : > { %1021 = vrot.lane.b32.xlu1 %v3665_v4, %s3044_s26 }
 0x1d1   : > { %1023 = vrot.lane.b32.xlu0 %v3667_v45, %s3044_s26 }
 0x1d3   : > { %1063 = vrot.lane.b32.xlu1 %v3665_v4, %s3045_s27 }
 0x1d5   : > { %1065 = vrot.lane.b32.xlu0 %v3667_v45, %s3045_s27 }
 0x1d7   : > { %1099 = vrot.lane.b32.xlu1 %v3665_v4, %s3046_s28 }
 0x1d9   : > { %1101 = vrot.lane.b32.xlu0 %v3667_v45, %s3046_s28 }
 0x1db   : > { %1135 = vrot.lane.b32.xlu1 %v3665_v4, %s3047_s29 }
 0x1dd   : > { %1137 = vrot.lane.b32.xlu0 %v3667_v45, %s3047_s29 }
 0x1df   : > { %905 = vrot.lane.b32.xlu1 %v3695_v55, %s3041_s23 }
 0x1e1   : > { %907 = vrot.lane.b32.xlu0 %v3699_v63, %s3041_s23 }
 0x1e3   : > { %941 = vrot.lane.b32.xlu1 %v3695_v55, %s3042_s24 }
 0x1e5   : > { %943 = vrot.lane.b32.xlu0 %v3699_v63, %s3042_s24 }
 0x1e7   : > { %977 = vrot.lane.b32.xlu1 %v3695_v55, %s3043_s25 }
 0x1e9   : > { %979 = vrot.lane.b32.xlu0 %v3699_v63, %s3043_s25 }
 0x1eb   : > { %1013 = vrot.lane.b32.xlu1 %v3695_v55, %s3044_s26 }
 0x1ed   : > { %1015 = vrot.lane.b32.xlu0 %v3699_v63, %s3044_s26 }
 0x1ef   : > { %1055 = vrot.lane.b32.xlu1 %v3695_v55, %s3045_s27 }
 0x1f1   : > { %1057 = vrot.lane.b32.xlu0 %v3699_v63, %s3045_s27 }
 0x1f3   : > { %1091 = vrot.lane.b32.xlu1 %v3695_v55, %s3046_s28 }
 0x1f5   : > { %1093 = vrot.lane.b32.xlu0 %v3699_v63, %s3046_s28 }
 0x1f7   : > { %1127 = vrot.lane.b32.xlu1 %v3695_v55, %s3047_s29 }
 0x1f9   : > { %1129 = vrot.lane.b32.xlu0 %v3699_v63, %s3047_s29 }
 0x1fb   : > { %909 = vrot.lane.b32.xlu1 %v3727_v30, %s3041_s23 }
 0x1fd   : > { %911 = vrot.lane.b32.xlu0 %v3731_v1, %s3041_s23 }
 0x1ff   : > { %945 = vrot.lane.b32.xlu1 %v3727_v30, %s3042_s24 }
 0x201   : > { %947 = vrot.lane.b32.xlu0 %v3731_v1, %s3042_s24 }
 0x203   : > { %981 = vrot.lane.b32.xlu1 %v3727_v30, %s3043_s25 }
 0x205   : > { %983 = vrot.lane.b32.xlu0 %v3731_v1, %s3043_s25 }
 0x207   : > { %1017 = vrot.lane.b32.xlu1 %v3727_v30, %s3044_s26 }
 0x209   : > { %1019 = vrot.lane.b32.xlu0 %v3731_v1, %s3044_s26 }
 0x20b   : > { %1171 = vrot.lane.b32.xlu1 %v3665_v4, %s3048_s30 }
 0x20d   : > { %1173 = vrot.lane.b32.xlu0 %v3667_v45, %s3048_s30 }
 0x20f   : > { %1059 = vrot.lane.b32.xlu1 %v3727_v30, %s3045_s27 }
 0x211   : > { %1061 = vrot.lane.b32.xlu0 %v3731_v1, %s3045_s27 }
 0x213   : > { %1095 = vrot.lane.b32.xlu1 %v3727_v30, %s3046_s28 }
 0x215   : > { %1097 = vrot.lane.b32.xlu0 %v3731_v1, %s3046_s28 }
 0x217   : > { %1131 = vrot.lane.b32.xlu1 %v3727_v30, %s3047_s29 }
 0x219   : > { %1133 = vrot.lane.b32.xlu0 %v3731_v1, %s3047_s29 }
 0x21b   : > { %1167 = vrot.lane.b32.xlu1 %v3727_v30, %s3048_s30 }
 0x21d   : > { %1169 = vrot.lane.b32.xlu0 %v3731_v1, %s3048_s30 }
 0x21f   : > { %1163 = vrot.lane.b32.xlu1 %v3695_v55, %s3048_s30 }
 0x221   : > { %1165 = vrot.lane.b32.xlu0 %v3699_v63, %s3048_s30 }
 0x223   : > { %1232 = vperm.xlu1 %3002, %v1201_v58   ;;  %v3800_v58 = vpop.f32.mrb[6].mxu1 }
 0x224   : > { %5872 = vst [vmem:[#allocation34_spill] sm:$0xff] %v3800_v58 }
 0x225   : > { %1237 = vperm.xlu0 %3001, %v1202_v17   ;;  %v891_v17 = vpop.f32.mrb[7].mxu1 }
 0x227   : > { %758 = vperm.xlu1 %3002, %v717_v5  }
 0x229   : > { %763 = vperm.xlu0 %3001, %v718_v21  }
 0x235   : > { %v914_v6 = vpop.permute.xlu1 %913 }
 0x237   : > { %v916_v7 = vpop.permute.xlu0 %915 }
 0x239   : > { %v950_v53 = vpop.permute.xlu1 %949 }
 0x23b   : > { %v952_v14 = vpop.permute.xlu0 %951 }
 0x23d   : > { %v986_v46 = vpop.permute.xlu1 %985 }
 0x23f   : > { %v3802_v10 = vpop.permute.xlu0 %987 }
 0x241   : > { %v3804_v8 = vpop.permute.xlu1 %1021 }
 0x243   : > { %v3806_v54 = vpop.permute.xlu0 %1023 }
 0x245   : > { %v3808_v5 = vpop.permute.xlu1 %1063 }
 0x247   : > { %v3810_v56 = vpop.permute.xlu0 %1065 }
 0x249   : > { %v3812_v2 = vpop.permute.xlu1 %1099 }
 0x24a   : > { %5873 = vst [vmem:[#allocation35_spill] sm:$0xff] %v3812_v2 }
 0x24b   : > { %v3814_v20 = vpop.permute.xlu0 %1101 }
 0x24c   : > { %5874 = vst [vmem:[#allocation36_spill] sm:$0xff] %v3814_v20 }
 0x24d   : > { %v3816_v21 = vpop.permute.xlu1 %1135 }
 0x24e   : > { %5875 = vst [vmem:[#allocation37_spill] sm:$0xff] %v3816_v21 }
 0x24f   : > { %v3818_v17 = vpop.permute.xlu0 %1137 }
 0x250   : > { %5876 = vst [vmem:[#allocation38_spill] sm:$0xff] %v3818_v17 }
 0x251   : > { %v906_v58 = vpop.permute.xlu1 %905 }
 0x252   : > { %v921_v39 = vsel %vm421_vm1, %v914_v6, %v906_v58 }
 0x253   : > { %v908_v31 = vpop.permute.xlu0 %907  ;;  %v929_v55 = vmul.f32 %v921_v39, %v3267_v22 }
 0x254   : > { %v922_v17 = vsel %vm421_vm1, %v916_v7, %v908_v31 }
 0x255   : > { %v942_v9 = vpop.permute.xlu1 %941  ;;  %v932_v43 = vmul.f32 %v922_v17, %v3272_v23 }
 0x257   : > { %v944_v33 = vpop.permute.xlu0 %943  ;;  %v935_v2 = vpack.c.bf16 %v932_v43, %v929_v55 }
 0x259   : > { %v978_v38 = vpop.permute.xlu1 %977 }
 0x25b   : > { %v980_v32 = vpop.permute.xlu0 %979 }
 0x25d   : > { %v3820_v18 = vpop.permute.xlu1 %1013 }
 0x25f   : > { %v3822_v34 = vpop.permute.xlu0 %1015 }
 0x261   : > { %v3824_v19 = vpop.permute.xlu1 %1055 }
 0x263   : > { %v3826_v36 = vpop.permute.xlu0 %1057 }
 0x265   : > { %v3828_v35 = vpop.permute.xlu1 %1091 }
 0x267   : > { %v3830_v3 = vpop.permute.xlu0 %1093 }
 0x268   : > { %5877 = vst [vmem:[#allocation39_spill] sm:$0xff] %v3830_v3 }
 0x269   : > { %v3832_v21 = vpop.permute.xlu1 %1127 }
 0x26a   : > { %5878 = vst [vmem:[#allocation40_spill] sm:$0xff] %v3832_v21  ;;  %v958_v21 = vsel %vm458_vm2, %v952_v14, %v944_v33 }
 0x26b   : > { %v3836_v37 = vpop.permute.xlu0 %1129  ;;  %v968_v22 = vmul.f32 %v958_v21, %v3317_v49 }
 0x26c   : > { %5879 = vst [vmem:[#allocation41_spill] sm:$0xff] %v3836_v37  ;;  %v957_v37 = vsel %vm458_vm2, %v950_v53, %v942_v9 }
 0x26d   : > { %v910_v0 = vpop.permute.xlu1 %909 }
 0x26e   : > { %v917_v20 = vsel %vm421_vm1, %v910_v0, %v914_v6  ;;  %v919_v63 = vsel %vm421_vm1, %v906_v58, %v910_v0 }
 0x26f   : > { %v912_v3 = vpop.permute.xlu0 %911  ;;  %v930_v6 = vmul.f32 %v919_v63, %v3253_v15  ;;  %v931_v17 = vmul.f32 %v917_v20, %v3277_v24  ;;  %v993_v15 = vsel %vm495_vm3, %v986_v46, %v978_v38 }
 0x270   : > { %v918_v45 = vsel %vm421_vm1, %v912_v3, %v916_v7  ;;  %v920_v23 = vsel %vm421_vm1, %v908_v31, %v912_v3  ;;  %v965_v3 = vmul.f32 %v957_v37, %v3327_v51 }
 0x271   : > { %v933_v0 = vmul.f32 %v920_v23, %v3258_v16  ;;  %v934_v58 = vmul.f32 %v918_v45, %v3282_v25  ;;  %v946_v4 = vpop.permute.xlu1 %945  ;;  %v994_v25 = vsel %vm495_vm3, %v3802_v10, %v980_v32 }
 0x272   : > { %v953_v39 = vsel %vm458_vm2, %v946_v4, %v950_v53  ;;  %v955_v7 = vsel %vm458_vm2, %v942_v9, %v946_v4  ;;  %v971_v4 = vpack.c.bf16 %v968_v22, %v965_v3 }
 0x273   : > { %v937_v24 = vpack.c.bf16 %v934_v58, %v931_v17  ;;  %v948_v31 = vpop.permute.xlu0 %947  ;;  %v936_v16 = vpack.c.bf16 %v933_v0, %v930_v6  ;;  %v966_v49 = vmul.f32 %v955_v7, %v3305_v42  ;;  %v967_v51 = vmul.f32 %v953_v39, %v3332_v52 }
 0x274   : > { %v954_v43 = vsel %vm458_vm2, %v948_v31, %v952_v14  ;;  %v956_v9 = vsel %vm458_vm2, %v944_v33, %v948_v31  ;;  %v1001_v33 = vmul.f32 %v993_v15, %v3377_v28  ;;  %v1004_v52 = vmul.f32 %v994_v25, %v3367_v26 }
 0x275   : > { %v969_v37 = vmul.f32 %v956_v9, %v3300_v41  ;;  %v970_v45 = vmul.f32 %v954_v43, %v3322_v50  ;;  %1252 = vmatprep.subr.bf16.mxu0 %v936_v16  ;;  %1296 = vmatpush1.bf16.msra.mxu1 %v937_v24  ;;  %v982_v53 = vpop.permute.xlu1 %981  ;;  %v1030_v14 = vsel %vm532_vm4, %v3806_v54, %v3822_v34  ;;  %v5884_v43 = vld [vmem:[#allocation28_spill] sm:$0xff] }
 0x276   : > { %v989_v55 = vsel %vm495_vm3, %v982_v53, %v986_v46  ;;  %v991_v42 = vsel %vm495_vm3, %v978_v38, %v982_v53  ;;  %1253 = vmatpush1.bf16.msra.mxu0 %v935_v2  ;;  %1297 = vmatprep.subr.bf16.mxu1 %v5862_v57  ;;  %v1072_v17 = vsel %vm575_vm5, %v3810_v56, %v3826_v36 }
 0x277   : > { %v973_v41 = vpack.c.bf16 %v970_v45, %v967_v51  ;;  %v984_v63 = vpop.permute.xlu0 %983  ;;  %v972_v50 = vpack.c.bf16 %v969_v37, %v966_v49  ;;  %v1002_v46 = vmul.f32 %v991_v42, %v3355_v13  ;;  %v1003_v28 = vmul.f32 %v989_v55, %v3382_v29  ;;  %v5883_v49 = vld [vmem:[#allocation27_spill] sm:$0xff]  ;;  %v5886_v37 = vld [vmem:[#allocation36_spill] sm:$0xff] }
 0x278   : > { %v990_v38 = vsel %vm495_vm3, %v984_v63, %v3802_v10  ;;  %v992_v20 = vsel %vm495_vm3, %v980_v32, %v984_v63  ;;  %v1029_v13 = vsel %vm532_vm4, %v3804_v8, %v3820_v18  ;;  %v5885_v51 = vld [vmem:[#allocation39_spill] sm:$0xff]  ;;  %v5888_v42 = vld [vmem:[#allocation4_spill] sm:$0xff] }
 0x279   : > { %v1005_v26 = vmul.f32 %v992_v20, %v3350_v12  ;;  %v1006_v2 = vmul.f32 %v990_v38, %v3372_v27  ;;  %1254 = vmatprep.subr.bf16.mxu0 %v972_v50  ;;  %1298 = vmatpush1.bf16.msra.mxu1 %v973_v41  ;;  %v1018_v21 = vpop.permute.xlu1 %1017  ;;  %v1007_v12 = vpack.c.bf16 %v1004_v52, %v1001_v33  ;;  %v5889_v52 = vld [vmem:[#allocation5_spill] sm:$0xff]  ;;  %v5890_v63 = vld [vmem:[#allocation3_spill] sm:$0xff]  ;;  %v5892_v20 = vld [vmem:[#allocation10_spill] sm:$0xff] }
 0x27a   : > { %v1025_v10 = vsel %vm532_vm4, %v1018_v21, %v3804_v8  ;;  %v1027_v29 = vsel %vm532_vm4, %v3820_v18, %v1018_v21  ;;  %1255 = vmatpush1.bf16.msra.mxu0 %v971_v4  ;;  %1299 = vmatprep.subr.bf16.mxu1 %v5862_v57  ;;  %v1040_v27 = vmul.f32 %v1030_v14, %v3417_v59  ;;  %v5887_v4 = vld [vmem:[#allocation6_spill] sm:$0xff] }
 0x27b   : > { %v1009_v32 = vpack.c.bf16 %v1006_v2, %v1003_v28  ;;  %v1020_v23 = vpop.permute.xlu0 %1019  ;;  %v1008_v6 = vpack.c.bf16 %v1005_v26, %v1002_v46  ;;  %v1038_v8 = vmul.f32 %v1027_v29, %v3405_v48  ;;  %v1039_v59 = vmul.f32 %v1025_v10, %v3432_v62  ;;  %v5891_v46 = vld [vmem:[#allocation12_spill] sm:$0xff]  ;;  %v5894_v2 = vld [vmem:[#allocation37_spill] sm:$0xff] }
 0x27c   : > { %v1026_v18 = vsel %vm532_vm4, %v1020_v23, %v3806_v54  ;;  %v1028_v0 = vsel %vm532_vm4, %v3822_v34, %v1020_v23  ;;  %v1037_v48 = vmul.f32 %v1029_v13, %v3427_v61  ;;  %v1071_v34 = vsel %vm575_vm5, %v3808_v5, %v3824_v19  ;;  %v5893_v26 = vld [vmem:[#allocation40_spill] sm:$0xff]  ;;  %v5897_v23 = vld [vmem:[#allocation11_spill] sm:$0xff] }
 0x27d   : > { %v1041_v58 = vmul.f32 %v1028_v0, %v3400_v47  ;;  %v1042_v22 = vmul.f32 %v1026_v18, %v3422_v60  ;;  %1256 = vmatprep.subr.bf16.mxu0 %v1008_v6  ;;  %1300 = vmatpush1.bf16.msra.mxu1 %v1009_v32  ;;  %v3923_v39 = vpop.permute.xlu1 %1171  ;;  %v1084_v60 = vmul.f32 %v1072_v17, %v3478_v40  ;;  %v5880_v40 = vld [vmem:[#allocation35_spill] sm:$0xff]  ;;  %v5899_v0 = vld [vmem:[#allocation9_spill] sm:$0xff] }
 0x27e   : > { %1257 = vmatpush1.bf16.msra.mxu0 %v1007_v12  ;;  %1301 = vmatprep.subr.bf16.mxu1 %v5862_v57  ;;  %v1043_v7 = vpack.c.bf16 %v1040_v27, %v1037_v48  ;;  %v1050_v61 = vpack.c.bf16 %v3731_v1, %v3727_v30  ;;  %v1081_v15 = vmul.f32 %v1071_v34, %v3488_v44  ;;  %v5881_v30 = vld [vmem:[#allocation25_spill] sm:$0xff]  ;;  %v5882_v44 = vld [vmem:[#allocation26_spill] sm:$0xff] }
 0x27f   : > { %v1045_v54 = vpack.c.bf16 %v1042_v22, %v1039_v59  ;;  %v3931_v62 = vpop.permute.xlu0 %1173  ;;  %v1044_v47 = vpack.c.bf16 %v1041_v58, %v1038_v8  ;;  %v1107_v16 = vsel %vm612_vm6, %v5880_v40, %v3828_v35  ;;  %v1051_v1 = vpack.c.bf16 %v5882_v44, %v5881_v30  ;;  %v5895_v12 = vld [vmem:[#allocation41_spill] sm:$0xff]  ;;  %v5896_v27 = vld [vmem:[#allocation38_spill] sm:$0xff]  ;;  %v5898_v8 = vld [vmem:[#allocation8_spill] sm:$0xff] }
 0x280   : > { %v1087_v9 = vpack.c.bf16 %v1084_v60, %v1081_v15  ;;  %v1117_v38 = vmul.f32 %v1107_v16, %v5891_v46  ;;  %v1143_v21 = vsel %vm649_vm7, %v5894_v2, %v5893_v26  ;;  %v1144_v32 = vsel %vm649_vm7, %v5896_v27, %v5895_v12  ;;  %v5900_v58 = vld [vmem:[#allocation7_spill] sm:$0xff]  ;;  %v5904_v44 = vld [vmem:[#allocation14_spill] sm:$0xff] }
 0x281   : > { %1258 = vmatprep.subr.bf16.mxu0 %v1044_v47  ;;  %1302 = vmatpush1.bf16.msra.mxu1 %v1045_v54  ;;  %v1060_v3 = vpop.permute.xlu1 %1059 }
 0x282   : > { %v1067_v24 = vsel %vm575_vm5, %v1060_v3, %v3808_v5  ;;  %v1069_v31 = vsel %vm575_vm5, %v3824_v19, %v1060_v3  ;;  %1259 = vmatpush1.bf16.msra.mxu0 %v1043_v7  ;;  %1303 = vmatprep.subr.bf16.mxu1 %v5862_v57  ;;  %v1049_v5 = vpack.c.bf16 %v5884_v43, %v5883_v49  ;;  %v5901_v7 = vld [vmem:[#allocation16_spill] sm:$0xff]  ;;  %v5905_v49 = vld [vmem:[#allocation15_spill] sm:$0xff] }
 0x283   : > { %v1062_v25 = vpop.permute.xlu0 %1061  ;;  %1260 = vmatprep.subr.bf16.mxu0 %v1050_v61  ;;  %v1108_v19 = vsel %vm612_vm6, %v5886_v37, %v5885_v51  ;;  %v1079_v55 = vmul.f32 %v1069_v31, %v5887_v4  ;;  %v1080_v33 = vmul.f32 %v1067_v24, %v5888_v42  ;;  %v1156_v60 = vmul.f32 %v1144_v32, %v5901_v7  ;;  %v5902_v24 = vld [vmem:[#allocation18_spill] sm:$0xff]  ;;  %v5907_v42 = vld [vmem:[#allocation20_spill] sm:$0xff]  ;;  %v5921_v7 = vld [vmem:[#allocation31_spill] sm:$0xff] }
 0x284   : > { %v1068_v45 = vsel %vm575_vm5, %v1062_v25, %v3810_v56  ;;  %v1070_v53 = vsel %vm575_vm5, %v3826_v36, %v1062_v25  ;;  %v1120_v28 = vmul.f32 %v1108_v19, %v5892_v20  ;;  %v1153_v31 = vmul.f32 %v1143_v21, %v5902_v24  ;;  %v5909_v20 = vld [vmem:[#allocation23_spill] sm:$0xff]  ;;  %v5911_v21 = vld [vmem:[#allocation21_spill] sm:$0xff] }
 0x285   : > { %v1082_v41 = vmul.f32 %v1070_v53, %v5889_v52  ;;  %v1083_v50 = vmul.f32 %v1068_v45, %v5890_v63  ;;  %1304 = vmatpush1.bf16.msra.mxu1 %v1051_v1  ;;  %v1096_v14 = vpop.permute.xlu1 %1095  ;;  %v5908_v52 = vld [vmem:[#allocation19_spill] sm:$0xff] }
 0x286   : > { %v1103_v56 = vsel %vm612_vm6, %v1096_v14, %v5880_v40  ;;  %v1105_v36 = vsel %vm612_vm6, %v3828_v35, %v1096_v14  ;;  %1261 = vmatpush1.bf16.msra.mxu0 %v1049_v5  ;;  %1305 = vmatprep.subr.bf16.mxu1 %v5862_v57  ;;  %v1123_v47 = vpack.c.bf16 %v1120_v28, %v1117_v38  ;;  %v5903_v40 = vld [vmem:[#allocation17_spill] sm:$0xff] }
 0x287   : > { %v1085_v13 = vpack.c.bf16 %v1082_v41, %v1079_v55  ;;  %v1098_v10 = vpop.permute.xlu0 %1097  ;;  %v1086_v29 = vpack.c.bf16 %v1083_v50, %v1080_v33  ;;  %v1115_v35 = vmul.f32 %v1105_v36, %v5897_v23  ;;  %v1116_v18 = vmul.f32 %v1103_v56, %v5898_v8  ;;  %v5906_v5 = vld [vmem:[#allocation13_spill] sm:$0xff] }
 0x288   : > { %v1104_v6 = vsel %vm612_vm6, %v1098_v10, %v5886_v37  ;;  %v1106_v17 = vsel %vm612_vm6, %v5885_v51, %v1098_v10  ;;  %v1159_v19 = vpack.c.bf16 %v1156_v60, %v1153_v31  ;;  %v5912_v10 = vld [vmem:[#allocation22_spill] sm:$0xff] }
 0x289   : > { %v1118_v59 = vmul.f32 %v1106_v17, %v5899_v0  ;;  %v1119_v22 = vmul.f32 %v1104_v6, %v5900_v58  ;;  %1306 = vmatpush1.bf16.msra.mxu1 %v1087_v9  ;;  %v1132_v48 = vpop.permute.xlu1 %1131  ;;  %1262 = vmatprep.subr.bf16.mxu0 %v1086_v29  ;;  %v5917_v58 = vld [vmem:[#allocation29_spill] sm:$0xff] }
 0x28a   : > { %v1139_v34 = vsel %vm649_vm7, %v1132_v48, %v5894_v2  ;;  %v1141_v54 = vsel %vm649_vm7, %v5893_v26, %v1132_v48  ;;  %1263 = vmatpush1.bf16.msra.mxu0 %v1085_v13  ;;  %1307 = vmatprep.subr.bf16.mxu1 %v5862_v57  ;;  %v5910_v26 = vld [vmem:[#allocation24_spill] sm:$0xff] }
 0x28b   : > { %v1121_v3 = vpack.c.bf16 %v1118_v59, %v1115_v35  ;;  %v1134_v61 = vpop.permute.xlu0 %1133  ;;  %v1122_v15 = vpack.c.bf16 %v1119_v22, %v1116_v18  ;;  %v1151_v16 = vmul.f32 %v1141_v54, %v5903_v40  ;;  %v1152_v1 = vmul.f32 %v1139_v34, %v5904_v44  ;;  %v5913_v35 = vld [vmem:[#allocation30_spill] sm:$0xff]  ;;  %v5918_v48 = vld [vmem:[#allocation32_spill] sm:$0xff] }
 0x28c   : > { %v1140_v25 = vsel %vm649_vm7, %v1134_v61, %v5896_v27  ;;  %v1142_v30 = vsel %vm649_vm7, %v5895_v12, %v1134_v61  ;;  %v3009_v27 = vld [vmem:[%s5752_s4] ss:$8 sps:$4 sm:$0xff]   ;;  %v5915_v18 = vld [vmem:[#allocation34_spill] sm:$0xff] }
 0x28d   : > { %v1154_v43 = vmul.f32 %v1142_v30, %v5905_v49  ;;  %v1155_v9 = vmul.f32 %v1140_v25, %v5906_v5  ;;  %1308 = vmatpush1.bf16.msra.mxu1 %v1123_v47  ;;  %v1168_v51 = vpop.permute.xlu1 %1167  ;;  %1264 = vmatprep.subr.bf16.mxu0 %v1122_v15 }
 0x28e   : > { %v1175_v37 = vsel %vm686_vm8, %v1168_v51, %v3923_v39  ;;  %1265 = vmatpush1.bf16.msra.mxu0 %v1121_v3  ;;  %1309 = vmatprep.subr.bf16.mxu1 %v5862_v57  ;;  %v5922_v3 = vld [vmem:[#allocation33_spill] sm:$0xff] }
 0x28f   : > { %v1157_v45 = vpack.c.bf16 %v1154_v43, %v1151_v16  ;;  %v1170_v53 = vpop.permute.xlu0 %1169  ;;  %v1158_v4 = vpack.c.bf16 %v1155_v9, %v1152_v1  ;;  %v1188_v33 = vmul.f32 %v1175_v37, %v5907_v42 }
 0x290   : > { %v1176_v55 = vsel %vm686_vm8, %v1170_v53, %v3931_v62 }
 0x291   : > { %v1191_v41 = vmul.f32 %v1176_v55, %v5908_v52  ;;  %1310 = vmatpush1.bf16.msra.mxu1 %v1159_v19  ;;  %v1164_v63 = vpop.permute.xlu1 %1163  ;;  %1266 = vmatprep.subr.bf16.mxu0 %v1158_v4 }
 0x292   : > { %v1177_v50 = vsel %vm686_vm8, %v1164_v63, %v1168_v51  ;;  %v1179_v14 = vsel %vm686_vm8, %v3923_v39, %v1164_v63  ;;  %1267 = vmatpush1.bf16.msra.mxu0 %v1157_v45  ;;  %1311 = vmatprep.subr.bf16.mxu1 %v5862_v57 }
 0x293   : > { %v1166_v46 = vpop.permute.xlu0 %1165  ;;  %v1194_v38 = vpack.c.bf16 %v1191_v41, %v1188_v33  ;;  %v1187_v28 = vmul.f32 %v1177_v50, %v5909_v20  ;;  %v1189_v2 = vmul.f32 %v1179_v14, %v5910_v26 }
 0x294   : > { %v1178_v56 = vsel %vm686_vm8, %v1166_v46, %v1170_v53  ;;  %v1180_v36 = vsel %vm686_vm8, %v3931_v62, %v1166_v46 }
 0x295   : > { %v1190_v13 = vmul.f32 %v1178_v56, %v5911_v21  ;;  %v1192_v39 = vmul.f32 %v1180_v36, %v5912_v10  ;;  %1268 = vmatprep.subr.bf16.mxu0 %v1194_v38 }
 0x297   : > { %v1193_v29 = vpack.c.bf16 %v1190_v13, %v1187_v28  ;;  %v1195_v12 = vpack.c.bf16 %v1192_v39, %v1189_v2 }
 0x299   : > { %1269 = vmatpush1.bf16.msra.mxu0 %v1193_v29  ;;  %1312 = vmatpush1.bf16.msra.mxu1 %v1195_v12 }
 0x29a   : > { %1792 = vmatprep.subr.bf16.mxu1 %v5862_v57 }
 0x29c   : > { %1285 = vmatmul.mubr.bf16.vlgmr.msra.gmra.mrb[8].mxu0 %v3009_v27  ;;  %1328 = vmatmul.mubr.bf16.vlgmr.msra.gmra.mrb[8].mxu1 %v3009_v27 }
 0x2a2   : > { %v4040_v62 = vpop.permute.xlu1 %1232 }
 0x2a4   : > { %v4042_v32 = vpop.permute.xlu0 %1237 }
 0x2a6   : > { %v759_v23 = vpop.permute.xlu1 %758 }
 0x2a7   : > { %v887_v6 = vadd.f32 %v5913_v35, %v759_v23  ;;  %v836_v22 = vadd.f32 %v5917_v58, %v759_v23  ;;  %v838_v60 = vadd.f32 %v5921_v7, %v759_v23 }
 0x2a8   : > { %v764_v17 = vpop.permute.xlu0 %763 }
 0x2a9   : > { %v4045_v8 = vmax.f32 %v887_v6, 0.0  ;;  %v890_v0 = vadd.f32 %v5915_v18, %v764_v17  ;;  %v840_v34 = vadd.f32 %v5918_v48, %v764_v17  ;;  %v4066_v54 = vmax.f32 %v836_v22, 0.0 }
 0x2aa   : > { %v842_v61 = vadd.f32 %v5922_v3, %v764_v17  ;;  %v4088_v15 = vmax.f32 %v838_v60, 0.0 }
 0x2ab   : > { %5914 = vst [vmem:[#allocation35_spill] sm:$0xff] %v4045_v8  ;;  %1871 = vrot.lane.b32.xlu1 %v4045_v8, %s3041_s23  ;;  %v4050_v59 = vmax.f32 %v890_v0, 0.0  ;;  %5919 = vst [vmem:[#allocation26_spill] sm:$0xff] %v4066_v54  ;;  %v4072_v47 = vmax.f32 %v840_v34, 0.0 }
 0x2ac   : > { %5923 = vst [vmem:[#allocation28_spill] sm:$0xff] %v4088_v15  ;;  %v4094_v24 = vmax.f32 %v842_v61, 0.0 }
 0x2ad   : > { %5916 = vst [vmem:[#allocation25_spill] sm:$0xff] %v4050_v59  ;;  %1873 = vrot.lane.b32.xlu0 %v4050_v59, %s3041_s23  ;;  %5920 = vst [vmem:[#allocation27_spill] sm:$0xff] %v4072_v47 }
 0x2ae   : > { %5924 = vst [vmem:[#allocation39_spill] sm:$0xff] %v4094_v24 }
 0x2af   : > { %1907 = vrot.lane.b32.xlu1 %v4045_v8, %s3042_s24 }
 0x2b1   : > { %1909 = vrot.lane.b32.xlu0 %v4050_v59, %s3042_s24 }
 0x2b3   : > { %1943 = vrot.lane.b32.xlu1 %v4045_v8, %s3043_s25 }
 0x2b5   : > { %1945 = vrot.lane.b32.xlu0 %v4050_v59, %s3043_s25 }
 0x2b7   : > { %1979 = vrot.lane.b32.xlu1 %v4045_v8, %s3044_s26 }
 0x2b9   : > { %1981 = vrot.lane.b32.xlu0 %v4050_v59, %s3044_s26 }
 0x2bb   : > { %1863 = vrot.lane.b32.xlu1 %v4066_v54, %s3041_s23 }
 0x2bd   : > { %1865 = vrot.lane.b32.xlu0 %v4072_v47, %s3041_s23 }
 0x2bf   : > { %1899 = vrot.lane.b32.xlu1 %v4066_v54, %s3042_s24 }
 0x2c1   : > { %1901 = vrot.lane.b32.xlu0 %v4072_v47, %s3042_s24 }
 0x2c3   : > { %1935 = vrot.lane.b32.xlu1 %v4066_v54, %s3043_s25 }
 0x2c5   : > { %1937 = vrot.lane.b32.xlu0 %v4072_v47, %s3043_s25 }
 0x2c7   : > { %1971 = vrot.lane.b32.xlu1 %v4066_v54, %s3044_s26 }
 0x2c9   : > { %1973 = vrot.lane.b32.xlu0 %v4072_v47, %s3044_s26 }
 0x2cb   : > { %1867 = vrot.lane.b32.xlu1 %v4088_v15, %s3041_s23 }
 0x2cd   : > { %1869 = vrot.lane.b32.xlu0 %v4094_v24, %s3041_s23 }
 0x2cf   : > { %1903 = vrot.lane.b32.xlu1 %v4088_v15, %s3042_s24 }
 0x2d1   : > { %1905 = vrot.lane.b32.xlu0 %v4094_v24, %s3042_s24 }
 0x2d3   : > { %1939 = vrot.lane.b32.xlu1 %v4088_v15, %s3043_s25 }
 0x2d5   : > { %1941 = vrot.lane.b32.xlu0 %v4094_v24, %s3043_s25 }
 0x2d7   : > { %1975 = vrot.lane.b32.xlu1 %v4088_v15, %s3044_s26 }
 0x2d9   : > { %1977 = vrot.lane.b32.xlu0 %v4094_v24, %s3044_s26 }
 0x2db   : > { %2017 = vrot.lane.b32.xlu1 %v4088_v15, %s3045_s27 }
 0x2dd   : > { %2019 = vrot.lane.b32.xlu0 %v4094_v24, %s3045_s27 }
 0x31d   : > { %v4168_v42 = vpop.permute.xlu1 %1871 }
 0x31f   : > { %v4172_v33 = vpop.permute.xlu0 %1873 }
 0x321   : > { %v4178_v52 = vpop.permute.xlu1 %1907 }
 0x323   : > { %v4182_v41 = vpop.permute.xlu0 %1909 }
 0x324   : > { %5925 = vst [vmem:[#allocation36_spill] sm:$0xff] %v4182_v41 }
 0x325   : > { %v4188_v63 = vpop.permute.xlu1 %1943 }
 0x326   : > { %5926 = vst [vmem:[#allocation6_spill] sm:$0xff] %v4188_v63 }
 0x327   : > { %v4192_v50 = vpop.permute.xlu0 %1945 }
 0x328   : > { %5927 = vst [vmem:[#allocation4_spill] sm:$0xff] %v4192_v50 }
 0x329   : > { %v4198_v14 = vpop.permute.xlu1 %1979 }
 0x32a   : > { %5928 = vst [vmem:[#allocation5_spill] sm:$0xff] %v4198_v14 }
 0x32b   : > { %v4202_v46 = vpop.permute.xlu0 %1981 }
 0x32c   : > { %5929 = vst [vmem:[#allocation3_spill] sm:$0xff] %v4202_v46  ;;  %v4399_v46 = vld [vmem:[%s5749_s1 + $0x18] sm:$0xff] }
 0x32d   : > { %v4210_v36 = vpop.permute.xlu1 %1863 }
 0x32f   : > { %v4216_v28 = vpop.permute.xlu0 %1865 }
 0x331   : > { %v4224_v2 = vpop.permute.xlu1 %1899 }
 0x333   : > { %v4228_v21 = vpop.permute.xlu0 %1901 }
 0x334   : > { %5930 = vst [vmem:[#allocation12_spill] sm:$0xff] %v4228_v21  ;;  %v4448_v21 = vld [vmem:[%s5749_s1 + $0x48] sm:$0xff] }
 0x335   : > { %v4234_v13 = vpop.permute.xlu1 %1935  ;;  %5948 = vst [vmem:[#allocation23_spill] sm:$0xff] %v4448_v21 }
 0x336   : > { %5931 = vst [vmem:[#allocation10_spill] sm:$0xff] %v4234_v13  ;;  %v4411_v13 = vld [vmem:[%s5749_s1] sm:$0xff] }
 0x337   : > { %v4238_v10 = vpop.permute.xlu0 %1937  ;;  %5946 = vst [vmem:[#allocation20_spill] sm:$0xff] %v4411_v13 }
 0x338   : > { %5932 = vst [vmem:[#allocation40_spill] sm:$0xff] %v4238_v10 }
 0x339   : > { %v4244_v39 = vpop.permute.xlu1 %1971 }
 0x33a   : > { %5933 = vst [vmem:[#allocation37_spill] sm:$0xff] %v4244_v39 }
 0x33b   : > { %v4248_v29 = vpop.permute.xlu0 %1973 }
 0x33c   : > { %5934 = vst [vmem:[#allocation41_spill] sm:$0xff] %v4248_v29 }
 0x33d   : > { %v4254_v12 = vpop.permute.xlu1 %1867 }
 0x33f   : > { %v4258_v27 = vpop.permute.xlu0 %1869 }
 0x343   : > { %v4271_v23 = vpop.permute.xlu0 %1905 }
 0x344   : > { %5936 = vst [vmem:[#allocation11_spill] sm:$0xff] %v4271_v23 }
 0x347   : > { %v4283_v6 = vpop.permute.xlu0 %1941 }
 0x348   : > { %5938 = vst [vmem:[#allocation9_spill] sm:$0xff] %v4283_v6 }
 0x34b   : > { %v4293_v18 = vpop.permute.xlu0 %1977 }
 0x34c   : > { %5940 = vst [vmem:[#allocation16_spill] sm:$0xff] %v4293_v18 }
 0x34f   : > { %v4303_v58 = vpop.permute.xlu0 %2019 }
 0x350   : > { %5942 = vst [vmem:[#allocation17_spill] sm:$0xff] %v4303_v58 }
 0x36f   : > { %v1286_v31 = vpop.f32.mrb[8].mxu0  ;;  %v1329_v40 = vpop.f32.mrb[8].mxu1 }
 0x370   : > { %v1287_v16 = vadd.f32 %v1286_v31, %v4040_v62  ;;  %v1330_v25 = vadd.f32 %v1329_v40, %v4040_v62  ;;  %v1288_v30 = vpop.f32.mrb[9].mxu0  ;;  %v1331_v44 = vpop.f32.mrb[9].mxu1 }
 0x371   : > { %v1290_v1 = vpop.f32.mrb[10].mxu0  ;;  %v1332_v49 = vpop.f32.mrb[10].mxu1  ;;  %v1289_v38 = vadd.f32 %v1288_v30, %v4040_v62  ;;  %v2961_v44 = vld [vmem:[%s5753_s5 + $0x10] sm:$0xff] }
 0x372   : > { %v4116_v43 = vmax.f32 %v1330_v25, 0.0  ;;  %v1291_v5 = vadd.f32 %v1290_v1, %v4042_v32  ;;  %v1333_v9 = vadd.f32 %v1332_v49, %v4042_v32  ;;  %v1292_v51 = vpop.f32.mrb[11].mxu0  ;;  %v1334_v37 = vpop.f32.mrb[11].mxu1  ;;  %v4120_v19 = vmax.f32 %v1287_v16, 0.0  ;;  %v2962_v49 = vld [vmem:[%s5753_s5 + $0x18] sm:$0xff] }
 0x373   : > { %v1293_v56 = vadd.f32 %v1292_v51, %v4042_v32  ;;  %v4212_v20 = vmax.f32 %v1289_v38, 0.0  ;;  %v4264_v62 = vpop.permute.xlu1 %1903  ;;  %v3012_v32 = vld [vmem:[%s5754_s6 + $0x4] ss:$8 sps:$4 sm:$0xff]  }
 0x374   : > { %v4122_v45 = vmax.f32 %v1291_v5, 0.0  ;;  %v4124_v53 = vmax.f32 %v1333_v9, 0.0  ;;  %1350 = vrot.lane.b32.xlu1 %v4116_v43, %s3041_s23  ;;  %5935 = vst [vmem:[#allocation38_spill] sm:$0xff] %v4264_v62  ;;  %2956 = vmatprep.mubr.msk.bf16.mxu1 %vm784_vm0, %v3012_v32 }
 0x375   : > { %v4218_v26 = vmax.f32 %v1293_v56, 0.0  ;;  %2953 = vmatprep.mubr.msk.bf16.mxu0 %vm784_vm0, %v3012_v32 }
 0x376   : > { %1352 = vrot.lane.b32.xlu0 %v4124_v53, %s3041_s23 }
 0x377   : > { %v4279_v35 = vpop.permute.xlu1 %1939 }
 0x378   : > { %1386 = vrot.lane.b32.xlu1 %v4116_v43, %s3042_s24  ;;  %5937 = vst [vmem:[#allocation8_spill] sm:$0xff] %v4279_v35  ;;  %v4416_v35 = vld [vmem:[%s5749_s1 + $0x8] sm:$0xff] }
 0x37a   : > { %1388 = vrot.lane.b32.xlu0 %v4124_v53, %s3042_s24 }
 0x37b   : > { %v4289_v17 = vpop.permute.xlu1 %1975 }
 0x37c   : > { %1422 = vrot.lane.b32.xlu1 %v4116_v43, %s3043_s25  ;;  %5939 = vst [vmem:[#allocation7_spill] sm:$0xff] %v4289_v17 }
 0x37e   : > { %1424 = vrot.lane.b32.xlu0 %v4124_v53, %s3043_s25 }
 0x37f   : > { %v4299_v0 = vpop.permute.xlu1 %2017 }
 0x380   : > { %1458 = vrot.lane.b32.xlu1 %v4116_v43, %s3044_s26  ;;  %5941 = vst [vmem:[#allocation18_spill] sm:$0xff] %v4299_v0 }
 0x382   : > { %1460 = vrot.lane.b32.xlu0 %v4124_v53, %s3044_s26 }
 0x384   : > { %1500 = vrot.lane.b32.xlu1 %v4116_v43, %s3045_s27 }
 0x386   : > { %1502 = vrot.lane.b32.xlu0 %v4124_v53, %s3045_s27 }
 0x388   : > { %1536 = vrot.lane.b32.xlu1 %v4116_v43, %s3046_s28 }
 0x38a   : > { %1538 = vrot.lane.b32.xlu0 %v4124_v53, %s3046_s28 }
 0x38c   : > { %1572 = vrot.lane.b32.xlu1 %v4116_v43, %s3047_s29 }
 0x38e   : > { %1574 = vrot.lane.b32.xlu0 %v4124_v53, %s3047_s29 }
 0x390   : > { %1608 = vrot.lane.b32.xlu1 %v4116_v43, %s3048_s30 }
 0x392   : > { %1610 = vrot.lane.b32.xlu0 %v4124_v53, %s3048_s30 }
 0x394   : > { %1342 = vrot.lane.b32.xlu1 %v4120_v19, %s3041_s23 }
 0x396   : > { %1344 = vrot.lane.b32.xlu0 %v4122_v45, %s3041_s23 }
 0x398   : > { %1378 = vrot.lane.b32.xlu1 %v4120_v19, %s3042_s24 }
 0x39a   : > { %1380 = vrot.lane.b32.xlu0 %v4122_v45, %s3042_s24 }
 0x39c   : > { %1414 = vrot.lane.b32.xlu1 %v4120_v19, %s3043_s25 }
 0x39e   : > { %1416 = vrot.lane.b32.xlu0 %v4122_v45, %s3043_s25 }
 0x3a0   : > { %1450 = vrot.lane.b32.xlu1 %v4120_v19, %s3044_s26 }
 0x3a2   : > { %1452 = vrot.lane.b32.xlu0 %v4122_v45, %s3044_s26 }
 0x3a4   : > { %1492 = vrot.lane.b32.xlu1 %v4120_v19, %s3045_s27 }
 0x3a6   : > { %1494 = vrot.lane.b32.xlu0 %v4122_v45, %s3045_s27 }
 0x3a8   : > { %1528 = vrot.lane.b32.xlu1 %v4120_v19, %s3046_s28 }
 0x3aa   : > { %1530 = vrot.lane.b32.xlu0 %v4122_v45, %s3046_s28 }
 0x3ac   : > { %1564 = vrot.lane.b32.xlu1 %v4120_v19, %s3047_s29 }
 0x3ae   : > { %1566 = vrot.lane.b32.xlu0 %v4122_v45, %s3047_s29 }
 0x3b0   : > { %1600 = vrot.lane.b32.xlu1 %v4120_v19, %s3048_s30 }
 0x3b2   : > { %1602 = vrot.lane.b32.xlu0 %v4122_v45, %s3048_s30 }
 0x3b4   : > { %1346 = vrot.lane.b32.xlu1 %v4212_v20, %s3041_s23 }
 0x3b6   : > { %1348 = vrot.lane.b32.xlu0 %v4218_v26, %s3041_s23 }
 0x3b8   : > { %1382 = vrot.lane.b32.xlu1 %v4212_v20, %s3042_s24 }
 0x3ba   : > { %1384 = vrot.lane.b32.xlu0 %v4218_v26, %s3042_s24 }
 0x3bc   : > { %1418 = vrot.lane.b32.xlu1 %v4212_v20, %s3043_s25 }
 0x3be   : > { %1420 = vrot.lane.b32.xlu0 %v4218_v26, %s3043_s25 }
 0x3c0   : > { %1454 = vrot.lane.b32.xlu1 %v4212_v20, %s3044_s26 }
 0x3c2   : > { %1456 = vrot.lane.b32.xlu0 %v4218_v26, %s3044_s26 }
 0x3c4   : > { %2021 = vrot.lane.b32.xlu1 %v4045_v8, %s3045_s27 }
 0x3c6   : > { %2023 = vrot.lane.b32.xlu0 %v4050_v59, %s3045_s27 }
 0x3c8   : > { %1496 = vrot.lane.b32.xlu1 %v4212_v20, %s3045_s27 }
 0x3ca   : > { %1498 = vrot.lane.b32.xlu0 %v4218_v26, %s3045_s27 }
 0x3cc   : > { %1532 = vrot.lane.b32.xlu1 %v4212_v20, %s3046_s28 }
 0x3ce   : > { %1534 = vrot.lane.b32.xlu0 %v4218_v26, %s3046_s28 }
 0x3d0   : > { %1568 = vrot.lane.b32.xlu1 %v4212_v20, %s3047_s29 }
 0x3d2   : > { %1570 = vrot.lane.b32.xlu0 %v4218_v26, %s3047_s29 }
 0x3d4   : > { %1604 = vrot.lane.b32.xlu1 %v4212_v20, %s3048_s30 }
 0x3d6   : > { %1606 = vrot.lane.b32.xlu0 %v4218_v26, %s3048_s30 }
 0x3d8   : > { %2013 = vrot.lane.b32.xlu1 %v4066_v54, %s3045_s27 }
 0x3da   : > { %2015 = vrot.lane.b32.xlu0 %v4072_v47, %s3045_s27 }
 0x3dc   : > { %2053 = vrot.lane.b32.xlu1 %v4088_v15, %s3046_s28 }
 0x3de   : > { %2055 = vrot.lane.b32.xlu0 %v4094_v24, %s3046_s28 }
 0x3e0   : > { %2057 = vrot.lane.b32.xlu1 %v4045_v8, %s3046_s28 }
 0x3e2   : > { %2059 = vrot.lane.b32.xlu0 %v4050_v59, %s3046_s28 }
 0x3e4   : > { %2049 = vrot.lane.b32.xlu1 %v4066_v54, %s3046_s28 }
 0x3e6   : > { %v1351_v22 = vpop.permute.xlu1 %1350  ;;  %2051 = vrot.lane.b32.xlu0 %v4072_v47, %s3046_s28 }
 0x3e8   : > { %v4309_v48 = vpop.permute.xlu0 %1352  ;;  %2089 = vrot.lane.b32.xlu1 %v4088_v15, %s3047_s29 }
 0x3ea   : > { %v4313_v34 = vpop.permute.xlu1 %1386  ;;  %2091 = vrot.lane.b32.xlu0 %v4094_v24, %s3047_s29 }
 0x3ec   : > { %v4317_v7 = vpop.permute.xlu0 %1388  ;;  %2093 = vrot.lane.b32.xlu1 %v4045_v8, %s3047_s29 }
 0x3ee   : > { %v4321_v60 = vpop.permute.xlu1 %1422  ;;  %2095 = vrot.lane.b32.xlu0 %v4050_v59, %s3047_s29 }
 0x3f0   : > { %v4325_v3 = vpop.permute.xlu0 %1424  ;;  %2085 = vrot.lane.b32.xlu1 %v4066_v54, %s3047_s29 }
 0x3f2   : > { %v4329_v61 = vpop.permute.xlu1 %1458  ;;  %2087 = vrot.lane.b32.xlu0 %v4072_v47, %s3047_s29 }
 0x3f4   : > { %v4333_v31 = vpop.permute.xlu0 %1460  ;;  %2125 = vrot.lane.b32.xlu1 %v4088_v15, %s3048_s30 }
 0x3f6   : > { %v4337_v40 = vpop.permute.xlu1 %1500  ;;  %2127 = vrot.lane.b32.xlu0 %v4094_v24, %s3048_s30 }
 0x3f8   : > { %v4341_v16 = vpop.permute.xlu0 %1502  ;;  %2129 = vrot.lane.b32.xlu1 %v4045_v8, %s3048_s30 }
 0x3fa   : > { %v4345_v25 = vpop.permute.xlu1 %1536  ;;  %2131 = vrot.lane.b32.xlu0 %v4050_v59, %s3048_s30 }
 0x3fc   : > { %v4349_v30 = vpop.permute.xlu0 %1538  ;;  %2121 = vrot.lane.b32.xlu1 %v4066_v54, %s3048_s30 }
 0x3fe   : > { %v4356_v1 = vpop.permute.xlu1 %1572  ;;  %2123 = vrot.lane.b32.xlu0 %v4072_v47, %s3048_s30 }
 0x400   : > { %v4363_v5 = vpop.permute.xlu0 %1574  ;;  %2192 = vperm.xlu1 %3002, %v2961_v44  }
 0x402   : > { %v4365_v9 = vpop.permute.xlu1 %1608  ;;  %2197 = vperm.xlu0 %3001, %v2962_v49  }
 0x403   : > { %5943 = vst [vmem:[#allocation14_spill] sm:$0xff] %v4365_v9 }
 0x404   : > { %v4367_v51 = vpop.permute.xlu0 %1610 }
 0x405   : > { %5944 = vst [vmem:[#allocation15_spill] sm:$0xff] %v4367_v51 }
 0x406   : > { %v1343_v37 = vpop.permute.xlu1 %1342 }
 0x407   : > { %v1358_v39 = vsel %vm421_vm1, %v1351_v22, %v1343_v37 }
 0x408   : > { %v1345_v38 = vpop.permute.xlu0 %1344  ;;  %v1366_v10 = vmul.f32 %v4411_v13, %v1358_v39 }
 0x409   : > { %v1359_v58 = vsel %vm421_vm1, %v4309_v48, %v1345_v38 }
 0x40a   : > { %v1379_v56 = vpop.permute.xlu1 %1378  ;;  %v1369_v29 = vmul.f32 %v4399_v46, %v1359_v58 }
 0x40b   : > { %v1394_v6 = vsel %vm458_vm2, %v4313_v34, %v1379_v56 }
 0x40c   : > { %v1381_v32 = vpop.permute.xlu0 %1380 }
 0x40d   : > { %v1395_v58 = vsel %vm458_vm2, %v4317_v7, %v1381_v32 }
 0x40e   : > { %v4369_v55 = vpop.permute.xlu1 %1414 }
 0x410   : > { %v4371_v4 = vpop.permute.xlu0 %1416 }
 0x412   : > { %v4373_v47 = vpop.permute.xlu1 %1450 }
 0x414   : > { %v4375_v54 = vpop.permute.xlu0 %1452 }
 0x416   : > { %v4377_v59 = vpop.permute.xlu1 %1492 }
 0x418   : > { %v4379_v44 = vpop.permute.xlu0 %1494 }
 0x41a   : > { %v4381_v8 = vpop.permute.xlu1 %1528 }
 0x41c   : > { %v4383_v49 = vpop.permute.xlu0 %1530 }
 0x41e   : > { %v4385_v24 = vpop.permute.xlu1 %1564 }
 0x420   : > { %v4387_v15 = vpop.permute.xlu0 %1566 }
 0x422   : > { %v4389_v0 = vpop.permute.xlu1 %1600 }
 0x424   : > { %v4394_v14 = vpop.permute.xlu0 %1602 }
 0x425   : > { %5945 = vst [vmem:[#allocation13_spill] sm:$0xff] %v4394_v14 }
 0x426   : > { %v1347_v17 = vpop.permute.xlu1 %1346 }
 0x427   : > { %v1354_v18 = vsel %vm421_vm1, %v1347_v17, %v1351_v22  ;;  %v1356_v63 = vsel %vm421_vm1, %v1343_v37, %v1347_v17  ;;  %v4424_v22 = vld [vmem:[%s5749_s1 + $0x10] sm:$0xff]  ;;  %v4429_v17 = vld [vmem:[%s5749_s1 + $0x20] sm:$0xff]  ;;  %v4434_v37 = vld [vmem:[%s5749_s1 + $0x28] sm:$0xff] }
 0x428   : > { %v1349_v50 = vpop.permute.xlu0 %1348  ;;  %5947 = vst [vmem:[#allocation19_spill] sm:$0xff] %v4424_v22  ;;  %v1367_v23 = vmul.f32 %v4416_v35, %v1356_v63  ;;  %v1368_v39 = vmul.f32 %v4424_v22, %v1354_v18 }
 0x429   : > { %v1355_v62 = vsel %vm421_vm1, %v1349_v50, %v4309_v48  ;;  %v1357_v41 = vsel %vm421_vm1, %v1345_v38, %v1349_v50  ;;  %v4457_v48 = vld [vmem:[%s5749_s1 + $0x30] sm:$0xff]  ;;  %v1372_v50 = vpack.c.bf16 %v1369_v29, %v1366_v10  ;;  %v1405_v38 = vmul.f32 %v4448_v21, %v1395_v58 }
 0x42a   : > { %v1370_v13 = vmul.f32 %v4429_v17, %v1357_v41  ;;  %v1371_v51 = vmul.f32 %v4434_v37, %v1355_v62  ;;  %v1383_v14 = vpop.permute.xlu1 %1382  ;;  %5949 = vst [vmem:[#allocation24_spill] sm:$0xff] %v4457_v48  ;;  %v4468_v41 = vld [vmem:[%s5749_s1 + $0x38] sm:$0xff]  ;;  %v1402_v62 = vmul.f32 %v4457_v48, %v1394_v6  ;;  %v1430_v10 = vsel %vm495_vm3, %v4321_v60, %v4369_v55 }
 0x42b   : > { %v1390_v9 = vsel %vm458_vm2, %v1383_v14, %v4313_v34  ;;  %v1392_v63 = vsel %vm458_vm2, %v1379_v56, %v1383_v14  ;;  %v4478_v34 = vld [vmem:[%s5749_s1 + $0x40] sm:$0xff]  ;;  %v4483_v14 = vld [vmem:[%s5749_s1 + $0x50] sm:$0xff]  ;;  %v4488_v6 = vld [vmem:[%s5749_s1 + $0x58] sm:$0xff] }
 0x42c   : > { %v1374_v29 = vpack.c.bf16 %v1371_v51, %v1368_v39  ;;  %v1385_v18 = vpop.permute.xlu0 %1384  ;;  %v1373_v58 = vpack.c.bf16 %v1370_v13, %v1367_v23  ;;  %v1431_v13 = vsel %vm495_vm3, %v4325_v3, %v4371_v4  ;;  %v1403_v23 = vmul.f32 %v4468_v41, %v1392_v63  ;;  %v4506_v63 = vld [vmem:[%s5749_s1 + $0x60] sm:$0xff] }
 0x42d   : > { %v1391_v51 = vsel %vm458_vm2, %v1385_v18, %v4317_v7  ;;  %v1393_v56 = vsel %vm458_vm2, %v1381_v32, %v1385_v18  ;;  %v1404_v39 = vmul.f32 %v4478_v34, %v1390_v9  ;;  %5950 = vst [vmem:[#allocation21_spill] sm:$0xff] %v4506_v63  ;;  %v4511_v7 = vld [vmem:[%s5749_s1 + $0x78] sm:$0xff]  ;;  %v1408_v32 = vpack.c.bf16 %v1405_v38, %v1402_v62  ;;  %v4523_v18 = vld [vmem:[%s5749_s1 + $0x68] sm:$0xff] }
 0x42e   : > { %v1406_v21 = vmul.f32 %v4483_v14, %v1393_v56  ;;  %v1407_v48 = vmul.f32 %v4488_v6, %v1391_v51  ;;  %1731 = vmatprep.subr.bf16.mxu0 %v1373_v58  ;;  %1793 = vmatpush1.bf16.msra.mxu1 %v1374_v29  ;;  %v1419_v22 = vpop.permute.xlu1 %1418  ;;  %v1438_v58 = vmul.f32 %v4506_v63, %v1430_v10 }
 0x42f   : > { %v1426_v9 = vsel %vm495_vm3, %v1419_v22, %v4321_v60  ;;  %v1428_v29 = vsel %vm495_vm3, %v4369_v55, %v1419_v22  ;;  %1732 = vmatpush1.bf16.msra.mxu0 %v1372_v50  ;;  %1794 = vmatprep.subr.bf16.mxu1 %v5862_v57  ;;  %v1441_v38 = vmul.f32 %v4511_v7, %v1431_v13  ;;  %v4530_v60 = vld [vmem:[%s5749_s1 + $0x70] sm:$0xff]  ;;  %v4535_v55 = vld [vmem:[%s5749_s1 + $0x80] sm:$0xff]  ;;  %v4540_v22 = vld [vmem:[%s5749_s1 + $0x88] sm:$0xff] }
 0x430   : > { %v1410_v62 = vpack.c.bf16 %v1407_v48, %v1404_v39  ;;  %v1421_v51 = vpop.permute.xlu0 %1420  ;;  %v1409_v56 = vpack.c.bf16 %v1406_v21, %v1403_v23  ;;  %5951 = vst [vmem:[#allocation22_spill] sm:$0xff] %v4530_v60  ;;  %v1467_v21 = vsel %vm532_vm4, %v4333_v31, %v4375_v54  ;;  %v1439_v48 = vmul.f32 %v4523_v18, %v1428_v29 }
 0x431   : > { %v1427_v50 = vsel %vm495_vm3, %v1421_v51, %v4325_v3  ;;  %v1429_v10 = vsel %vm495_vm3, %v4371_v4, %v1421_v51  ;;  %v1440_v13 = vmul.f32 %v4530_v60, %v1426_v9  ;;  %v1880_v29 = vsel %vm421_vm1, %v4172_v33, %v4216_v28  ;;  %v4570_v9 = vld [vmem:[%s5749_s1 + $0xa8] sm:$0xff]  ;;  %v4589_v60 = vld [vmem:[%s5749_s1 + $0xb0] sm:$0xff] }
 0x432   : > { %v1442_v23 = vmul.f32 %v4535_v55, %v1429_v10  ;;  %v1443_v39 = vmul.f32 %v4540_v22, %v1427_v50  ;;  %1733 = vmatprep.subr.bf16.mxu0 %v1409_v56  ;;  %1795 = vmatpush1.bf16.msra.mxu1 %v1410_v62  ;;  %v1455_v63 = vpop.permute.xlu1 %1454  ;;  %v4575_v62 = vld [vmem:[%s5749_s1 + $0x98] sm:$0xff]  ;;  %v1444_v51 = vpack.c.bf16 %v1441_v38, %v1438_v58  ;;  %v4584_v10 = vld [vmem:[%s5749_s1 + $0xa0] sm:$0xff] }
 0x433   : > { %v1462_v3 = vsel %vm532_vm4, %v1455_v63, %v4329_v61  ;;  %v1464_v4 = vsel %vm532_vm4, %v4373_v47, %v1455_v63  ;;  %1734 = vmatpush1.bf16.msra.mxu0 %v1408_v32  ;;  %1796 = vmatprep.subr.bf16.mxu1 %v5862_v57  ;;  %v1466_v56 = vsel %vm532_vm4, %v4329_v61, %v4373_v47  ;;  %v4594_v58 = vld [vmem:[%s5749_s1 + $0xb8] sm:$0xff] }
 0x434   : > { %v1446_v63 = vpack.c.bf16 %v1443_v39, %v1440_v13  ;;  %v1457_v32 = vpop.permute.xlu0 %1456  ;;  %v1445_v50 = vpack.c.bf16 %v1442_v23, %v1439_v48  ;;  %5952 = vst [vmem:[#allocation30_spill] sm:$0xff] %v4584_v10  ;;  %v1477_v47 = vmul.f32 %v4570_v9, %v1467_v21  ;;  %v1475_v61 = vmul.f32 %v4575_v62, %v1464_v4  ;;  %v4607_v13 = vld [vmem:[%s5749_s1 + $0x90] sm:$0xff] }
 0x435   : > { %v1463_v38 = vsel %vm532_vm4, %v1457_v32, %v4333_v31  ;;  %v1465_v48 = vsel %vm532_vm4, %v4375_v54, %v1457_v32  ;;  %5953 = vst [vmem:[#allocation34_spill] sm:$0xff] %v4607_v13  ;;  %v1476_v23 = vmul.f32 %v4584_v10, %v1462_v3  ;;  %v1474_v31 = vmul.f32 %v4607_v13, %v1466_v56  ;;  %v4625_v3 = vld [vmem:[%s5749_s1 + $0x118] sm:$0xff]  ;;  %v4675_v13 = vld [vmem:[%s5749_s1 + $0xf0] sm:$0xff] }
 0x436   : > { %v1478_v39 = vmul.f32 %v4589_v60, %v1465_v48  ;;  %v1479_v21 = vmul.f32 %v4594_v58, %v1463_v38  ;;  %1735 = vmatprep.subr.bf16.mxu0 %v1445_v50  ;;  %1797 = vmatpush1.bf16.msra.mxu1 %v1446_v63  ;;  %v4612_v4 = vpop.permute.xlu1 %2021  ;;  %v4620_v54 = vsel %vm421_vm1, %v4168_v42, %v4210_v36 }
 0x437   : > { %5954 = vst [vmem:[#allocation29_spill] sm:$0xff] %v4612_v4  ;;  %1736 = vmatpush1.bf16.msra.mxu0 %v1444_v51  ;;  %1798 = vmatprep.subr.bf16.mxu1 %v5862_v57  ;;  %v1509_v63 = vsel %vm575_vm5, %v4341_v16, %v4379_v44  ;;  %v4634_v50 = vmul.f32 %v4399_v46, %v1880_v29  ;;  %v4645_v4 = vld [vmem:[%s5749_s1 + $0x148] sm:$0xff]  ;;  %v4654_v46 = vld [vmem:[%s5749_s1 + $0x100] sm:$0xff] }
 0x438   : > { %v1482_v56 = vpack.c.bf16 %v1479_v21, %v1476_v23  ;;  %v4631_v51 = vpop.permute.xlu0 %2023  ;;  %v1481_v32 = vpack.c.bf16 %v1478_v39, %v1475_v61  ;;  %v4640_v38 = vsel %vm458_vm2, %v4178_v52, %v4224_v2  ;;  %v1480_v48 = vpack.c.bf16 %v1477_v47, %v1474_v31  ;;  %5955 = vst [vmem:[#allocation32_spill] sm:$0xff] %v4645_v4  ;;  %v4663_v47 = vld [vmem:[%s5749_s1 + $0x130] sm:$0xff] }
 0x439   : > { %v1545_v61 = vsel %vm612_vm6, %v4349_v30, %v4383_v49  ;;  %5956 = vst [vmem:[#allocation31_spill] sm:$0xff] %v4654_v46  ;;  %v1508_v29 = vsel %vm575_vm5, %v4337_v40, %v4377_v59  ;;  %5957 = vst [vmem:[#allocation33_spill] sm:$0xff] %v4663_v47  ;;  %v1544_v23 = vsel %vm612_vm6, %v4345_v25, %v4381_v8 }
 0x43a   : > { %1737 = vmatprep.subr.bf16.mxu0 %v1481_v32  ;;  %1799 = vmatpush1.bf16.msra.mxu1 %v1482_v56  ;;  %v1497_v39 = vpop.permute.xlu1 %1496  ;;  %v1487_v21 = vpack.c.bf16 %v4218_v26, %v4212_v20  ;;  %v1521_v31 = vmul.f32 %v4625_v3, %v1509_v63  ;;  %v4686_v20 = vld [vmem:[%s5749_s1 + $0x108] sm:$0xff]  ;;  %v4693_v26 = vsel %vm421_vm1, %v4210_v36, %v4254_v12 }
 0x43b   : > { %v1504_v10 = vsel %vm575_vm5, %v1497_v39, %v4337_v40  ;;  %v1506_v32 = vsel %vm575_vm5, %v4377_v59, %v1497_v39  ;;  %1738 = vmatpush1.bf16.msra.mxu0 %v1480_v48  ;;  %1800 = vmatprep.subr.bf16.mxu1 %v5862_v57  ;;  %v4699_v40 = vsel %vm421_vm1, %v4258_v27, %v4172_v33  ;;  %v4715_v33 = vld [vmem:[%s5749_s1 + $0xf8] sm:$0xff]  ;;  %v4720_v39 = vld [vmem:[%s5749_s1 + $0x110] sm:$0xff] }
 0x43c   : > { %v4705_v59 = vsel %vm421_vm1, %v4216_v28, %v4258_v27  ;;  %v4708_v63 = vmul.f32 %v4645_v4, %v1545_v61  ;;  %v1499_v56 = vpop.permute.xlu0 %1498  ;;  %1739 = vmatprep.subr.bf16.mxu0 %v1487_v21  ;;  %v1518_v36 = vmul.f32 %v4654_v46, %v1508_v29  ;;  %v1554_v48 = vmul.f32 %v4663_v47, %v1544_v23 }
 0x43d   : > { %v1505_v28 = vsel %vm575_vm5, %v1499_v56, %v4341_v16  ;;  %v1507_v27 = vsel %vm575_vm5, %v4379_v44, %v1499_v56  ;;  %v1516_v61 = vmul.f32 %v4675_v13, %v1506_v32  ;;  %v1517_v29 = vmul.f32 %v4715_v33, %v1504_v10  ;;  %v4738_v16 = vld [vmem:[%s5749_s1 + $0x120] sm:$0xff]  ;;  %v4743_v44 = vld [vmem:[%s5749_s1 + $0x128] sm:$0xff]  ;;  %v4778_v56 = vld [vmem:[%s5749_s1 + $0x178] sm:$0xff] }
 0x43e   : > { %v1519_v23 = vmul.f32 %v4686_v20, %v1507_v27  ;;  %v1520_v21 = vmul.f32 %v4720_v39, %v1505_v28  ;;  %v5958_v47 = vpack.c.bf16 %v4124_v53, %v4116_v43  ;;  %5959 = vst [vmem:[#allocation42_spill] sm:$0xff] %v4738_v16  ;;  %v1533_v4 = vpop.permute.xlu1 %1532  ;;  %v1524_v46 = vpack.c.bf16 %v1521_v31, %v1518_v36  ;;  %v4762_v31 = vld [vmem:[%s5749_s1 + $0x140] sm:$0xff] }
 0x43f   : > { %v1540_v10 = vsel %vm612_vm6, %v1533_v4, %v4345_v25  ;;  %v1542_v43 = vsel %vm612_vm6, %v4381_v8, %v1533_v4  ;;  %v5960_v53 = vpack.c.bf16 %v4122_v45, %v4120_v19  ;;  %v1560_v25 = vpack.c.bf16 %v4708_v63, %v1554_v48  ;;  %v4769_v8 = vld [vmem:[%s5749_s1 + $0x160] sm:$0xff]  ;;  %5962 = vst [vmem:[#allocation44_spill] sm:$0xff] %v4778_v56 }
 0x440   : > { %1801 = vmatpush1.bf16.msra.mxu1 %v5958_v47  ;;  %v4757_v47 = vld [vmem:[%s5749_s1 + $0x138] sm:$0xff]  ;;  %5961 = vst [vmem:[#allocation43_spill] sm:$0xff] %v4769_v8  ;;  %v1580_v19 = vsel %vm649_vm7, %v4356_v1, %v4385_v24  ;;  %v1522_v45 = vpack.c.bf16 %v1519_v23, %v1516_v61  ;;  %v1535_v4 = vpop.permute.xlu0 %1534  ;;  %v1523_v32 = vpack.c.bf16 %v1520_v21, %v1517_v29  ;;  %v4797_v23 = vld [vmem:[%s5749_s1 + $0x150] sm:$0xff] }
 0x441   : > { %1740 = vmatpush1.bf16.msra.mxu0 %v5960_v53  ;;  %1802 = vmatprep.subr.bf16.mxu1 %v5862_v57  ;;  %v1581_v63 = vsel %vm649_vm7, %v4363_v5, %v4387_v15  ;;  %v1552_v36 = vmul.f32 %v4738_v16, %v1542_v43  ;;  %v1541_v48 = vsel %vm612_vm6, %v1535_v4, %v4349_v30  ;;  %v4814_v43 = vld [vmem:[%s5749_s1 + $0x168] sm:$0xff]  ;;  %v4819_v53 = vld [vmem:[%s5749_s1 + $0x170] sm:$0xff] }
 0x442   : > { %v1543_v28 = vsel %vm612_vm6, %v4383_v49, %v1535_v4  ;;  %v1553_v27 = vmul.f32 %v4743_v44, %v1540_v10  ;;  %v1556_v29 = vmul.f32 %v4762_v31, %v1541_v48  ;;  %5963 = vst [vmem:[#allocation45_spill] sm:$0xff] %v4797_v23  ;;  %v1569_v21 = vpop.permute.xlu1 %1568  ;;  %1741 = vmatprep.subr.bf16.mxu0 %v1523_v32  ;;  %v4803_v49 = vld [vmem:[%s5749_s1 + $0x158] sm:$0xff]  ;;  %5965 = vst [vmem:[#allocation47_spill] sm:$0xff] %v4814_v43  ;;  %v4830_v48 = vld [vmem:[%s5749_s1 + $0x1a8] sm:$0xff] }
 0x443   : > { %v1555_v61 = vmul.f32 %v4757_v47, %v1543_v28  ;;  %v1590_v30 = vmul.f32 %v4769_v8, %v1580_v19  ;;  %5964 = vst [vmem:[#allocation46_spill] sm:$0xff] %v4803_v49  ;;  %v1576_v10 = vsel %vm649_vm7, %v1569_v21, %v4356_v1  ;;  %v1593_v19 = vmul.f32 %v4778_v56, %v1581_v63  ;;  %v5966_v1 = vld [vmem:[#allocation14_spill] sm:$0xff]  ;;  %v5967_v28 = vld [vmem:[#allocation13_spill] sm:$0xff] }
 0x444   : > { %1803 = vmatpush1.bf16.msra.mxu1 %v1524_v46  ;;  %v1578_v46 = vsel %vm649_vm7, %v4385_v24, %v1569_v21  ;;  %v1616_v24 = vsel %vm686_vm8, %v5966_v1, %v4389_v0  ;;  %v1571_v4 = vpop.permute.xlu0 %1570  ;;  %v1559_v32 = vpack.c.bf16 %v1556_v29, %v1553_v27  ;;  %v5968_v21 = vld [vmem:[#allocation15_spill] sm:$0xff]  ;;  %v4846_v27 = vld [vmem:[%s5749_s1 + $0x190] sm:$0xff] }
 0x445   : > { %1742 = vmatpush1.bf16.msra.mxu0 %v1522_v45  ;;  %1804 = vmatprep.subr.bf16.mxu1 %v5862_v57  ;;  %v1558_v45 = vpack.c.bf16 %v1555_v61, %v1552_v36  ;;  %v1617_v8 = vsel %vm686_vm8, %v5968_v21, %v5967_v28  ;;  %v1588_v63 = vmul.f32 %v4797_v23, %v1578_v46 }
 0x446   : > { %v1577_v56 = vsel %vm649_vm7, %v1571_v4, %v4363_v5  ;;  %v1579_v36 = vsel %vm649_vm7, %v4387_v15, %v1571_v4  ;;  %v1589_v61 = vmul.f32 %v4803_v49, %v1576_v10  ;;  %v4854_v5 = vld [vmem:[%s5749_s1 + $0x180] sm:$0xff]  ;;  %v1605_v46 = vpop.permute.xlu1 %1604  ;;  %1743 = vmatprep.subr.bf16.mxu0 %v1559_v32  ;;  %v1891_v15 = vmul.f32 %v4429_v17, %v4705_v59  ;;  %v4861_v4 = vld [vmem:[%s5749_s1 + $0x188] sm:$0xff]  ;;  %v4872_v10 = vld [vmem:[%s5749_s1 + $0x198] sm:$0xff] }
 0x447   : > { %v1591_v29 = vmul.f32 %v4814_v43, %v1579_v36  ;;  %v1592_v16 = vmul.f32 %v4819_v53, %v1577_v56  ;;  %v1612_v56 = vsel %vm686_vm8, %v1605_v46, %v5966_v1  ;;  %v4877_v17 = vld [vmem:[%s5749_s1 + $0x1a0] sm:$0xff]  ;;  %v1596_v59 = vpack.c.bf16 %v1593_v19, %v1590_v30 }
 0x448   : > { %1805 = vmatpush1.bf16.msra.mxu1 %v1560_v25  ;;  %v1614_v25 = vsel %vm686_vm8, %v4389_v0, %v1605_v46  ;;  %v1629_v1 = vmul.f32 %v4830_v48, %v1617_v8  ;;  %v1607_v36 = vpop.permute.xlu0 %1606  ;;  %v1626_v0 = vmul.f32 %v4846_v27, %v1616_v24  ;;  %v1625_v49 = vmul.f32 %v4861_v4, %v1612_v56 }
 0x449   : > { %1744 = vmatpush1.bf16.msra.mxu0 %v1558_v45  ;;  %1806 = vmatprep.subr.bf16.mxu1 %v5862_v57  ;;  %v1594_v32 = vpack.c.bf16 %v1591_v29, %v1588_v63  ;;  %v1595_v23 = vpack.c.bf16 %v1592_v16, %v1589_v61  ;;  %v1624_v45 = vmul.f32 %v4854_v5, %v1614_v25  ;;  %v5973_v25 = vld [vmem:[#allocation38_spill] sm:$0xff] }
 0x44a   : > { %v1613_v46 = vsel %vm686_vm8, %v1607_v36, %v5968_v21  ;;  %v1615_v43 = vsel %vm686_vm8, %v5967_v28, %v1607_v36  ;;  %v4892_v16 = vpop.permute.xlu1 %2013  ;;  %v1875_v19 = vsel %vm421_vm1, %v4254_v12, %v4168_v42  ;;  %v1888_v24 = vmul.f32 %v4416_v35, %v4693_v26  ;;  %v5969_v21 = vld [vmem:[#allocation11_spill] sm:$0xff]  ;;  %v5970_v28 = vld [vmem:[#allocation12_spill] sm:$0xff] }
 0x44b   : > { %v1627_v30 = vmul.f32 %v4872_v10, %v1615_v43  ;;  %v1628_v8 = vmul.f32 %v4877_v17, %v1613_v46  ;;  %1745 = vmatprep.subr.bf16.mxu0 %v1595_v23  ;;  %v1914_v63 = vsel %vm458_vm2, %v5970_v28, %v5969_v21  ;;  %v1892_v43 = vmul.f32 %v4434_v37, %v4699_v40  ;;  %v5971_v42 = vld [vmem:[#allocation20_spill] sm:$0xff]  ;;  %v5976_v46 = vld [vmem:[#allocation9_spill] sm:$0xff] }
 0x44c   : > { %1807 = vmatpush1.bf16.msra.mxu1 %v1596_v59  ;;  %v1632_v23 = vpack.c.bf16 %v1629_v1, %v1626_v0  ;;  %v4907_v29 = vpop.permute.xlu0 %2015  ;;  %v1887_v12 = vmul.f32 %v5971_v42, %v4620_v54  ;;  %v5972_v35 = vld [vmem:[#allocation36_spill] sm:$0xff]  ;;  %v1913_v59 = vsel %vm458_vm2, %v4224_v2, %v5973_v25  ;;  %v5974_v54 = vld [vmem:[#allocation19_spill] sm:$0xff]  ;;  %v1927_v1 = vmul.f32 %v4483_v14, %v1914_v63 }
 0x44d   : > { %1746 = vmatpush1.bf16.msra.mxu0 %v1594_v32  ;;  %1808 = vmatprep.subr.bf16.mxu1 %v5862_v57  ;;  %v1630_v61 = vpack.c.bf16 %v1627_v30, %v1624_v45  ;;  %v1631_v56 = vpack.c.bf16 %v1628_v8, %v1625_v49  ;;  %v1916_v26 = vsel %vm458_vm2, %v5972_v35, %v5970_v28  ;;  %v3014_v40 = vld [vmem:[%s5754_s6] ss:$8 sps:$4 sm:$0xff]  }
 0x44e   : > { %v1912_v37 = vsel %vm458_vm2, %v5969_v21, %v5972_v35  ;;  %v1889_v49 = vmul.f32 %v5974_v54, %v1875_v19  ;;  %v4928_v32 = vpop.permute.xlu1 %2053  ;;  %v1894_v36 = vpack.c.bf16 %v1891_v15, %v1888_v24  ;;  %v5975_v2 = vld [vmem:[#allocation24_spill] sm:$0xff]  ;;  %v1911_v45 = vsel %vm458_vm2, %v5973_v25, %v4178_v52  ;;  %v3015_v52 = vld [vmem:[%s5754_s6 + $0x14] ss:$8 sps:$4 sm:$0xff]   ;;  %v5978_v21 = vld [vmem:[#allocation23_spill] sm:$0xff] }
 0x44f   : > { %1747 = vmatprep.subr.bf16.mxu0 %v1631_v56  ;;  %v1923_v0 = vmul.f32 %v5975_v2, %v4640_v38  ;;  %v5977_v30 = vld [vmem:[#allocation40_spill] sm:$0xff]  ;;  %v1893_v14 = vpack.c.bf16 %v4634_v50, %v1887_v12  ;;  %v1924_v15 = vmul.f32 %v4468_v41, %v1913_v59  ;;  %v1928_v38 = vmul.f32 %v4488_v6, %v1912_v37  ;;  %v5982_v35 = vld [vmem:[#allocation6_spill] sm:$0xff]  ;;  %v5984_v37 = vld [vmem:[#allocation41_spill] sm:$0xff] }
 0x450   : > { %1809 = vmatpush1.bf16.msra.mxu1 %v1632_v23  ;;  %v1950_v8 = vsel %vm495_vm3, %v5977_v30, %v5976_v46  ;;  %v1895_v19 = vpack.c.bf16 %v1892_v43, %v1889_v49  ;;  %v4944_v24 = vpop.permute.xlu0 %2055  ;;  %v1926_v28 = vmul.f32 %v5978_v21, %v1916_v26  ;;  %v5979_v63 = vld [vmem:[#allocation4_spill] sm:$0xff]  ;;  %v5981_v43 = vld [vmem:[#allocation10_spill] sm:$0xff]  ;;  %v5985_v2 = vld [vmem:[#allocation7_spill] sm:$0xff] }
 0x451   : > { %1748 = vmatpush1.bf16.msra.mxu0 %v1630_v61  ;;  %2255 = vmatprep.subr.bf16.mxu1 %v5862_v57  ;;  %v1952_v23 = vsel %vm495_vm3, %v5979_v63, %v5977_v30  ;;  %v5980_v50 = vld [vmem:[#allocation8_spill] sm:$0xff]  ;;  %v1948_v6 = vsel %vm495_vm3, %v5976_v46, %v5979_v63  ;;  %v1925_v61 = vmul.f32 %v4478_v34, %v1911_v45  ;;  %v5986_v45 = vld [vmem:[#allocation37_spill] sm:$0xff]  ;;  %v5987_v30 = vld [vmem:[#allocation3_spill] sm:$0xff] }
 0x452   : > { %2212 = vmatprep.subr.bf16.mxu0 %v1894_v36  ;;  %v1949_v41 = vsel %vm495_vm3, %v5981_v43, %v5980_v50  ;;  %v1963_v56 = vmul.f32 %v4535_v55, %v1950_v8  ;;  %v4964_v42 = vpop.permute.xlu1 %2057  ;;  %v1930_v12 = vpack.c.bf16 %v1927_v1, %v1924_v15  ;;  %v1951_v26 = vsel %vm495_vm3, %v5982_v35, %v5981_v43  ;;  %v5983_v59 = vld [vmem:[#allocation16_spill] sm:$0xff]  ;;  %v5988_v8 = vld [vmem:[#allocation22_spill] sm:$0xff]  ;;  %v5989_v21 = vld [vmem:[#allocation21_spill] sm:$0xff] }
 0x453   : > { %1825 = vmatmul.mubr.bf16.vlgmr.msra.gmra.mrb[12].mxu1 %v3014_v40  ;;  %v1947_v25 = vsel %vm495_vm3, %v5980_v50, %v5982_v35  ;;  %v1986_v34 = vsel %vm532_vm4, %v5984_v37, %v5983_v59  ;;  %v1931_v55 = vpack.c.bf16 %v1928_v38, %v1925_v61  ;;  %v1964_v54 = vmul.f32 %v4540_v22, %v1948_v6  ;;  %v3017_v22 = vld [vmem:[%s5754_s6 + $0x10] ss:$8 sps:$4 sm:$0xff]  }
 0x454   : > { %2256 = vmatpush1.bf16.msra.mxu1 %v1895_v19  ;;  %1764 = vmatmul.mubr.bf16.vlgmr.msra.gmra.mrb[12].mxu0 %v3014_v40  ;;  %v1960_v40 = vmul.f32 %v4523_v18, %v1949_v41  ;;  %v4981_v49 = vpop.permute.xlu0 %2059  ;;  %v1929_v1 = vpack.c.bf16 %v1926_v28, %v1923_v0  ;;  %v1962_v36 = vmul.f32 %v4511_v7, %v1952_v23  ;;  %v1640_v7 = vld [vmem:[%s5754_s6 + $0x20] sm:$0xff] }
 0x455   : > { %2213 = vmatpush1.bf16.msra.mxu0 %v1893_v14  ;;  %2257 = vmatprep.subr.bf16.mxu1 %v5862_v57  ;;  %v1985_v46 = vsel %vm532_vm4, %v5986_v45, %v5985_v2  ;;  %v1984_v18 = vsel %vm532_vm4, %v5983_v59, %v5987_v30  ;;  %v1988_v0 = vsel %vm532_vm4, %v5987_v30, %v5984_v37 }
 0x456   : > { %2214 = vmatprep.subr.bf16.mxu0 %v1930_v12  ;;  %2957 = vmatprep.mubr.msk.bf16.mxu1 %vm784_vm0, %v3015_v52  ;;  %v1961_v14 = vmul.f32 %v5988_v8, %v1947_v25  ;;  %v1999_v19 = vmul.f32 %v4589_v60, %v1986_v34  ;;  %v5006_v15 = vpop.permute.xlu1 %2049  ;;  %v1966_v38 = vpack.c.bf16 %v1963_v56, %v1960_v40  ;;  %v5991_v12 = vld [vmem:[#allocation17_spill] sm:$0xff] }
 0x457   : > { %2954 = vmatprep.mubr.msk.bf16.mxu0 %vm784_vm0, %v3015_v52  ;;  %v1959_v28 = vmul.f32 %v5989_v21, %v1951_v26  ;;  %v5990_v52 = vld [vmem:[#allocation5_spill] sm:$0xff]  ;;  %v1996_v50 = vmul.f32 %v4575_v62, %v1985_v46  ;;  %v2000_v43 = vmul.f32 %v4594_v58, %v1984_v18  ;;  %v2952_v6 = vcombine.high %v1640_v7, %v1640_v7  ;;  %v5992_v26 = vld [vmem:[#allocation30_spill] sm:$0xff]  ;;  %v5996_v18 = vld [vmem:[#allocation28_spill] sm:$0xff] }
 0x458   : > { %2258 = vmatpush1.bf16.msra.mxu1 %v1931_v55  ;;  %v1987_v63 = vsel %vm532_vm4, %v5990_v52, %v5986_v45  ;;  %v1983_v23 = vsel %vm532_vm4, %v5985_v2, %v5990_v52  ;;  %v1967_v60 = vpack.c.bf16 %v1964_v54, %v1961_v14  ;;  %v2052_v41 = vpop.permute.xlu0 %2051  ;;  %v1998_v56 = vmul.f32 %v4570_v9, %v1988_v0  ;;  %v5993_v58 = vld [vmem:[#allocation34_spill] sm:$0xff]  ;;  %v5994_v34 = vld [vmem:[#allocation29_spill] sm:$0xff]  ;;  %v5998_v14 = vld [vmem:[#allocation35_spill] sm:$0xff] }
 0x459   : > { %2215 = vmatpush1.bf16.msra.mxu0 %v1929_v1  ;;  %2259 = vmatprep.subr.bf16.mxu1 %v5862_v57  ;;  %v1965_v61 = vpack.c.bf16 %v1962_v36, %v1959_v28  ;;  %v2026_v35 = vsel %vm575_vm5, %v5991_v12, %v4631_v51  ;;  %v1997_v25 = vmul.f32 %v5992_v26, %v1983_v23  ;;  %v5995_v55 = vld [vmem:[#allocation18_spill] sm:$0xff]  ;;  %v6001_v28 = vld [vmem:[#allocation27_spill] sm:$0xff] }
 0x45a   : > { %2216 = vmatprep.subr.bf16.mxu0 %v1966_v38  ;;  %v5026_v59 = vpop.permute.xlu1 %2089  ;;  %v2002_v62 = vpack.c.bf16 %v1999_v19, %v1996_v50  ;;  %v1995_v37 = vmul.f32 %v5993_v58, %v1987_v63  ;;  %v2025_v9 = vsel %vm575_vm5, %v5995_v55, %v5994_v34  ;;  %v2041_v54 = vmul.f32 %v4720_v39, %v2026_v35  ;;  %v5999_v19 = vld [vmem:[#allocation25_spill] sm:$0xff]  ;;  %v6000_v21 = vld [vmem:[#allocation26_spill] sm:$0xff] }
 0x45b   : > { %1833 = vmatmul.mubr.bf16.gmra.mrb[16].mxu1 %v3017_v22  ;;  %v2003_v40 = vpack.c.bf16 %v2000_v43, %v1997_v25  ;;  %v2030_v1 = vsel %vm575_vm5, %v4631_v51, %v4907_v29  ;;  %v2951_v45 = vcombine.low %v1640_v7, %v1640_v7  ;;  %v2038_v46 = vmul.f32 %v4715_v33, %v2025_v9  ;;  %v6004_v58 = vld [vmem:[#allocation33_spill] sm:$0xff] }
 0x45c   : > { %2260 = vmatpush1.bf16.msra.mxu1 %v1967_v60  ;;  %1774 = vmatmul.mubr.bf16.gmra.mrb[16].mxu0 %v3017_v22  ;;  %v2092_v36 = vpop.permute.xlu0 %2091  ;;  %v2001_v2 = vpack.c.bf16 %v1998_v56, %v1995_v37  ;;  %v2029_v39 = vsel %vm575_vm5, %v5994_v34, %v4892_v16  ;;  %v2028_v51 = vsel %vm575_vm5, %v4907_v29, %v5991_v12  ;;  %v5997_v22 = vld [vmem:[#allocation39_spill] sm:$0xff] }
 0x45d   : > { %2217 = vmatpush1.bf16.msra.mxu0 %v1965_v61  ;;  %2261 = vmatprep.subr.bf16.mxu1 %v5862_v57  ;;  %v2008_v0 = vpack.c.bf16 %v5997_v22, %v5996_v18  ;;  %v2027_v33 = vsel %vm575_vm5, %v4892_v16, %v5995_v55  ;;  %v2042_v7 = vmul.f32 %v2030_v1, %v4625_v3  ;;  %v3022_v3 = vld [vmem:[%s5752_s4 + $0x14] ss:$8 sps:$4 sm:$0xff]   ;;  %v6002_v16 = vld [vmem:[#allocation31_spill] sm:$0xff] }
 0x45e   : > { %2218 = vmatprep.subr.bf16.mxu0 %v2002_v62  ;;  %2958 = vmatprep.mubr.msk.bf16.mxu1 %vm784_vm0, %v2952_v6  ;;  %v2094_v30 = vpop.permute.xlu1 %2093  ;;  %v2062_v8 = vsel %vm612_vm6, %v4944_v24, %v4981_v49  ;;  %v2009_v38 = vpack.c.bf16 %v5999_v19, %v5998_v14  ;;  %v2007_v52 = vpack.c.bf16 %v6001_v28, %v6000_v21  ;;  %v6006_v1 = vld [vmem:[#allocation46_spill] sm:$0xff]  ;;  %v6009_v22 = vld [vmem:[#allocation43_spill] sm:$0xff] }
 0x45f   : > { %2955 = vmatprep.mubr.msk.bf16.mxu0 %vm784_vm0, %v2952_v6  ;;  %v2044_v63 = vpack.c.bf16 %v2041_v54, %v2038_v46  ;;  %v2039_v23 = vmul.f32 %v2029_v39, %v6002_v16  ;;  %v2040_v60 = vmul.f32 %v2028_v51, %v4686_v20  ;;  %v2061_v50 = vsel %vm612_vm6, %v4928_v32, %v4964_v42  ;;  %v6008_v51 = vld [vmem:[#allocation47_spill] sm:$0xff] }
 0x460   : > { %2262 = vmatpush1.bf16.msra.mxu1 %v2003_v40  ;;  %v2096_v29 = vpop.permute.xlu0 %2095  ;;  %v2066_v43 = vsel %vm612_vm6, %v4981_v49, %v2052_v41  ;;  %v2037_v6 = vmul.f32 %v2027_v33, %v4675_v13  ;;  %v2077_v61 = vmul.f32 %v2062_v8, %v4762_v31  ;;  %v2064_v56 = vsel %vm612_vm6, %v2052_v41, %v4944_v24  ;;  %v6003_v24 = vld [vmem:[#allocation32_spill] sm:$0xff] }
 0x461   : > { %2219 = vmatpush1.bf16.msra.mxu0 %v2001_v2  ;;  %2263 = vmatprep.subr.bf16.mxu1 %v5862_v57  ;;  %v2045_v12 = vpack.c.bf16 %v2042_v7, %v2039_v23  ;;  %v2065_v35 = vsel %vm612_vm6, %v4964_v42, %v5006_v15  ;;  %v2098_v49 = vsel %vm649_vm7, %v2092_v36, %v2096_v29  ;;  %v6010_v7 = vld [vmem:[#allocation45_spill] sm:$0xff] }
 0x462   : > { %2220 = vmatprep.subr.bf16.mxu0 %v2008_v0  ;;  %v2086_v20 = vpop.permute.xlu1 %2085  ;;  %v2074_v13 = vmul.f32 %v2061_v50, %v4743_v44  ;;  %v2063_v31 = vsel %vm612_vm6, %v5006_v15, %v4928_v32  ;;  %v2078_v41 = vmul.f32 %v2066_v43, %v6003_v24  ;;  %v2043_v42 = vpack.c.bf16 %v2040_v60, %v2037_v6 }
 0x463   : > { %1841 = vmatmul.mubr.bf16.gmra.mrb[20].mxu1 %v2951_v45  ;;  %v2076_v25 = vmul.f32 %v2064_v56, %v4757_v47  ;;  %v2097_v62 = vsel %vm649_vm7, %v5026_v59, %v2094_v30  ;;  %v2075_v32 = vmul.f32 %v2065_v35, %v6004_v58  ;;  %v2113_v15 = vmul.f32 %v2098_v49, %v4819_v53  ;;  %v6005_v47 = vld [vmem:[#allocation42_spill] sm:$0xff] }
 0x464   : > { %2264 = vmatpush1.bf16.msra.mxu1 %v2009_v38  ;;  %1784 = vmatmul.mubr.bf16.gmra.mrb[20].mxu0 %v2951_v45  ;;  %v2088_v26 = vpop.permute.xlu0 %2087  ;;  %v2080_v55 = vpack.c.bf16 %v2077_v61, %v2074_v13  ;;  %v2073_v9 = vmul.f32 %v2063_v31, %v6005_v47  ;;  %v2101_v40 = vsel %vm649_vm7, %v2094_v30, %v2086_v20  ;;  %v6007_v45 = vld [vmem:[#allocation44_spill] sm:$0xff] }
 0x465   : > { %2221 = vmatpush1.bf16.msra.mxu0 %v2007_v52  ;;  %2265 = vmatprep.subr.bf16.mxu1 %v5862_v57  ;;  %v2102_v44 = vsel %vm649_vm7, %v2096_v29, %v2088_v26  ;;  %v2100_v37 = vsel %vm649_vm7, %v2088_v26, %v2092_v36  ;;  %v2081_v54 = vpack.c.bf16 %v2078_v41, %v2075_v32 }
 0x466   : > { %2222 = vmatprep.subr.bf16.mxu0 %v2044_v63  ;;  %2965 = vmatprep.mubr.msk.bf16.mxu0 %vm784_vm0, %v3022_v3  ;;  %v2126_v34 = vpop.permute.xlu1 %2125  ;;  %v2110_v2 = vmul.f32 %v2097_v62, %v6006_v1  ;;  %v2099_v53 = vsel %vm649_vm7, %v2086_v20, %v5026_v59  ;;  %v2114_v36 = vmul.f32 %v2102_v44, %v6007_v45  ;;  %v3020_v20 = vld [vmem:[%s5752_s4 + $0x10] ss:$8 sps:$4 sm:$0xff]  }
 0x467   : > { %2966 = vmatprep.mubr.msk.bf16.mxu1 %vm784_vm0, %v3022_v3  ;;  %v2079_v39 = vpack.c.bf16 %v2076_v25, %v2073_v9  ;;  %v2112_v18 = vmul.f32 %v2100_v37, %v6008_v51  ;;  %v2111_v0 = vmul.f32 %v2101_v40, %v6009_v22  ;;  %v2109_v8 = vmul.f32 %v2099_v53, %v6010_v7 }
 0x468   : > { %2266 = vmatpush1.bf16.msra.mxu1 %v2045_v12  ;;  %v2128_v46 = vpop.permute.xlu0 %2127  ;;  %v2116_v33 = vpack.c.bf16 %v2113_v15, %v2110_v2 }
 0x469   : > { %2223 = vmatpush1.bf16.msra.mxu0 %v2043_v42  ;;  %2267 = vmatprep.subr.bf16.mxu1 %v5862_v57  ;;  %v2117_v59 = vpack.c.bf16 %v2114_v36, %v2111_v0  ;;  %v2115_v19 = vpack.c.bf16 %v2112_v18, %v2109_v8 }
 0x46a   : > { %2224 = vmatprep.subr.bf16.mxu0 %v2080_v55  ;;  %v2130_v30 = vpop.permute.xlu1 %2129 }
 0x46b   : > { %v2133_v29 = vsel %vm686_vm8, %v2126_v34, %v2130_v30 }
 0x46c   : > { %2268 = vmatpush1.bf16.msra.mxu1 %v2081_v54  ;;  %v2132_v14 = vpop.permute.xlu0 %2131  ;;  %v2146_v21 = vmul.f32 %v2133_v29, %v4861_v4 }
 0x46d   : > { %2225 = vmatpush1.bf16.msra.mxu0 %v2079_v39  ;;  %2269 = vmatprep.subr.bf16.mxu1 %v5862_v57  ;;  %v2134_v38 = vsel %vm686_vm8, %v2128_v46, %v2132_v14 }
 0x46e   : > { %2226 = vmatprep.subr.bf16.mxu0 %v2116_v33  ;;  %v2149_v28 = vmul.f32 %v2134_v38, %v4877_v17  ;;  %v2122_v52 = vpop.permute.xlu1 %2121 }
 0x46f   : > { %v2135_v63 = vsel %vm686_vm8, %v2122_v52, %v2126_v34  ;;  %v2137_v3 = vsel %vm686_vm8, %v2130_v30, %v2122_v52  ;;  %v1642_v52 = vld [vmem:[%s5755_s7 + $0x8] sm:$0xff] }
 0x470   : > { %2270 = vmatpush1.bf16.msra.mxu1 %v2117_v59  ;;  %v2124_v16 = vpop.permute.xlu0 %2123  ;;  %v2152_v23 = vpack.c.bf16 %v2149_v28, %v2146_v21  ;;  %v2145_v17 = vmul.f32 %v2135_v63, %v4854_v5  ;;  %v2147_v50 = vmul.f32 %v2137_v3, %v4846_v27  ;;  %v3023_v21 = vld [vmem:[%s5756_s8 + $0x4] ss:$8 sps:$4 sm:$0xff]   ;;  %v1643_v63 = vld [vmem:[%s5755_s7 + $0x10] sm:$0xff]  ;;  %v1644_v3 = vld [vmem:[%s5755_s7 + $0x18] sm:$0xff] }
 0x471   : > { %2227 = vmatpush1.bf16.msra.mxu0 %v2115_v19  ;;  %2271 = vmatprep.subr.bf16.mxu1 %v5862_v57  ;;  %v2136_v60 = vsel %vm686_vm8, %v2124_v16, %v2128_v46  ;;  %v2138_v4 = vsel %vm686_vm8, %v2132_v14, %v2124_v16  ;;  %v1641_v28 = vld [vmem:[%s5755_s7] sm:$0xff] }
 0x472   : > { %v2148_v43 = vmul.f32 %v2136_v60, %v4872_v10  ;;  %v2150_v6 = vmul.f32 %v2138_v4, %v4830_v48  ;;  %2228 = vmatprep.subr.bf16.mxu0 %v2152_v23  ;;  %v1645_v16 = vld [vmem:[%s5755_s7 + $0x20] sm:$0xff]  ;;  %v2603_v60 = vld [vmem:[%s5757_s9 + $0x8] sm:$0xff]  ;;  %v2604_v4 = vld [vmem:[%s5757_s9 + $0x10] sm:$0xff] }
 0x473   : > { %v2602_v23 = vld [vmem:[%s5757_s9] sm:$0xff] }
 0x474   : > { %v2151_v61 = vpack.c.bf16 %v2148_v43, %v2145_v17  ;;  %v2153_v56 = vpack.c.bf16 %v2150_v6, %v2147_v50  ;;  %v2605_v17 = vld [vmem:[%s5757_s9 + $0x18] sm:$0xff]  ;;  %v2606_v50 = vld [vmem:[%s5757_s9 + $0x20] sm:$0xff]  ;;  %v2607_v43 = vld [vmem:[%s5757_s9 + $0x28] sm:$0xff] }
 0x476   : > { %2229 = vmatpush1.bf16.msra.mxu0 %v2151_v61  ;;  %2272 = vmatpush1.bf16.msra.mxu1 %v2153_v56 }
 0x477   : > { %2764 = vmatprep.subr.bf16.mxu1 %v5862_v57 }
 0x479   : > { %2245 = vmatmul.mubr.bf16.vlgmr.msra.gmra.mrb[24].mxu0 %v3020_v20  ;;  %2288 = vmatmul.mubr.bf16.vlgmr.msra.gmra.mrb[24].mxu1 %v3020_v20 }
 0x47a   : > { %2973 = vmatprep.mubr.msk.bf16.mxu0 %vm784_vm0, %v3023_v21  ;;  %2976 = vmatprep.mubr.msk.bf16.mxu1 %vm784_vm0, %v3023_v21 }
 0x47f   : > { %v2193_v40 = vpop.permute.xlu1 %2192 }
 0x481   : > { %v2198_v54 = vpop.permute.xlu0 %2197 }
 0x526   : > { %v5144_v5 = vpop.f32.mrb[12].mxu1 }
 0x527   : > { %v1828_v27 = vpop.f32.mrb[13].mxu1  ;;  %v5146_v12 = vpop.f32.mrb[12].mxu0 }
 0x528   : > { %v5148_v10 = vpop.f32.mrb[14].mxu1  ;;  %v5150_v48 = vpop.f32.mrb[13].mxu0 }
 0x529   : > { %v1831_v35 = vpop.f32.mrb[15].mxu1  ;;  %v5152_v49 = vpop.f32.mrb[14].mxu0 }
 0x52a   : > { %v5154_v13 = vpop.f32.mrb[15].mxu0 }
 0x52e   : > { %v5156_v31 = vpop.f32.mrb[16].mxu1 }
 0x52f   : > { %6011 = vst [vmem:[#allocation14_spill] sm:$0xff] %v5156_v31  ;;  %v1836_v24 = vpop.f32.mrb[17].mxu1  ;;  %v5158_v41 = vpop.f32.mrb[16].mxu0 }
 0x530   : > { %6012 = vst [vmem:[#allocation13_spill] sm:$0xff] %v5158_v41  ;;  %v5160_v26 = vpop.f32.mrb[18].mxu1  ;;  %v5162_v42 = vpop.f32.mrb[17].mxu0  ;;  %v2358_v41 = vld [vmem:[%s5749_s1 + $0x40] sm:$0xff] }
 0x531   : > { %6013 = vst [vmem:[#allocation15_spill] sm:$0xff] %v5160_v26  ;;  %6014 = vst [vmem:[#allocation11_spill] sm:$0xff] %v5162_v42  ;;  %v1839_v25 = vpop.f32.mrb[19].mxu1  ;;  %v5164_v62 = vpop.f32.mrb[18].mxu0 }
 0x532   : > { %6015 = vst [vmem:[#allocation12_spill] sm:$0xff] %v5164_v62  ;;  %v5166_v44 = vpop.f32.mrb[19].mxu0 }
 0x533   : > { %6016 = vst [vmem:[#allocation20_spill] sm:$0xff] %v5166_v44 }
 0x536   : > { %v5168_v58 = vpop.f32.mrb[20].mxu1 }
 0x537   : > { %6017 = vst [vmem:[#allocation36_spill] sm:$0xff] %v5168_v58  ;;  %v1844_v32 = vpop.f32.mrb[21].mxu1  ;;  %v5170_v15 = vpop.f32.mrb[20].mxu0 }
 0x538   : > { %6018 = vst [vmem:[#allocation38_spill] sm:$0xff] %v5170_v15  ;;  %v1845_v37 = vpop.f32.mrb[22].mxu1  ;;  %v5172_v34 = vpop.f32.mrb[21].mxu0 }
 0x539   : > { %6019 = vst [vmem:[#allocation19_spill] sm:$0xff] %v5172_v34  ;;  %v1846_v55 = vpop.f32.mrb[23].mxu1  ;;  %v1789_v47 = vpop.f32.mrb[22].mxu0 }
 0x53a   : > { %v1790_v9 = vpop.f32.mrb[23].mxu0 }
 0x54c   : > { %v2246_v1 = vpop.f32.mrb[24].mxu0  ;;  %v2289_v2 = vpop.f32.mrb[24].mxu1 }
 0x54d   : > { %v2290_v53 = vadd.f32 %v2289_v2, %v2193_v40  ;;  %v2248_v45 = vpop.f32.mrb[25].mxu0  ;;  %v2291_v36 = vpop.f32.mrb[25].mxu1  ;;  %v2247_v33 = vadd.f32 %v2246_v1, %v2193_v40 }
 0x54e   : > { %v2250_v46 = vpop.f32.mrb[26].mxu0  ;;  %v2292_v39 = vpop.f32.mrb[26].mxu1  ;;  %v2249_v59 = vadd.f32 %v2248_v45, %v2193_v40 }
 0x54f   : > { %v5174_v51 = vmax.f32 %v2290_v53, 0.0  ;;  %v2293_v18 = vadd.f32 %v2292_v39, %v2198_v54  ;;  %v2252_v22 = vpop.f32.mrb[27].mxu0  ;;  %v2294_v0 = vpop.f32.mrb[27].mxu1  ;;  %v2251_v7 = vadd.f32 %v2250_v46, %v2198_v54  ;;  %v5204_v8 = vmax.f32 %v2247_v33, 0.0 }
 0x550   : > { %v2253_v14 = vadd.f32 %v2252_v22, %v2198_v54  ;;  %v5236_v19 = vmax.f32 %v2249_v59, 0.0  ;;  %v2323_v59 = vld [vmem:[%s5749_s1 + $0x18] sm:$0xff] }
 0x551   : > { %v5176_v30 = vmax.f32 %v2293_v18, 0.0  ;;  %2310 = vrot.lane.b32.xlu1 %v5174_v51, %s3041_s23  ;;  %v5208_v29 = vmax.f32 %v2251_v7, 0.0 }
 0x552   : > { %v5240_v38 = vmax.f32 %v2253_v14, 0.0 }
 0x553   : > { %2312 = vrot.lane.b32.xlu0 %v5176_v30, %s3041_s23 }
 0x555   : > { %2346 = vrot.lane.b32.xlu1 %v5174_v51, %s3042_s24 }
 0x557   : > { %2348 = vrot.lane.b32.xlu0 %v5176_v30, %s3042_s24 }
 0x559   : > { %2382 = vrot.lane.b32.xlu1 %v5174_v51, %s3043_s25 }
 0x55b   : > { %2384 = vrot.lane.b32.xlu0 %v5176_v30, %s3043_s25 }
 0x55d   : > { %2418 = vrot.lane.b32.xlu1 %v5174_v51, %s3044_s26 }
 0x55f   : > { %2420 = vrot.lane.b32.xlu0 %v5176_v30, %s3044_s26 }
 0x561   : > { %2460 = vrot.lane.b32.xlu1 %v5174_v51, %s3045_s27 }
 0x563   : > { %2462 = vrot.lane.b32.xlu0 %v5176_v30, %s3045_s27 }
 0x565   : > { %2496 = vrot.lane.b32.xlu1 %v5174_v51, %s3046_s28 }
 0x567   : > { %2498 = vrot.lane.b32.xlu0 %v5176_v30, %s3046_s28 }
 0x569   : > { %2532 = vrot.lane.b32.xlu1 %v5174_v51, %s3047_s29 }
 0x56b   : > { %2534 = vrot.lane.b32.xlu0 %v5176_v30, %s3047_s29 }
 0x56d   : > { %2302 = vrot.lane.b32.xlu1 %v5204_v8, %s3041_s23 }
 0x56f   : > { %2304 = vrot.lane.b32.xlu0 %v5208_v29, %s3041_s23 }
 0x571   : > { %2338 = vrot.lane.b32.xlu1 %v5204_v8, %s3042_s24 }
 0x573   : > { %2340 = vrot.lane.b32.xlu0 %v5208_v29, %s3042_s24 }
 0x575   : > { %2374 = vrot.lane.b32.xlu1 %v5204_v8, %s3043_s25 }
 0x577   : > { %2376 = vrot.lane.b32.xlu0 %v5208_v29, %s3043_s25 }
 0x579   : > { %2410 = vrot.lane.b32.xlu1 %v5204_v8, %s3044_s26 }
 0x57b   : > { %2412 = vrot.lane.b32.xlu0 %v5208_v29, %s3044_s26 }
 0x57d   : > { %2452 = vrot.lane.b32.xlu1 %v5204_v8, %s3045_s27 }
 0x57f   : > { %2454 = vrot.lane.b32.xlu0 %v5208_v29, %s3045_s27 }
 0x581   : > { %2488 = vrot.lane.b32.xlu1 %v5204_v8, %s3046_s28 }
 0x583   : > { %2490 = vrot.lane.b32.xlu0 %v5208_v29, %s3046_s28 }
 0x585   : > { %2524 = vrot.lane.b32.xlu1 %v5204_v8, %s3047_s29 }
 0x587   : > { %2526 = vrot.lane.b32.xlu0 %v5208_v29, %s3047_s29 }
 0x589   : > { %2306 = vrot.lane.b32.xlu1 %v5236_v19, %s3041_s23 }
 0x58b   : > { %2308 = vrot.lane.b32.xlu0 %v5240_v38, %s3041_s23 }
 0x58d   : > { %2342 = vrot.lane.b32.xlu1 %v5236_v19, %s3042_s24 }
 0x58f   : > { %2344 = vrot.lane.b32.xlu0 %v5240_v38, %s3042_s24  ;;  %s5725_s24 = scalar_lea.vmem %s5759_s11, %s2983_s21 }
 0x591   : > { %2378 = vrot.lane.b32.xlu1 %v5236_v19, %s3043_s25 }
 0x593   : > { %2380 = vrot.lane.b32.xlu0 %v5240_v38, %s3043_s25 }
 0x595   : > { %2414 = vrot.lane.b32.xlu1 %v5236_v19, %s3044_s26 }
 0x597   : > { %2416 = vrot.lane.b32.xlu0 %v5240_v38, %s3044_s26 }
 0x599   : > { %2568 = vrot.lane.b32.xlu1 %v5174_v51, %s3048_s30 }
 0x59b   : > { %2570 = vrot.lane.b32.xlu0 %v5176_v30, %s3048_s30 }
 0x59d   : > { %2456 = vrot.lane.b32.xlu1 %v5236_v19, %s3045_s27 }
 0x59f   : > { %2458 = vrot.lane.b32.xlu0 %v5240_v38, %s3045_s27 }
 0x5a1   : > { %2492 = vrot.lane.b32.xlu1 %v5236_v19, %s3046_s28 }
 0x5a3   : > { %2494 = vrot.lane.b32.xlu0 %v5240_v38, %s3046_s28  ;;  %s2982_s28 = smul.u32 120, %s6030_s18 }
 0x5a5   : > { %2528 = vrot.lane.b32.xlu1 %v5236_v19, %s3047_s29 }
 0x5a7   : > { %2530 = vrot.lane.b32.xlu0 %v5240_v38, %s3047_s29 }
 0x5a9   : > { %2564 = vrot.lane.b32.xlu1 %v5236_v19, %s3048_s30 }
 0x5ab   : > { %2566 = vrot.lane.b32.xlu0 %v5240_v38, %s3048_s30 }
 0x5ad   : > { %2560 = vrot.lane.b32.xlu1 %v5204_v8, %s3048_s30 }
 0x5af   : > { %2562 = vrot.lane.b32.xlu0 %v5208_v29, %s3048_s30  ;;  %s5684_s30 = scalar_lea.vmem %s5758_s10, %s2982_s28 }
 0x5b1   : > { %1675 = vperm.xlu1 %3002, %v1641_v28   ;;  %v2320_v28 = vld [vmem:[%s5749_s1] sm:$0xff] }
 0x5b3   : > { %1680 = vperm.xlu0 %3001, %v1642_v52  }
 0x5b5   : > { %1685 = vperm.xlu1 %3002, %v1643_v63   ;;  %v2321_v63 = vld [vmem:[%s5749_s1 + $0x8] sm:$0xff] }
 0x5b7   : > { %1690 = vperm.xlu0 %3001, %v1644_v3  }
 0x5b9   : > { %1695 = vperm.xlu1 %3002, %v1645_v16  }
 0x5bb   : > { %2637 = vperm.xlu0 %3001, %v2602_v23   ;;  %v2322_v23 = vld [vmem:[%s5749_s1 + $0x10] sm:$0xff] }
 0x5bd   : > { %2642 = vperm.xlu1 %3002, %v2603_v60  }
 0x5bf   : > { %2647 = vperm.xlu0 %3001, %v2604_v4  }
 0x5c1   : > { %2652 = vperm.xlu1 %3002, %v2605_v17   ;;  %v2324_v17 = vld [vmem:[%s5749_s1 + $0x20] sm:$0xff] }
 0x5c3   : > { %v2311_v6 = vpop.permute.xlu1 %2310  ;;  %2657 = vperm.xlu0 %3001, %v2606_v50   ;;  %v2325_v50 = vld [vmem:[%s5749_s1 + $0x28] sm:$0xff] }
 0x5c5   : > { %v2313_v61 = vpop.permute.xlu0 %2312  ;;  %2662 = vperm.xlu1 %3002, %v2607_v43   ;;  %v2359_v43 = vld [vmem:[%s5749_s1 + $0x48] sm:$0xff] }
 0x5c7   : > { %v2347_v56 = vpop.permute.xlu1 %2346 }
 0x5c9   : > { %v5320_v20 = vpop.permute.xlu0 %2348 }
 0x5cb   : > { %v5322_v27 = vpop.permute.xlu1 %2382 }
 0x5cd   : > { %v5324_v35 = vpop.permute.xlu0 %2384 }
 0x5cf   : > { %v5326_v24 = vpop.permute.xlu1 %2418 }
 0x5d1   : > { %v5328_v25 = vpop.permute.xlu0 %2420 }
 0x5d3   : > { %v5330_v32 = vpop.permute.xlu1 %2460 }
 0x5d5   : > { %v5332_v37 = vpop.permute.xlu0 %2462 }
 0x5d7   : > { %v5334_v55 = vpop.permute.xlu1 %2496 }
 0x5d9   : > { %v5336_v47 = vpop.permute.xlu0 %2498 }
 0x5db   : > { %v5338_v9 = vpop.permute.xlu1 %2532 }
 0x5dd   : > { %v5340_v40 = vpop.permute.xlu0 %2534 }
 0x5df   : > { %v2303_v54 = vpop.permute.xlu1 %2302 }
 0x5e0   : > { %v2318_v52 = vsel %vm421_vm1, %v2311_v6, %v2303_v54 }
 0x5e1   : > { %v2305_v1 = vpop.permute.xlu0 %2304 }
 0x5e2   : > { %v2319_v14 = vsel %vm421_vm1, %v2313_v61, %v2305_v1 }
 0x5e3   : > { %v2339_v2 = vpop.permute.xlu1 %2338  ;;  %v2329_v16 = vmul.f32 %v2323_v59, %v2319_v14  ;;  %v2326_v14 = vmul.f32 %v2320_v28, %v2318_v52  ;;  %v2357_v28 = vld [vmem:[%s5749_s1 + $0x38] sm:$0xff] }
 0x5e5   : > { %v2341_v53 = vpop.permute.xlu0 %2340  ;;  %v2332_v31 = vpack.c.bf16 %v2329_v16, %v2326_v14 }
 0x5e6   : > { %v2355_v59 = vsel %vm458_vm2, %v5320_v20, %v2341_v53 }
 0x5e7   : > { %v5342_v45 = vpop.permute.xlu1 %2374  ;;  %v2365_v42 = vmul.f32 %v2359_v43, %v2355_v59  ;;  %v2393_v59 = vld [vmem:[%s5749_s1 + $0x68] sm:$0xff] }
 0x5e8   : > { %v2390_v16 = vsel %vm495_vm3, %v5322_v27, %v5342_v45 }
 0x5e9   : > { %v5344_v36 = vpop.permute.xlu0 %2376 }
 0x5eb   : > { %v5346_v46 = vpop.permute.xlu1 %2410 }
 0x5ed   : > { %v5348_v39 = vpop.permute.xlu0 %2412 }
 0x5ef   : > { %v5350_v18 = vpop.permute.xlu1 %2452 }
 0x5f1   : > { %v5352_v22 = vpop.permute.xlu0 %2454 }
 0x5f3   : > { %v5354_v0 = vpop.permute.xlu1 %2488 }
 0x5f5   : > { %v5356_v33 = vpop.permute.xlu0 %2490 }
 0x5f7   : > { %v5358_v7 = vpop.permute.xlu1 %2524 }
 0x5f9   : > { %v5365_v21 = vpop.permute.xlu0 %2526 }
 0x5fb   : > { %v2307_v3 = vpop.permute.xlu1 %2306 }
 0x5fc   : > { %v2314_v60 = vsel %vm421_vm1, %v2307_v3, %v2311_v6  ;;  %v2316_v4 = vsel %vm421_vm1, %v2303_v54, %v2307_v3  ;;  %v2356_v54 = vld [vmem:[%s5749_s1 + $0x30] sm:$0xff]  ;;  %v2354_v3 = vsel %vm458_vm2, %v2347_v56, %v2339_v2 }
 0x5fd   : > { %v2309_v6 = vpop.permute.xlu0 %2308  ;;  %v2327_v15 = vmul.f32 %v2321_v63, %v2316_v4  ;;  %v2328_v26 = vmul.f32 %v2322_v23, %v2314_v60  ;;  %v2362_v63 = vmul.f32 %v2356_v54, %v2354_v3  ;;  %v2395_v4 = vld [vmem:[%s5749_s1 + $0x78] sm:$0xff]  ;;  %v2394_v54 = vld [vmem:[%s5749_s1 + $0x70] sm:$0xff] }
 0x5fe   : > { %v2315_v58 = vsel %vm421_vm1, %v2309_v6, %v2313_v61  ;;  %v2317_v34 = vsel %vm421_vm1, %v2305_v1, %v2309_v6 }
 0x5ff   : > { %v2330_v44 = vmul.f32 %v2324_v17, %v2317_v34  ;;  %v2331_v62 = vmul.f32 %v2325_v50, %v2315_v58  ;;  %v2343_v52 = vpop.permute.xlu1 %2342  ;;  %v2360_v58 = vld [vmem:[%s5749_s1 + $0x50] sm:$0xff]  ;;  %v2361_v34 = vld [vmem:[%s5749_s1 + $0x58] sm:$0xff]  ;;  %v2391_v17 = vsel %vm495_vm3, %v5324_v35, %v5344_v36  ;;  %v2368_v14 = vpack.c.bf16 %v2365_v42, %v2362_v63  ;;  %v2397_v42 = vld [vmem:[%s5749_s1 + $0x88] sm:$0xff] }
 0x600   : > { %v2350_v61 = vsel %vm458_vm2, %v2343_v52, %v2347_v56  ;;  %v2352_v1 = vsel %vm458_vm2, %v2339_v2, %v2343_v52  ;;  %v2392_v2 = vld [vmem:[%s5749_s1 + $0x60] sm:$0xff] }
 0x601   : > { %v2334_v23 = vpack.c.bf16 %v2331_v62, %v2328_v26  ;;  %v2345_v60 = vpop.permute.xlu0 %2344  ;;  %v2333_v56 = vpack.c.bf16 %v2330_v44, %v2327_v15  ;;  %v2363_v50 = vmul.f32 %v2357_v28, %v2352_v1  ;;  %v2364_v44 = vmul.f32 %v2358_v41, %v2350_v61 }
 0x602   : > { %v2351_v26 = vsel %vm458_vm2, %v2345_v60, %v5320_v20  ;;  %v2353_v62 = vsel %vm458_vm2, %v2341_v53, %v2345_v60  ;;  %v2396_v53 = vld [vmem:[%s5749_s1 + $0x80] sm:$0xff]  ;;  %v2398_v3 = vmul.f32 %v2392_v2, %v2390_v16  ;;  %v2401_v28 = vmul.f32 %v2395_v4, %v2391_v17  ;;  %v2429_v60 = vld [vmem:[%s5749_s1 + $0x98] sm:$0xff]  ;;  %v2432_v17 = vld [vmem:[%s5749_s1 + $0xb0] sm:$0xff] }
 0x603   : > { %v2366_v15 = vmul.f32 %v2360_v58, %v2353_v62  ;;  %v2367_v43 = vmul.f32 %v2361_v34, %v2351_v26  ;;  %2701 = vmatprep.subr.bf16.mxu0 %v2333_v56  ;;  %2765 = vmatpush1.bf16.msra.mxu1 %v2334_v23  ;;  %v2379_v6 = vpop.permute.xlu1 %2378  ;;  %v2426_v2 = vsel %vm532_vm4, %v5326_v24, %v5346_v46 }
 0x604   : > { %v2386_v20 = vsel %vm495_vm3, %v2379_v6, %v5322_v27  ;;  %v2388_v41 = vsel %vm495_vm3, %v5342_v45, %v2379_v6  ;;  %2702 = vmatpush1.bf16.msra.mxu0 %v2332_v31  ;;  %2766 = vmatprep.subr.bf16.mxu1 %v5862_v57  ;;  %v2431_v45 = vld [vmem:[%s5749_s1 + $0xa8] sm:$0xff]  ;;  %v2427_v31 = vsel %vm532_vm4, %v5328_v25, %v5348_v39 }
 0x605   : > { %v2370_v52 = vpack.c.bf16 %v2367_v43, %v2364_v44  ;;  %v2381_v61 = vpop.permute.xlu0 %2380  ;;  %v2369_v27 = vpack.c.bf16 %v2366_v15, %v2363_v50  ;;  %v2399_v1 = vmul.f32 %v2393_v59, %v2388_v41  ;;  %v2400_v63 = vmul.f32 %v2394_v54, %v2386_v20  ;;  %v2433_v50 = vld [vmem:[%s5749_s1 + $0xb8] sm:$0xff] }
 0x606   : > { %v2387_v58 = vsel %vm495_vm3, %v2381_v61, %v5324_v35  ;;  %v2389_v34 = vsel %vm495_vm3, %v5344_v36, %v2381_v61  ;;  %v2430_v35 = vld [vmem:[%s5749_s1 + $0xa0] sm:$0xff]  ;;  %v2404_v26 = vpack.c.bf16 %v2401_v28, %v2398_v3  ;;  %v2437_v62 = vmul.f32 %v2431_v45, %v2427_v31  ;;  %v2475_v54 = vld [vmem:[%s5749_s1 + $0x118] sm:$0xff]  ;;  %v2470_v31 = vld [vmem:[%s5749_s1 + $0xf0] sm:$0xff] }
 0x607   : > { %v2402_v16 = vmul.f32 %v2396_v53, %v2389_v34  ;;  %v2403_v23 = vmul.f32 %v2397_v42, %v2387_v58  ;;  %2703 = vmatprep.subr.bf16.mxu0 %v2369_v27  ;;  %2767 = vmatpush1.bf16.msra.mxu1 %v2370_v52  ;;  %v2415_v56 = vpop.permute.xlu1 %2414  ;;  %v2469_v43 = vsel %vm575_vm5, %v5332_v37, %v5352_v22 }
 0x608   : > { %v2422_v36 = vsel %vm532_vm4, %v2415_v56, %v5326_v24  ;;  %v2424_v4 = vsel %vm532_vm4, %v5346_v46, %v2415_v56  ;;  %2704 = vmatpush1.bf16.msra.mxu0 %v2368_v14  ;;  %2768 = vmatprep.subr.bf16.mxu1 %v5862_v57  ;;  %v2428_v24 = vld [vmem:[%s5749_s1 + $0x90] sm:$0xff]  ;;  %v2481_v45 = vmul.f32 %v2475_v54, %v2469_v43 }
 0x609   : > { %v2406_v44 = vpack.c.bf16 %v2403_v23, %v2400_v63  ;;  %v2417_v15 = vpop.permute.xlu0 %2416  ;;  %v2405_v46 = vpack.c.bf16 %v2402_v16, %v2399_v1  ;;  %v2435_v59 = vmul.f32 %v2429_v60, %v2424_v4  ;;  %v2436_v20 = vmul.f32 %v2430_v35, %v2422_v36  ;;  %v2471_v63 = vld [vmem:[%s5749_s1 + $0xf8] sm:$0xff]  ;;  %v2473_v60 = vld [vmem:[%s5749_s1 + $0x108] sm:$0xff] }
 0x60a   : > { %v2423_v6 = vsel %vm532_vm4, %v2417_v15, %v5328_v25  ;;  %v2425_v14 = vsel %vm532_vm4, %v5348_v39, %v2417_v15  ;;  %v2434_v3 = vmul.f32 %v2428_v24, %v2426_v2  ;;  %v2472_v25 = vld [vmem:[%s5749_s1 + $0x100] sm:$0xff]  ;;  %v2468_v39 = vsel %vm575_vm5, %v5330_v32, %v5350_v18  ;;  %v2511_v36 = vld [vmem:[%s5749_s1 + $0x148] sm:$0xff]  ;;  %v2509_v15 = vld [vmem:[%s5749_s1 + $0x138] sm:$0xff] }
 0x60b   : > { %v2438_v41 = vmul.f32 %v2432_v17, %v2425_v14  ;;  %v2439_v53 = vmul.f32 %v2433_v50, %v2423_v6  ;;  %2705 = vmatprep.subr.bf16.mxu0 %v2405_v46  ;;  %2769 = vmatpush1.bf16.msra.mxu1 %v2406_v44  ;;  %v5509_v42 = vpop.permute.xlu1 %2568  ;;  %v2447_v58 = vpack.c.bf16 %v5240_v38, %v5236_v19  ;;  %v2474_v19 = vld [vmem:[%s5749_s1 + $0x110] sm:$0xff]  ;;  %v2507_v44 = vld [vmem:[%s5749_s1 + $0x128] sm:$0xff]  ;;  %v2510_v46 = vld [vmem:[%s5749_s1 + $0x140] sm:$0xff] }
 0x60c   : > { %2706 = vmatpush1.bf16.msra.mxu0 %v2404_v26  ;;  %2770 = vmatprep.subr.bf16.mxu1 %v5862_v57  ;;  %v2440_v27 = vpack.c.bf16 %v2437_v62, %v2434_v3  ;;  %v2478_v34 = vmul.f32 %v2472_v25, %v2468_v39  ;;  %v2508_v38 = vld [vmem:[%s5749_s1 + $0x130] sm:$0xff]  ;;  %v2448_v56 = vpack.c.bf16 %v5176_v30, %v5174_v51  ;;  %v2506_v26 = vld [vmem:[%s5749_s1 + $0x120] sm:$0xff]  ;;  %v2547_v14 = vld [vmem:[%s5749_s1 + $0x178] sm:$0xff] }
 0x60d   : > { %v2442_v28 = vpack.c.bf16 %v2439_v53, %v2436_v20  ;;  %v5519_v52 = vpop.permute.xlu0 %2570  ;;  %v2441_v61 = vpack.c.bf16 %v2438_v41, %v2435_v59  ;;  %v2446_v2 = vpack.c.bf16 %v5208_v29, %v5204_v8  ;;  %v2505_v4 = vsel %vm612_vm6, %v5336_v47, %v5356_v33  ;;  %v2544_v3 = vld [vmem:[%s5749_s1 + $0x160] sm:$0xff] }
 0x60e   : > { %v2484_v35 = vpack.c.bf16 %v2481_v45, %v2478_v34  ;;  %v2517_v43 = vmul.f32 %v2511_v36, %v2505_v4  ;;  %v2541_v54 = vsel %vm649_vm7, %v5340_v40, %v5365_v21 }
 0x60f   : > { %2707 = vmatprep.subr.bf16.mxu0 %v2441_v61  ;;  %2771 = vmatpush1.bf16.msra.mxu1 %v2442_v28  ;;  %v2457_v1 = vpop.permute.xlu1 %2456  ;;  %v2542_v61 = vld [vmem:[%s5749_s1 + $0x150] sm:$0xff]  ;;  %v2553_v34 = vmul.f32 %v2547_v14, %v2541_v54 }
 0x610   : > { %v2464_v16 = vsel %vm575_vm5, %v2457_v1, %v5330_v32  ;;  %v2466_v23 = vsel %vm575_vm5, %v5350_v18, %v2457_v1  ;;  %2708 = vmatpush1.bf16.msra.mxu0 %v2440_v27  ;;  %2772 = vmatprep.subr.bf16.mxu1 %v5862_v57  ;;  %v2504_v32 = vsel %vm612_vm6, %v5334_v55, %v5354_v0  ;;  %v2546_v1 = vld [vmem:[%s5749_s1 + $0x170] sm:$0xff] }
 0x611   : > { %v2459_v18 = vpop.permute.xlu0 %2458  ;;  %2709 = vmatprep.subr.bf16.mxu0 %v2447_v58  ;;  %v2476_v30 = vmul.f32 %v2470_v31, %v2466_v23  ;;  %v2477_v8 = vmul.f32 %v2471_v63, %v2464_v16  ;;  %v2514_v62 = vmul.f32 %v2508_v38, %v2504_v32  ;;  %v2545_v31 = vld [vmem:[%s5749_s1 + $0x168] sm:$0xff]  ;;  %v3026_v54 = vld [vmem:[%s5756_s8 + $0x14] ss:$8 sps:$4 sm:$0xff]  }
 0x612   : > { %v2465_v17 = vsel %vm575_vm5, %v2459_v18, %v5332_v37  ;;  %v2467_v51 = vsel %vm575_vm5, %v5352_v22, %v2459_v18 }
 0x613   : > { %v2479_v29 = vmul.f32 %v2473_v60, %v2467_v51  ;;  %v2480_v50 = vmul.f32 %v2474_v19, %v2465_v17  ;;  %2773 = vmatpush1.bf16.msra.mxu1 %v2448_v56  ;;  %v2493_v24 = vpop.permute.xlu1 %2492  ;;  %v2520_v58 = vpack.c.bf16 %v2517_v43, %v2514_v62 }
 0x614   : > { %v2500_v37 = vsel %vm612_vm6, %v2493_v24, %v5334_v55  ;;  %v2502_v22 = vsel %vm612_vm6, %v5354_v0, %v2493_v24  ;;  %2710 = vmatpush1.bf16.msra.mxu0 %v2446_v2  ;;  %2774 = vmatprep.subr.bf16.mxu1 %v5862_v57  ;;  %v2540_v55 = vsel %vm649_vm7, %v5338_v9, %v5358_v7  ;;  %v2579_v2 = vld [vmem:[%s5749_s1 + $0x188] sm:$0xff] }
 0x615   : > { %v2482_v59 = vpack.c.bf16 %v2479_v29, %v2476_v30  ;;  %v2495_v6 = vpop.permute.xlu0 %2494  ;;  %v2483_v0 = vpack.c.bf16 %v2480_v50, %v2477_v8  ;;  %v2512_v20 = vmul.f32 %v2506_v26, %v2502_v22  ;;  %v2513_v25 = vmul.f32 %v2507_v44, %v2500_v37  ;;  %v2578_v29 = vld [vmem:[%s5749_s1 + $0x180] sm:$0xff]  ;;  %v2580_v26 = vld [vmem:[%s5749_s1 + $0x190] sm:$0xff]  ;;  %v2581_v44 = vld [vmem:[%s5749_s1 + $0x198] sm:$0xff] }
 0x616   : > { %v2501_v41 = vsel %vm612_vm6, %v2495_v6, %v5336_v47  ;;  %v2503_v53 = vsel %vm612_vm6, %v5356_v33, %v2495_v6  ;;  %v2543_v47 = vld [vmem:[%s5749_s1 + $0x158] sm:$0xff]  ;;  %v2550_v23 = vmul.f32 %v2544_v3, %v2540_v55  ;;  %v2583_v37 = vld [vmem:[%s5749_s1 + $0x1a8] sm:$0xff] }
 0x617   : > { %v2515_v39 = vmul.f32 %v2509_v15, %v2503_v53  ;;  %v2516_v28 = vmul.f32 %v2510_v46, %v2501_v41  ;;  %2775 = vmatpush1.bf16.msra.mxu1 %v2484_v35  ;;  %v2529_v27 = vpop.permute.xlu1 %2528  ;;  %2711 = vmatprep.subr.bf16.mxu0 %v2483_v0 }
 0x618   : > { %v2536_v33 = vsel %vm649_vm7, %v2529_v27, %v5338_v9  ;;  %v2538_v45 = vsel %vm649_vm7, %v5358_v7, %v2529_v27  ;;  %2712 = vmatpush1.bf16.msra.mxu0 %v2482_v59  ;;  %2776 = vmatprep.subr.bf16.mxu1 %v5862_v57  ;;  %v6021_v27 = vld [vmem:[#allocation11_spill] sm:$0xff] }
 0x619   : > { %v2518_v63 = vpack.c.bf16 %v2515_v39, %v2512_v20  ;;  %v2531_v16 = vpop.permute.xlu0 %2530  ;;  %v2519_v9 = vpack.c.bf16 %v2516_v28, %v2513_v25  ;;  %v2548_v60 = vmul.f32 %v2542_v61, %v2538_v45  ;;  %v2549_v38 = vmul.f32 %v2543_v47, %v2536_v33  ;;  %v6022_v47 = vld [vmem:[#allocation14_spill] sm:$0xff]  ;;  %v6023_v45 = vld [vmem:[#allocation12_spill] sm:$0xff] }
 0x61a   : > { %v2537_v7 = vsel %vm649_vm7, %v2531_v16, %v5340_v40  ;;  %v2539_v19 = vsel %vm649_vm7, %v5365_v21, %v2531_v16  ;;  %v2582_v40 = vld [vmem:[%s5749_s1 + $0x1a0] sm:$0xff]  ;;  %v2556_v21 = vpack.c.bf16 %v2553_v34, %v2550_v23 }
 0x61b   : > { %v2551_v32 = vmul.f32 %v2545_v31, %v2539_v19  ;;  %v2552_v18 = vmul.f32 %v2546_v1, %v2537_v7  ;;  %2777 = vmatpush1.bf16.msra.mxu1 %v2520_v58  ;;  %v2565_v56 = vpop.permute.xlu1 %2564  ;;  %2713 = vmatprep.subr.bf16.mxu0 %v2519_v9  ;;  %v6024_v1 = vld [vmem:[#allocation20_spill] sm:$0xff]  ;;  %v6025_v34 = vld [vmem:[#allocation15_spill] sm:$0xff]  ;;  %v6026_v9 = vld [vmem:[#allocation38_spill] sm:$0xff] }
 0x61c   : > { %v2572_v35 = vsel %vm686_vm8, %v2565_v56, %v5509_v42  ;;  %2714 = vmatpush1.bf16.msra.mxu0 %v2518_v63  ;;  %2778 = vmatprep.subr.bf16.mxu1 %v5862_v57  ;;  %v6028_v19 = vld [vmem:[#allocation36_spill] sm:$0xff] }
 0x61d   : > { %v2554_v36 = vpack.c.bf16 %v2551_v32, %v2548_v60  ;;  %v2567_v4 = vpop.permute.xlu0 %2566  ;;  %v2555_v17 = vpack.c.bf16 %v2552_v18, %v2549_v38  ;;  %v2585_v30 = vmul.f32 %v2579_v2, %v2572_v35  ;;  %v6027_v60 = vld [vmem:[#allocation19_spill] sm:$0xff] }
 0x61e   : > { %v2573_v51 = vsel %vm686_vm8, %v2567_v4, %v5519_v52 }
 0x61f   : > { %v2588_v8 = vmul.f32 %v2582_v40, %v2573_v51  ;;  %2779 = vmatpush1.bf16.msra.mxu1 %v2556_v21  ;;  %v2561_v50 = vpop.permute.xlu1 %2560  ;;  %2715 = vmatprep.subr.bf16.mxu0 %v2555_v17 }
 0x620   : > { %v2574_v24 = vsel %vm686_vm8, %v2561_v50, %v2565_v56  ;;  %v2576_v62 = vsel %vm686_vm8, %v5509_v42, %v2561_v50  ;;  %2716 = vmatpush1.bf16.msra.mxu0 %v2554_v36  ;;  %2780 = vmatprep.subr.bf16.mxu1 %v5862_v57  ;;  %v3025_v57 = vld [vmem:[%s5756_s8] ss:$8 sps:$4 sm:$0xff]  }
 0x621   : > { %v2563_v22 = vpop.permute.xlu0 %2562  ;;  %v2591_v15 = vpack.c.bf16 %v2588_v8, %v2585_v30  ;;  %v2584_v43 = vmul.f32 %v2578_v29, %v2574_v24  ;;  %v2586_v55 = vmul.f32 %v2580_v26, %v2576_v62 }
 0x622   : > { %v2575_v46 = vsel %vm686_vm8, %v2563_v22, %v2567_v4  ;;  %v2577_v42 = vsel %vm686_vm8, %v5519_v52, %v2563_v22  ;;  %v3029_v52 = vld [vmem:[%s5756_s8 + $0x24] ss:$8 sps:$4 sm:$0xff]  }
 0x623   : > { %v2587_v59 = vmul.f32 %v2581_v44, %v2575_v46  ;;  %v2589_v6 = vmul.f32 %v2583_v37, %v2577_v42  ;;  %2717 = vmatprep.subr.bf16.mxu0 %v2591_v15 }
 0x625   : > { %v2590_v0 = vpack.c.bf16 %v2587_v59, %v2584_v43  ;;  %v2592_v14 = vpack.c.bf16 %v2589_v6, %v2586_v55 }
 0x627   : > { %2718 = vmatpush1.bf16.msra.mxu0 %v2590_v0  ;;  %2781 = vmatpush1.bf16.msra.mxu1 %v2592_v14 }
 0x62a   : > { %2734 = vmatmul.mubr.bf16.vlgmr.msra.gmra.mrb[28].mxu0 %v3025_v57  ;;  %2797 = vmatmul.mubr.bf16.vlgmr.msra.gmra.mrb[28].mxu1 %v3025_v57 }
 0x62b   : > { %2974 = vmatprep.mubr.msk.bf16.mxu0 %vm784_vm0, %v3026_v54  ;;  %2977 = vmatprep.mubr.msk.bf16.mxu1 %vm784_vm0, %v3026_v54 }
 0x630   : > { %v1676_v20 = vpop.permute.xlu1 %1675 }
 0x631   : > { %v1766_v41 = vadd.f32 %v5146_v12, %v1676_v20  ;;  %v1768_v53 = vadd.f32 %v5150_v48, %v1676_v20  ;;  %v1827_v3 = vadd.f32 %v5144_v5, %v1676_v20  ;;  %v6020_v48 = vld [vmem:[#allocation13_spill] sm:$0xff] }
 0x632   : > { %v1681_v25 = vpop.permute.xlu0 %1680  ;;  %2744 = vmatmul.mubr.bf16.gmra.mrb[32].mxu0 %v3028_v11  ;;  %2805 = vmatmul.mubr.bf16.gmra.mrb[32].mxu1 %v3028_v11 }
 0x633   : > { %1848 = vst [vmem:[%s5684_s30] sm:$0xff] %v1766_v41  ;;  %1849 = vst [vmem:[%s5684_s30 + $0x8] sm:$0xff] %v1768_v53  ;;  %v1770_v39 = vadd.f32 %v5152_v49, %v1681_v25  ;;  %v1772_v28 = vadd.f32 %v5154_v13, %v1681_v25  ;;  %v1830_v12 = vadd.f32 %v5148_v10, %v1681_v25  ;;  %2975 = vmatprep.mubr.msk.bf16.mxu0 %vm784_vm0, %v3029_v52  ;;  %v3031_v10 = vld [vmem:[%s5756_s8 + $0x20] ss:$8 sps:$4 sm:$0xff]  }
 0x634   : > { %1850 = vst [vmem:[%s5684_s30 + $0x10] sm:$0xff] %v1827_v3  ;;  %2978 = vmatprep.mubr.msk.bf16.mxu1 %vm784_vm0, %v3029_v52  ;;  %v1686_v5 = vpop.permute.xlu1 %1685 }
 0x635   : > { %1851 = vst [vmem:[%s5684_s30 + $0x18] sm:$0xff] %v1770_v39  ;;  %1852 = vst [vmem:[%s5684_s30 + $0x20] sm:$0xff] %v1772_v28  ;;  %v1776_v61 = vadd.f32 %v6020_v48, %v1686_v5  ;;  %v1778_v49 = vadd.f32 %v6021_v27, %v1686_v5  ;;  %v1835_v33 = vadd.f32 %v6022_v47, %v1686_v5 }
 0x636   : > { %1853 = vst [vmem:[%s5684_s30 + $0x28] sm:$0xff] %v1830_v12  ;;  %v1691_v13 = vpop.permute.xlu0 %1690 }
 0x637   : > { %1854 = vst [vmem:[%s5684_s30 + $0x30] sm:$0xff] %v1776_v61  ;;  %1855 = vst [vmem:[%s5684_s30 + $0x38] sm:$0xff] %v1778_v49  ;;  %v1780_v31 = vadd.f32 %v6023_v45, %v1691_v13  ;;  %v1782_v58 = vadd.f32 %v6024_v1, %v1691_v13  ;;  %v1838_v63 = vadd.f32 %v6025_v34, %v1691_v13 }
 0x638   : > { %1856 = vst [vmem:[%s5684_s30 + $0x40] sm:$0xff] %v1835_v33  ;;  %v1696_v16 = vpop.permute.xlu1 %1695 }
 0x639   : > { %1857 = vst [vmem:[%s5684_s30 + $0x48] sm:$0xff] %v1780_v31  ;;  %1858 = vst [vmem:[%s5684_s30 + $0x50] sm:$0xff] %v1782_v58  ;;  %v1786_v23 = vadd.f32 %v6026_v9, %v1696_v16  ;;  %v1788_v7 = vadd.f32 %v6027_v60, %v1696_v16  ;;  %v1843_v38 = vadd.f32 %v6028_v19, %v1696_v16 }
 0x63a   : > { %1859 = vst [vmem:[%s5684_s30 + $0x58] sm:$0xff] %v1838_v63  ;;  %2754 = vmatmul.mubr.bf16.gmra.mrb[36].mxu0 %v3031_v10  ;;  %2813 = vmatmul.mubr.bf16.gmra.mrb[36].mxu1 %v3031_v10  ;;  %v2638_v32 = vpop.permute.xlu0 %2637 }
 0x63b   : > { %1860 = vst [vmem:[%s5684_s30 + $0x60] sm:$0xff] %v1786_v23  ;;  %1861 = vst [vmem:[%s5684_s30 + $0x68] sm:$0xff] %v1788_v7 }
 0x63c   : > { %1862 = vst [vmem:[%s5684_s30 + $0x70] sm:$0xff] %v1843_v38  ;;  %v2643_v18 = vpop.permute.xlu1 %2642 }
 0x63e   : > { %v2648_v24 = vpop.permute.xlu0 %2647 }
 0x640   : > { %v2653_v62 = vpop.permute.xlu1 %2652 }
 0x642   : > { %v2658_v11 = vpop.permute.xlu0 %2657 }
 0x644   : > { %v2663_v52 = vpop.permute.xlu1 %2662 }
 0x6fd   : > { %v2735_v56 = vpop.f32.mrb[28].mxu0  ;;  %v2798_v2 = vpop.f32.mrb[28].mxu1 }
 0x6fe   : > { %v2736_v35 = vadd.f32 %v2735_v56, %v2638_v32  ;;  %v2799_v40 = vadd.f32 %v2798_v2, %v2638_v32  ;;  %v2737_v21 = vpop.f32.mrb[29].mxu0  ;;  %v2800_v36 = vpop.f32.mrb[29].mxu1 }
 0x6ff   : > { %v2738_v4 = vadd.f32 %v2737_v21, %v2638_v32  ;;  %v2739_v17 = vpop.f32.mrb[30].mxu0  ;;  %v2801_v51 = vpop.f32.mrb[30].mxu1 }
 0x700   : > { %2821 = vst [vmem:[%s5725_s24] sm:$0xff] %v2736_v35  ;;  %2823 = vst [vmem:[%s5725_s24 + $0x10] sm:$0xff] %v2799_v40  ;;  %v2740_v30 = vadd.f32 %v2739_v17, %v2643_v18  ;;  %v2802_v8 = vadd.f32 %v2801_v51, %v2643_v18  ;;  %v2741_v29 = vpop.f32.mrb[31].mxu0  ;;  %v2803_v50 = vpop.f32.mrb[31].mxu1 }
 0x701   : > { %2822 = vst [vmem:[%s5725_s24 + $0x8] sm:$0xff] %v2738_v4  ;;  %v2742_v26 = vadd.f32 %v2741_v29, %v2643_v18 }
 0x702   : > { %2824 = vst [vmem:[%s5725_s24 + $0x18] sm:$0xff] %v2740_v30  ;;  %2826 = vst [vmem:[%s5725_s24 + $0x28] sm:$0xff] %v2802_v8 }
 0x703   : > { %2825 = vst [vmem:[%s5725_s24 + $0x20] sm:$0xff] %v2742_v26 }
 0x705   : > { %v2745_v44 = vpop.f32.mrb[32].mxu0  ;;  %v2806_v37 = vpop.f32.mrb[32].mxu1 }
 0x706   : > { %v2746_v22 = vadd.f32 %v2745_v44, %v2648_v24  ;;  %v2807_v15 = vadd.f32 %v2806_v37, %v2648_v24  ;;  %v2747_v46 = vpop.f32.mrb[33].mxu0  ;;  %v2808_v42 = vpop.f32.mrb[33].mxu1 }
 0x707   : > { %v2748_v43 = vadd.f32 %v2747_v46, %v2648_v24  ;;  %v2749_v55 = vpop.f32.mrb[34].mxu0  ;;  %v2809_v59 = vpop.f32.mrb[34].mxu1 }
 0x708   : > { %2827 = vst [vmem:[%s5725_s24 + $0x30] sm:$0xff] %v2746_v22  ;;  %2829 = vst [vmem:[%s5725_s24 + $0x40] sm:$0xff] %v2807_v15  ;;  %v2750_v6 = vadd.f32 %v2749_v55, %v2653_v62  ;;  %v2810_v0 = vadd.f32 %v2809_v59, %v2653_v62  ;;  %v2751_v14 = vpop.f32.mrb[35].mxu0  ;;  %v2811_v57 = vpop.f32.mrb[35].mxu1 }
 0x709   : > { %2828 = vst [vmem:[%s5725_s24 + $0x38] sm:$0xff] %v2748_v43  ;;  %v2752_v54 = vadd.f32 %v2751_v14, %v2653_v62 }
 0x70a   : > { %2830 = vst [vmem:[%s5725_s24 + $0x48] sm:$0xff] %v2750_v6  ;;  %2832 = vst [vmem:[%s5725_s24 + $0x58] sm:$0xff] %v2810_v0 }
 0x70b   : > { %2831 = vst [vmem:[%s5725_s24 + $0x50] sm:$0xff] %v2752_v54 }
 0x70d   : > { %v2755_v20 = vpop.f32.mrb[36].mxu0  ;;  %v2814_v41 = vpop.f32.mrb[36].mxu1 }
 0x70e   : > { %v2756_v53 = vadd.f32 %v2755_v20, %v2658_v11  ;;  %v2815_v3 = vadd.f32 %v2814_v41, %v2658_v11  ;;  %v2757_v25 = vpop.f32.mrb[37].mxu0  ;;  %v2816_v39 = vpop.f32.mrb[37].mxu1 }
 0x70f   : > { %v2758_v28 = vadd.f32 %v2757_v25, %v2658_v11  ;;  %v2759_v12 = vpop.f32.mrb[38].mxu0  ;;  %v2817_v5 = vpop.f32.mrb[38].mxu1 }
 0x710   : > { %2833 = vst [vmem:[%s5725_s24 + $0x60] sm:$0xff] %v2756_v53  ;;  %2835 = vst [vmem:[%s5725_s24 + $0x70] sm:$0xff] %v2815_v3  ;;  %v2760_v48 = vadd.f32 %v2759_v12, %v2663_v52  ;;  %v2818_v61 = vadd.f32 %v2817_v5, %v2663_v52  ;;  %v2761_v27 = vpop.f32.mrb[39].mxu0  ;;  %v2819_v49 = vpop.f32.mrb[39].mxu1 }
 0x711   : > { %2834 = vst [vmem:[%s5725_s24 + $0x68] sm:$0xff] %v2758_v28  ;;  %v2762_v47 = vadd.f32 %v2761_v27, %v2663_v52 }
 0x712   : > { %2836 = vst [vmem:[%s5725_s24 + $0x78] sm:$0xff] %v2760_v48  ;;  %2838 = vst [vmem:[%s5725_s24 + $0x88] sm:$0xff] %v2818_v61 }
 0x713   : > { %2837 = vst [vmem:[%s5725_s24 + $0x80] sm:$0xff] %v2762_v47 }
 0x714 PF: > { %s22_s17 = sadd.s32 1, %s3038_s17  }
 0x715   : > { %p19_p4 = scmp.ge.s32.totalorder %s22_s17, 4  }
 0x717   :  { %21 = sbr.rel (!%p19_p4) target bundleno = 1 (0x1), region = 104 }

</bundles_post_ra>
